<compile_context>
chip_gen: v7x
topology: tpu7x:2x2x1
jax: 0.10.0
libtpu: 0.0.40
codegen_flags: <defaults>
</compile_context>

<pallas_src>
import math
from functools import partial

import jax
import jax.numpy as jnp
from jax import lax
from jax.experimental import pallas as pl
from jax.experimental.pallas import tpu as pltpu


# ---------------------------------------------------------------------------
# In-kernel helpers (traced inside the Pallas kernel body)
# ---------------------------------------------------------------------------
def _gelu(x):
    # exact erf-based gelu, matching the PyTorch reference `gelu`
    return x * 0.5 * (1.0 + lax.erf(x / math.sqrt(2.0)))


def _layernorm(x, gamma, beta, eps=1e-5):
    mean = jnp.mean(x, axis=-1, keepdims=True)
    var = jnp.mean((x - mean) ** 2, axis=-1, keepdims=True)
    return (x - mean) * lax.rsqrt(var + eps) * gamma + beta


def _mm(a_bf16, b_bf16):
    # bf16 inputs, f32 accumulation on the MXU
    return jnp.dot(a_bf16, b_bf16, preferred_element_type=jnp.float32)


# ---------------------------------------------------------------------------
# Kernel: one batch element per grid step.
#   x_ref    : (L, D)  bf16  activation slab for this batch element
#   mask_ref : (1, L)  f32   additive key-padding bias (0 / -inf)
#   matmul weights: bf16; biases / LN params: f32
#   o_ref    : (L, D)  out_dtype
#   ctx_ref  : (L, D)  bf16  VMEM scratch for the per-head attention context
# ---------------------------------------------------------------------------
def bart_encoder_layer_kernel(
    x_ref, mask_ref,
    wq_ref, bq_ref, wk_ref, bk_ref, wv_ref, bv_ref, wo_ref, bo_ref,
    g1_ref, be1_ref, wf1_ref, bf1_ref, wf2_ref, bf2_ref, g2_ref, be2_ref,
    o_ref, ctx_ref, *, n_heads, q_row_tile, ffn_col_tile):
    L, D = x_ref.shape
    hd = D // n_heads
    ffn_dim = wf1_ref.shape[1]
    scale = 1.0 / math.sqrt(hd)

    x_bf = x_ref[...]                              # (L, D) bf16 matmul operand
    x_f32 = x_bf.astype(jnp.float32)               # residual / LN path
    mask = mask_ref[...]                           # (1, L) additive bias

    # ---- QKV projections (bf16 in, f32 accumulate); fold 1/sqrt(hd) into q ----
    q = (_mm(x_bf, wq_ref[...]) + bq_ref[...]) * scale
    k = _mm(x_bf, wk_ref[...]) + bk_ref[...]
    v = _mm(x_bf, wv_ref[...]) + bv_ref[...]
    # cast once: halves the activation footprint held across the head loops
    q_bf = q.astype(jnp.bfloat16)
    k_bf = k.astype(jnp.bfloat16)
    v_bf = v.astype(jnp.bfloat16)

    # heads grouped so each context store is (ideally) a 128-lane-aligned slab
    if hd >= 128:
        hpg = 1
    else:
        hpg = math.gcd(n_heads, max(1, 128 // hd))
    n_groups = n_heads // hpg
    gw = hpg * hd

    tq = min(L, q_row_tile)
    for r0 in range(0, L, tq):                     # flash-style query-row tiles
        r1 = min(r0 + tq, L)
        rows = slice(r0, r1)
        for g in range(n_groups):
            parts = []
            for hh in range(hpg):                  # n_heads is a small constant
                h = g * hpg + hh
                hs = slice(h * hd, (h + 1) * hd)
                # scores = q_tile @ k^T (contract last dims, no transpose copy)
                s = lax.dot_general(
                    q_bf[rows, hs], k_bf[:, hs],
                    dimension_numbers=(((1,), (1,)), ((), ())),
                    preferred_element_type=jnp.float32)        # (tq, L) f32
                s = s + mask                        # key-padding bias
                # NOTE: fully-masked rows give NaN, matching PyTorch MHA pathology.
                s = s - jnp.max(s, axis=-1, keepdims=True)
                p = jnp.exp(s)
                p = p * pl.reciprocal(jnp.sum(p, axis=-1, keepdims=True),
                                      approx=True)
                parts.append(_mm(p.astype(jnp.bfloat16), v_bf[:, hs]))  # (tq, hd)
            ctx = parts[0] if hpg == 1 else jnp.concatenate(parts, axis=-1)
            ctx_ref[rows, g * gw:(g + 1) * gw] = ctx.astype(jnp.bfloat16)

    # ---- output projection + residual + LayerNorm 1 ----
    attn = _mm(ctx_ref[...], wo_ref[...]) + bo_ref[...]         # (L, D) f32
    h1 = _layernorm(x_f32 + attn, g1_ref[...], be1_ref[...])
    h1_bf = h1.astype(jnp.bfloat16)

    # ---- FFN (tiled over ffn_dim) + residual + LayerNorm 2 ----
    tf = min(ffn_dim, ffn_col_tile)
    ffn_acc = jnp.zeros((L, D), jnp.float32)
    for c0 in range(0, ffn_dim, tf):
        c1 = min(c0 + tf, ffn_dim)
        cs = slice(c0, c1)
        f1c = _gelu(_mm(h1_bf, wf1_ref[:, cs]) + bf1_ref[:, cs])   # (L, tf) f32
        ffn_acc = ffn_acc + _mm(f1c.astype(jnp.bfloat16), wf2_ref[cs, :])
    f2 = ffn_acc + bf2_ref[...]
    h2 = _layernorm(h1 + f2, g2_ref[...], be2_ref[...])

    o_ref[...] = h2.astype(o_ref.dtype)


# ---------------------------------------------------------------------------
# VMEM budget: ~85% of physical VMEM (weights single-buffered + double-buffered
# activation slabs + transients).  v7x -> ~54 MiB, v5e/v6e -> ~109 MiB.
# ---------------------------------------------------------------------------
def _vmem_limit_bytes():
    try:
        cap = int(pltpu.get_tpu_info().vmem_capacity_bytes)
        return max(32 * 1024 * 1024, int(cap * 0.85))
    except Exception:
        return 48 * 1024 * 1024      # conservative: fits every generation


def _resident_spec(shape, single_buffer):
    """Constant-index_map (VMEM-resident) spec; single-buffered when supported."""
    idx = lambda b: (0, 0)
    if single_buffer and hasattr(pl, "Buffered"):
        try:
            return pl.BlockSpec(shape, idx, pipeline_mode=pl.Buffered(1))
        except TypeError:
            pass
    return pl.BlockSpec(shape, idx)


# ---------------------------------------------------------------------------
# Core wrapper: (B, L, D) in / out -> no layout transposes around the kernel
# ---------------------------------------------------------------------------
def bart_encoder_layer_bld(x_bld, params, n_heads, src_key_padding_mask=None,
                           *, out_dtype=jnp.float32,
                           q_row_tile=512, ffn_col_tile=512):
    B, L, D = x_bld.shape
    ffn_dim = params["wf1"].shape[1]
    bf16 = jnp.bfloat16

    # activations DMA'd in bf16 (only per-grid-step HBM traffic)
    x_bf = x_bld.astype(bf16)

    if src_key_padding_mask is None:
        mask_bias = jnp.zeros((B, 1, L), jnp.float32)
    else:
        mask_bias = jnp.where(src_key_padding_mask,
                              jnp.float32(-jnp.inf),
                              jnp.float32(0.0))[:, None, :]        # (B, 1, L)

    wq = params["wq"].astype(bf16); wk = params["wk"].astype(bf16)
    wv = params["wv"].astype(bf16); wo = params["wo"].astype(bf16)
    wf1 = params["wf1"].astype(bf16); wf2 = params["wf2"].astype(bf16)

    args = (x_bf, mask_bias,
            wq, params["bq"], wk, params["bk"], wv, params["bv"],
            wo, params["bo"],
            params["g1"], params["be1"], wf1, params["bf1"],
            wf2, params["bf2"], params["g2"], params["be2"])

    def build(single_buffer):
        resident = lambda shape: _resident_spec(shape, single_buffer)
        in_specs = [
            pl.BlockSpec((None, L, D), lambda b: (b, 0, 0)),      # x
            pl.BlockSpec((None, 1, L), lambda b: (b, 0, 0)),      # mask bias
            resident((D, D)), resident((1, D)),                   # wq, bq
            resident((D, D)), resident((1, D)),                   # wk, bk
            resident((D, D)), resident((1, D)),                   # wv, bv
            resident((D, D)), resident((1, D)),                   # wo, bo
            resident((1, D)), resident((1, D)),                   # g1, be1
            resident((D, ffn_dim)), resident((1, ffn_dim)),       # wf1, bf1
            resident((ffn_dim, D)), resident((1, D)),             # wf2, bf2
            resident((1, D)), resident((1, D)),                   # g2, be2
        ]
        grid_spec = pltpu.PrefetchScalarGridSpec(
            num_scalar_prefetch=0,
            grid=(B,),
            in_specs=in_specs,
            out_specs=pl.BlockSpec((None, L, D), lambda b: (b, 0, 0)),
            scratch_shapes=[pltpu.VMEM((L, D), bf16)],            # attn context
        )
        return pl.pallas_call(
            partial(bart_encoder_layer_kernel, n_heads=n_heads,
                    q_row_tile=q_row_tile, ffn_col_tile=ffn_col_tile),
            out_shape=jax.ShapeDtypeStruct((B, L, D), out_dtype),
            grid_spec=grid_spec,
            compiler_params=pltpu.CompilerParams(
                dimension_semantics=("parallel",),
                vmem_limit_bytes=_vmem_limit_bytes(),
            ),
        )

    try:
        return build(single_buffer=True)(*args)
    except Exception:
        # pipeline_mode=pl.Buffered(1) unsupported on this jax build: fall back
        # to default (double-buffered) resident weights.
        return build(single_buffer=False)(*args)


# ---------------------------------------------------------------------------
# PyTorch-layout shim: (L, B, D) in / out.  The transposes here are pure layout
# plumbing; prefer bart_encoder_layer_bld when the caller already has (B, L, D).
# ---------------------------------------------------------------------------
def bart_encoder_layer(x_lbd, params, n_heads, src_key_padding_mask=None, **kw):
    out = bart_encoder_layer_bld(jnp.transpose(x_lbd, (1, 0, 2)), params,
                                 n_heads, src_key_padding_mask, **kw)
    return jnp.transpose(out, (1, 0, 2))


# ---------------------------------------------------------------------------
# Deterministic parameter init (shapes from BartEncoderLayer.__init__)
# ---------------------------------------------------------------------------
def init_params(key, d_model, ffn_dim):
    ks = jax.random.split(key, 12)
    f = lambda k, shape: (jax.random.normal(k, shape, jnp.float32) * 0.02)
    return {
        # linear weights stored pre-transposed as (in_features, out_features)
        "wq": f(ks[0], (d_model, d_model)), "bq": f(ks[1], (1, d_model)),
        "wk": f(ks[2], (d_model, d_model)), "bk": f(ks[3], (1, d_model)),
        "wv": f(ks[4], (d_model, d_model)), "bv": f(ks[5], (1, d_model)),
        "wo": f(ks[6], (d_model, d_model)), "bo": f(ks[7], (1, d_model)),
        "wf1": f(ks[8], (d_model, ffn_dim)), "bf1": f(ks[9], (1, ffn_dim)),
        "wf2": f(ks[10], (ffn_dim, d_model)), "bf2": f(ks[11], (1, d_model)),
        "g1": jnp.ones((1, d_model), jnp.float32),
        "be1": jnp.zeros((1, d_model), jnp.float32),
        "g2": jnp.ones((1, d_model), jnp.float32),
        "be2": jnp.zeros((1, d_model), jnp.float32),
    }


# ---------------------------------------------------------------------------
# Pure-JAX f32 reference (mirrors the PyTorch forward, eval mode)
# ---------------------------------------------------------------------------
def reference(x_lbd, params, n_heads, src_key_padding_mask=None):
    L, B, D = x_lbd.shape
    hd = D // n_heads
    x = jnp.transpose(x_lbd, (1, 0, 2))                        # (B, L, D)
    q = x @ params["wq"] + params["bq"]
    k = x @ params["wk"] + params["bk"]
    v = x @ params["wv"] + params["bv"]
    q = q.reshape(B, L, n_heads, hd).transpose(0, 2, 1, 3)
    k = k.reshape(B, L, n_heads, hd).transpose(0, 2, 1, 3)
    v = v.reshape(B, L, n_heads, hd).transpose(0, 2, 1, 3)
    s = jnp.einsum("bhqd,bhkd->bhqk", q, k) / math.sqrt(hd)
    if src_key_padding_mask is not None:
        s = jnp.where(src_key_padding_mask[:, None, None, :], -jnp.inf, s)
    p = jax.nn.softmax(s, axis=-1)
    ctx = jnp.einsum("bhqk,bhkd->bhqd", p, v)
    ctx = ctx.transpose(0, 2, 1, 3).reshape(B, L, D)
    attn = ctx @ params["wo"] + params["bo"]

    def ln(y, g, b, eps=1e-5):
        m = jnp.mean(y, -1, keepdims=True)
        vr = jnp.mean((y - m) ** 2, -1, keepdims=True)
        return (y - m) / jnp.sqrt(vr + eps) * g + b

    h1 = ln(x + attn, params["g1"], params["be1"])
    ff = _gelu(h1 @ params["wf1"] + params["bf1"]) @ params["wf2"] + params["bf2"]
    h2 = ln(h1 + ff, params["g2"], params["be2"])
    return jnp.transpose(h2, (1, 0, 2))


if __name__ == "__main__":
    L, B, d_model, n_heads, ffn_dim = 8, 2, 32, 4, 64

    key = jax.random.PRNGKey(0)
    k_x, k_p = jax.random.split(key)
    x = jax.random.normal(k_x, (L, B, d_model), jnp.float32)    # (seq, batch, d_model)
    params = init_params(k_p, d_model, ffn_dim)

    # key_padding_mask: True = padded position. Pad last 2 keys of batch 1.
    pad_mask = jnp.zeros((B, L), jnp.bool_).at[1, -2:].set(True)

    out = bart_encoder_layer(x, params, n_heads, src_key_padding_mask=pad_mask)
    jax.block_until_ready(out)

    ref = reference(x, params, n_heads, src_key_padding_mask=pad_mask)
    assert out.shape == (L, B, d_model)
    # bf16 activations / matmul inputs (f32 accumulation) -> looser tolerance
    assert jnp.allclose(out, ref, rtol=2e-2, atol=2e-2), "mismatch vs JAX reference"

    print("KERNEL_OK")
</pallas_src>

<mosaic_0001>
module attributes {stable_mosaic.version = 11 : i64} {
  func.func @bart_encoder_layer_kernel(%arg0: i32, %arg1: memref<1x8x32xbf16, #tpu.memory_space<vmem>>, %arg2: memref<1x1x8xf32, #tpu.memory_space<vmem>>, %arg3: memref<32x32xbf16, #tpu.memory_space<vmem>>, %arg4: memref<1x32xf32, #tpu.memory_space<vmem>>, %arg5: memref<32x32xbf16, #tpu.memory_space<vmem>>, %arg6: memref<1x32xf32, #tpu.memory_space<vmem>>, %arg7: memref<32x32xbf16, #tpu.memory_space<vmem>>, %arg8: memref<1x32xf32, #tpu.memory_space<vmem>>, %arg9: memref<32x32xbf16, #tpu.memory_space<vmem>>, %arg10: memref<1x32xf32, #tpu.memory_space<vmem>>, %arg11: memref<1x32xf32, #tpu.memory_space<vmem>>, %arg12: memref<1x32xf32, #tpu.memory_space<vmem>>, %arg13: memref<32x64xbf16, #tpu.memory_space<vmem>>, %arg14: memref<1x64xf32, #tpu.memory_space<vmem>>, %arg15: memref<64x32xbf16, #tpu.memory_space<vmem>>, %arg16: memref<1x32xf32, #tpu.memory_space<vmem>>, %arg17: memref<1x32xf32, #tpu.memory_space<vmem>>, %arg18: memref<1x32xf32, #tpu.memory_space<vmem>>, %arg19: memref<1x8x32xf32, #tpu.memory_space<vmem>>, %arg20: memref<8x32xbf16, #tpu.memory_space<vmem>>) attributes {dimension_semantics = [#tpu.dimension_semantics<parallel>], iteration_bounds = array<i64: 2>, scalar_prefetch = 0 : i64, scratch_operands = 1 : i64, tpu.core_type = #tpu.core_type<tc>, window_params = [{transform_indices = @transform_0, window_bounds = array<i64: 1, 8, 32>}, {transform_indices = @transform_1, window_bounds = array<i64: 1, 1, 8>}, {pipeline_mode = #tpu.pipeline_mode<synchronous>, transform_indices = @transform_2, window_bounds = array<i64: 32, 32>}, {pipeline_mode = #tpu.pipeline_mode<synchronous>, transform_indices = @transform_3, window_bounds = array<i64: 1, 32>}, {pipeline_mode = #tpu.pipeline_mode<synchronous>, transform_indices = @transform_4, window_bounds = array<i64: 32, 32>}, {pipeline_mode = #tpu.pipeline_mode<synchronous>, transform_indices = @transform_5, window_bounds = array<i64: 1, 32>}, {pipeline_mode = #tpu.pipeline_mode<synchronous>, transform_indices = @transform_6, window_bounds = array<i64: 32, 32>}, {pipeline_mode = #tpu.pipeline_mode<synchronous>, transform_indices = @transform_7, window_bounds = array<i64: 1, 32>}, {pipeline_mode = #tpu.pipeline_mode<synchronous>, transform_indices = @transform_8, window_bounds = array<i64: 32, 32>}, {pipeline_mode = #tpu.pipeline_mode<synchronous>, transform_indices = @transform_9, window_bounds = array<i64: 1, 32>}, {pipeline_mode = #tpu.pipeline_mode<synchronous>, transform_indices = @transform_10, window_bounds = array<i64: 1, 32>}, {pipeline_mode = #tpu.pipeline_mode<synchronous>, transform_indices = @transform_11, window_bounds = array<i64: 1, 32>}, {pipeline_mode = #tpu.pipeline_mode<synchronous>, transform_indices = @transform_12, window_bounds = array<i64: 32, 64>}, {pipeline_mode = #tpu.pipeline_mode<synchronous>, transform_indices = @transform_13, window_bounds = array<i64: 1, 64>}, {pipeline_mode = #tpu.pipeline_mode<synchronous>, transform_indices = @transform_14, window_bounds = array<i64: 64, 32>}, {pipeline_mode = #tpu.pipeline_mode<synchronous>, transform_indices = @transform_15, window_bounds = array<i64: 1, 32>}, {pipeline_mode = #tpu.pipeline_mode<synchronous>, transform_indices = @transform_16, window_bounds = array<i64: 1, 32>}, {pipeline_mode = #tpu.pipeline_mode<synchronous>, transform_indices = @transform_17, window_bounds = array<i64: 1, 32>}, {transform_indices = @transform_18, window_bounds = array<i64: 1, 8, 32>}]} {
    %c0 = arith.constant 0 : index
    %c0_0 = arith.constant 0 : index
    %c0_1 = arith.constant 0 : index
    %0 = vector.load %arg1[%c0, %c0_0, %c0_1] : memref<1x8x32xbf16, #tpu.memory_space<vmem>>, vector<1x8x32xbf16>
    %1 = vector.shape_cast %0 : vector<1x8x32xbf16> to vector<8x32xbf16>
    %2 = arith.extf %1 : vector<8x32xbf16> to vector<8x32xf32>
    %c0_2 = arith.constant 0 : index
    %c0_3 = arith.constant 0 : index
    %c0_4 = arith.constant 0 : index
    %3 = vector.load %arg2[%c0_2, %c0_3, %c0_4] : memref<1x1x8xf32, #tpu.memory_space<vmem>>, vector<1x1x8xf32>
    %4 = vector.shape_cast %3 : vector<1x1x8xf32> to vector<1x8xf32>
    %c0_5 = arith.constant 0 : index
    %c0_6 = arith.constant 0 : index
    %5 = vector.load %arg3[%c0_5, %c0_6] : memref<32x32xbf16, #tpu.memory_space<vmem>>, vector<32x32xbf16>
    %cst = arith.constant dense<0.000000e+00> : vector<8x32xf32>
    %6 = tpu.matmul %1, %5, %cst {dimension_numbers = #tpu.dot_dimension_numbers<[1], [0], [0], [1], [0, 0, 1, 1], [], []>} : vector<8x32xbf16>, vector<32x32xbf16>, vector<8x32xf32> -> vector<8x32xf32>
    %c0_7 = arith.constant 0 : index
    %c0_8 = arith.constant 0 : index
    %7 = vector.load %arg4[%c0_7, %c0_8] : memref<1x32xf32, #tpu.memory_space<vmem>>, vector<1x32xf32>
    %8 = vector.broadcast %7 : vector<1x32xf32> to vector<8x32xf32>
    %9 = arith.addf %6, %8 : vector<8x32xf32>
    %cst_9 = arith.constant 0.353553385 : f32
    %10 = vector.broadcast %cst_9 : f32 to vector<8x32xf32>
    %11 = arith.mulf %9, %10 : vector<8x32xf32>
    %c0_10 = arith.constant 0 : index
    %c0_11 = arith.constant 0 : index
    %12 = vector.load %arg5[%c0_10, %c0_11] : memref<32x32xbf16, #tpu.memory_space<vmem>>, vector<32x32xbf16>
    %cst_12 = arith.constant dense<0.000000e+00> : vector<8x32xf32>
    %13 = tpu.matmul %1, %12, %cst_12 {dimension_numbers = #tpu.dot_dimension_numbers<[1], [0], [0], [1], [0, 0, 1, 1], [], []>} : vector<8x32xbf16>, vector<32x32xbf16>, vector<8x32xf32> -> vector<8x32xf32>
    %c0_13 = arith.constant 0 : index
    %c0_14 = arith.constant 0 : index
    %14 = vector.load %arg6[%c0_13, %c0_14] : memref<1x32xf32, #tpu.memory_space<vmem>>, vector<1x32xf32>
    %15 = vector.broadcast %14 : vector<1x32xf32> to vector<8x32xf32>
    %16 = arith.addf %13, %15 : vector<8x32xf32>
    %c0_15 = arith.constant 0 : index
    %c0_16 = arith.constant 0 : index
    %17 = vector.load %arg7[%c0_15, %c0_16] : memref<32x32xbf16, #tpu.memory_space<vmem>>, vector<32x32xbf16>
    %cst_17 = arith.constant dense<0.000000e+00> : vector<8x32xf32>
    %18 = tpu.matmul %1, %17, %cst_17 {dimension_numbers = #tpu.dot_dimension_numbers<[1], [0], [0], [1], [0, 0, 1, 1], [], []>} : vector<8x32xbf16>, vector<32x32xbf16>, vector<8x32xf32> -> vector<8x32xf32>
    %c0_18 = arith.constant 0 : index
    %c0_19 = arith.constant 0 : index
    %19 = vector.load %arg8[%c0_18, %c0_19] : memref<1x32xf32, #tpu.memory_space<vmem>>, vector<1x32xf32>
    %20 = vector.broadcast %19 : vector<1x32xf32> to vector<8x32xf32>
    %21 = arith.addf %18, %20 : vector<8x32xf32>
    %22 = arith.truncf %11 : vector<8x32xf32> to vector<8x32xbf16>
    %23 = arith.truncf %16 : vector<8x32xf32> to vector<8x32xbf16>
    %24 = arith.truncf %21 : vector<8x32xf32> to vector<8x32xbf16>
    %25 = vector.extract_strided_slice %22 {offsets = [0, 0], sizes = [8, 8], strides = [1, 1]} : vector<8x32xbf16> to vector<8x8xbf16>
    %26 = vector.extract_strided_slice %23 {offsets = [0, 0], sizes = [8, 8], strides = [1, 1]} : vector<8x32xbf16> to vector<8x8xbf16>
    %cst_20 = arith.constant dense<0.000000e+00> : vector<8x8xf32>
    %27 = tpu.matmul %25, %26, %cst_20 {dimension_numbers = #tpu.dot_dimension_numbers<[1], [1], [0], [0], [0, 0, 1, 0], [], []>} : vector<8x8xbf16>, vector<8x8xbf16>, vector<8x8xf32> -> vector<8x8xf32>
    %28 = vector.broadcast %4 : vector<1x8xf32> to vector<8x8xf32>
    %29 = arith.addf %27, %28 : vector<8x8xf32>
    %cst_21 = arith.constant dense<0xFF800000> : vector<8xf32>
    %30 = vector.multi_reduction <maximumf>, %29, %cst_21 [1] : vector<8x8xf32> to vector<8xf32>
    %31 = vector.shape_cast %30 : vector<8xf32> to vector<8x1xf32>
    %32 = vector.broadcast %31 : vector<8x1xf32> to vector<8x8xf32>
    %33 = arith.subf %29, %32 : vector<8x8xf32>
    %34 = math.exp %33 : vector<8x8xf32>
    %cst_22 = arith.constant dense<0.000000e+00> : vector<8xf32>
    %35 = vector.multi_reduction <add>, %34, %cst_22 [1] : vector<8x8xf32> to vector<8xf32>
    %36 = vector.shape_cast %35 : vector<8xf32> to vector<8x1xf32>
    %37 = tpu.reciprocal %36 {approx = true} : vector<8x1xf32> -> vector<8x1xf32>
    %38 = vector.broadcast %37 : vector<8x1xf32> to vector<8x8xf32>
    %39 = arith.mulf %34, %38 : vector<8x8xf32>
    %40 = arith.truncf %39 : vector<8x8xf32> to vector<8x8xbf16>
    %41 = vector.extract_strided_slice %24 {offsets = [0, 0], sizes = [8, 8], strides = [1, 1]} : vector<8x32xbf16> to vector<8x8xbf16>
    %cst_23 = arith.constant dense<0.000000e+00> : vector<8x8xf32>
    %42 = tpu.matmul %40, %41, %cst_23 {dimension_numbers = #tpu.dot_dimension_numbers<[1], [0], [0], [1], [0, 0, 1, 1], [], []>} : vector<8x8xbf16>, vector<8x8xbf16>, vector<8x8xf32> -> vector<8x8xf32>
    %43 = vector.extract_strided_slice %22 {offsets = [0, 8], sizes = [8, 8], strides = [1, 1]} : vector<8x32xbf16> to vector<8x8xbf16>
    %44 = vector.extract_strided_slice %23 {offsets = [0, 8], sizes = [8, 8], strides = [1, 1]} : vector<8x32xbf16> to vector<8x8xbf16>
    %cst_24 = arith.constant dense<0.000000e+00> : vector<8x8xf32>
    %45 = tpu.matmul %43, %44, %cst_24 {dimension_numbers = #tpu.dot_dimension_numbers<[1], [1], [0], [0], [0, 0, 1, 0], [], []>} : vector<8x8xbf16>, vector<8x8xbf16>, vector<8x8xf32> -> vector<8x8xf32>
    %46 = vector.broadcast %4 : vector<1x8xf32> to vector<8x8xf32>
    %47 = arith.addf %45, %46 : vector<8x8xf32>
    %cst_25 = arith.constant dense<0xFF800000> : vector<8xf32>
    %48 = vector.multi_reduction <maximumf>, %47, %cst_25 [1] : vector<8x8xf32> to vector<8xf32>
    %49 = vector.shape_cast %48 : vector<8xf32> to vector<8x1xf32>
    %50 = vector.broadcast %49 : vector<8x1xf32> to vector<8x8xf32>
    %51 = arith.subf %47, %50 : vector<8x8xf32>
    %52 = math.exp %51 : vector<8x8xf32>
    %cst_26 = arith.constant dense<0.000000e+00> : vector<8xf32>
    %53 = vector.multi_reduction <add>, %52, %cst_26 [1] : vector<8x8xf32> to vector<8xf32>
    %54 = vector.shape_cast %53 : vector<8xf32> to vector<8x1xf32>
    %55 = tpu.reciprocal %54 {approx = true} : vector<8x1xf32> -> vector<8x1xf32>
    %56 = vector.broadcast %55 : vector<8x1xf32> to vector<8x8xf32>
    %57 = arith.mulf %52, %56 : vector<8x8xf32>
    %58 = arith.truncf %57 : vector<8x8xf32> to vector<8x8xbf16>
    %59 = vector.extract_strided_slice %24 {offsets = [0, 8], sizes = [8, 8], strides = [1, 1]} : vector<8x32xbf16> to vector<8x8xbf16>
    %cst_27 = arith.constant dense<0.000000e+00> : vector<8x8xf32>
    %60 = tpu.matmul %58, %59, %cst_27 {dimension_numbers = #tpu.dot_dimension_numbers<[1], [0], [0], [1], [0, 0, 1, 1], [], []>} : vector<8x8xbf16>, vector<8x8xbf16>, vector<8x8xf32> -> vector<8x8xf32>
    %61 = vector.extract_strided_slice %22 {offsets = [0, 16], sizes = [8, 8], strides = [1, 1]} : vector<8x32xbf16> to vector<8x8xbf16>
    %62 = vector.extract_strided_slice %23 {offsets = [0, 16], sizes = [8, 8], strides = [1, 1]} : vector<8x32xbf16> to vector<8x8xbf16>
    %cst_28 = arith.constant dense<0.000000e+00> : vector<8x8xf32>
    %63 = tpu.matmul %61, %62, %cst_28 {dimension_numbers = #tpu.dot_dimension_numbers<[1], [1], [0], [0], [0, 0, 1, 0], [], []>} : vector<8x8xbf16>, vector<8x8xbf16>, vector<8x8xf32> -> vector<8x8xf32>
    %64 = vector.broadcast %4 : vector<1x8xf32> to vector<8x8xf32>
    %65 = arith.addf %63, %64 : vector<8x8xf32>
    %cst_29 = arith.constant dense<0xFF800000> : vector<8xf32>
    %66 = vector.multi_reduction <maximumf>, %65, %cst_29 [1] : vector<8x8xf32> to vector<8xf32>
    %67 = vector.shape_cast %66 : vector<8xf32> to vector<8x1xf32>
    %68 = vector.broadcast %67 : vector<8x1xf32> to vector<8x8xf32>
    %69 = arith.subf %65, %68 : vector<8x8xf32>
    %70 = math.exp %69 : vector<8x8xf32>
    %cst_30 = arith.constant dense<0.000000e+00> : vector<8xf32>
    %71 = vector.multi_reduction <add>, %70, %cst_30 [1] : vector<8x8xf32> to vector<8xf32>
    %72 = vector.shape_cast %71 : vector<8xf32> to vector<8x1xf32>
    %73 = tpu.reciprocal %72 {approx = true} : vector<8x1xf32> -> vector<8x1xf32>
    %74 = vector.broadcast %73 : vector<8x1xf32> to vector<8x8xf32>
    %75 = arith.mulf %70, %74 : vector<8x8xf32>
    %76 = arith.truncf %75 : vector<8x8xf32> to vector<8x8xbf16>
    %77 = vector.extract_strided_slice %24 {offsets = [0, 16], sizes = [8, 8], strides = [1, 1]} : vector<8x32xbf16> to vector<8x8xbf16>
    %cst_31 = arith.constant dense<0.000000e+00> : vector<8x8xf32>
    %78 = tpu.matmul %76, %77, %cst_31 {dimension_numbers = #tpu.dot_dimension_numbers<[1], [0], [0], [1], [0, 0, 1, 1], [], []>} : vector<8x8xbf16>, vector<8x8xbf16>, vector<8x8xf32> -> vector<8x8xf32>
    %79 = vector.extract_strided_slice %22 {offsets = [0, 24], sizes = [8, 8], strides = [1, 1]} : vector<8x32xbf16> to vector<8x8xbf16>
    %80 = vector.extract_strided_slice %23 {offsets = [0, 24], sizes = [8, 8], strides = [1, 1]} : vector<8x32xbf16> to vector<8x8xbf16>
    %cst_32 = arith.constant dense<0.000000e+00> : vector<8x8xf32>
    %81 = tpu.matmul %79, %80, %cst_32 {dimension_numbers = #tpu.dot_dimension_numbers<[1], [1], [0], [0], [0, 0, 1, 0], [], []>} : vector<8x8xbf16>, vector<8x8xbf16>, vector<8x8xf32> -> vector<8x8xf32>
    %82 = vector.broadcast %4 : vector<1x8xf32> to vector<8x8xf32>
    %83 = arith.addf %81, %82 : vector<8x8xf32>
    %cst_33 = arith.constant dense<0xFF800000> : vector<8xf32>
    %84 = vector.multi_reduction <maximumf>, %83, %cst_33 [1] : vector<8x8xf32> to vector<8xf32>
    %85 = vector.shape_cast %84 : vector<8xf32> to vector<8x1xf32>
    %86 = vector.broadcast %85 : vector<8x1xf32> to vector<8x8xf32>
    %87 = arith.subf %83, %86 : vector<8x8xf32>
    %88 = math.exp %87 : vector<8x8xf32>
    %cst_34 = arith.constant dense<0.000000e+00> : vector<8xf32>
    %89 = vector.multi_reduction <add>, %88, %cst_34 [1] : vector<8x8xf32> to vector<8xf32>
    %90 = vector.shape_cast %89 : vector<8xf32> to vector<8x1xf32>
    %91 = tpu.reciprocal %90 {approx = true} : vector<8x1xf32> -> vector<8x1xf32>
    %92 = vector.broadcast %91 : vector<8x1xf32> to vector<8x8xf32>
    %93 = arith.mulf %88, %92 : vector<8x8xf32>
    %94 = arith.truncf %93 : vector<8x8xf32> to vector<8x8xbf16>
    %95 = vector.extract_strided_slice %24 {offsets = [0, 24], sizes = [8, 8], strides = [1, 1]} : vector<8x32xbf16> to vector<8x8xbf16>
    %cst_35 = arith.constant dense<0.000000e+00> : vector<8x8xf32>
    %96 = tpu.matmul %94, %95, %cst_35 {dimension_numbers = #tpu.dot_dimension_numbers<[1], [0], [0], [1], [0, 0, 1, 1], [], []>} : vector<8x8xbf16>, vector<8x8xbf16>, vector<8x8xf32> -> vector<8x8xf32>
    %97 = tpu.concatenate %42, %60, %78, %96 in 1 : vector<8x8xf32>, vector<8x8xf32>, vector<8x8xf32>, vector<8x8xf32> -> vector<8x32xf32>
    %98 = arith.truncf %97 : vector<8x32xf32> to vector<8x32xbf16>
    %c0_36 = arith.constant 0 : index
    %c0_37 = arith.constant 0 : index
    %99 = vector.load %arg20[%c0_36, %c0_37] : memref<8x32xbf16, #tpu.memory_space<vmem>>, vector<8x32xbf16>
    tpu.vector_store %arg20[%c0_36, %c0_37], %98 {strides = array<i32>} : memref<8x32xbf16, #tpu.memory_space<vmem>>, vector<8x32xbf16>,
    %c0_38 = arith.constant 0 : index
    %c0_39 = arith.constant 0 : index
    %100 = vector.load %arg20[%c0_38, %c0_39] : memref<8x32xbf16, #tpu.memory_space<vmem>>, vector<8x32xbf16>
    %c0_40 = arith.constant 0 : index
    %c0_41 = arith.constant 0 : index
    %101 = vector.load %arg9[%c0_40, %c0_41] : memref<32x32xbf16, #tpu.memory_space<vmem>>, vector<32x32xbf16>
    %cst_42 = arith.constant dense<0.000000e+00> : vector<8x32xf32>
    %102 = tpu.matmul %100, %101, %cst_42 {dimension_numbers = #tpu.dot_dimension_numbers<[1], [0], [0], [1], [0, 0, 1, 1], [], []>} : vector<8x32xbf16>, vector<32x32xbf16>, vector<8x32xf32> -> vector<8x32xf32>
    %c0_43 = arith.constant 0 : index
    %c0_44 = arith.constant 0 : index
    %103 = vector.load %arg10[%c0_43, %c0_44] : memref<1x32xf32, #tpu.memory_space<vmem>>, vector<1x32xf32>
    %104 = vector.broadcast %103 : vector<1x32xf32> to vector<8x32xf32>
    %105 = arith.addf %102, %104 : vector<8x32xf32>
    %106 = arith.addf %2, %105 : vector<8x32xf32>
    %c0_45 = arith.constant 0 : index
    %c0_46 = arith.constant 0 : index
    %107 = vector.load %arg11[%c0_45, %c0_46] : memref<1x32xf32, #tpu.memory_space<vmem>>, vector<1x32xf32>
    %c0_47 = arith.constant 0 : index
    %c0_48 = arith.constant 0 : index
    %108 = vector.load %arg12[%c0_47, %c0_48] : memref<1x32xf32, #tpu.memory_space<vmem>>, vector<1x32xf32>
    %cst_49 = arith.constant dense<0.000000e+00> : vector<8xf32>
    %109 = vector.multi_reduction <add>, %106, %cst_49 [1] : vector<8x32xf32> to vector<8xf32>
    %110 = vector.shape_cast %109 : vector<8xf32> to vector<8x1xf32>
    %cst_50 = arith.constant 3.200000e+01 : f32
    %111 = vector.broadcast %cst_50 : f32 to vector<8x1xf32>
    %112 = arith.divf %110, %111 : vector<8x1xf32>
    %113 = vector.broadcast %112 : vector<8x1xf32> to vector<8x32xf32>
    %114 = arith.subf %106, %113 : vector<8x32xf32>
    %115 = arith.mulf %114, %114 : vector<8x32xf32>
    %cst_51 = arith.constant dense<0.000000e+00> : vector<8xf32>
    %116 = vector.multi_reduction <add>, %115, %cst_51 [1] : vector<8x32xf32> to vector<8xf32>
    %117 = vector.shape_cast %116 : vector<8xf32> to vector<8x1xf32>
    %cst_52 = arith.constant 3.200000e+01 : f32
    %118 = vector.broadcast %cst_52 : f32 to vector<8x1xf32>
    %119 = arith.divf %117, %118 : vector<8x1xf32>
    %120 = vector.broadcast %112 : vector<8x1xf32> to vector<8x32xf32>
    %121 = arith.subf %106, %120 : vector<8x32xf32>
    %cst_53 = arith.constant 9.99999974E-6 : f32
    %122 = vector.broadcast %cst_53 : f32 to vector<8x1xf32>
    %123 = arith.addf %119, %122 : vector<8x1xf32>
    %124 = math.rsqrt %123 : vector<8x1xf32>
    %125 = vector.broadcast %124 : vector<8x1xf32> to vector<8x32xf32>
    %126 = arith.mulf %121, %125 : vector<8x32xf32>
    %127 = vector.broadcast %107 : vector<1x32xf32> to vector<8x32xf32>
    %128 = arith.mulf %126, %127 : vector<8x32xf32>
    %129 = vector.broadcast %108 : vector<1x32xf32> to vector<8x32xf32>
    %130 = arith.addf %128, %129 : vector<8x32xf32>
    %131 = arith.truncf %130 : vector<8x32xf32> to vector<8x32xbf16>
    %cst_54 = arith.constant 0.000000e+00 : f32
    %132 = vector.broadcast %cst_54 : f32 to vector<8x32xf32>
    %c0_55 = arith.constant 0 : index
    %c0_56 = arith.constant 0 : index
    %133 = vector.load %arg13[%c0_55, %c0_56] : memref<32x64xbf16, #tpu.memory_space<vmem>>, vector<32x64xbf16>
    %cst_57 = arith.constant dense<0.000000e+00> : vector<8x64xf32>
    %134 = tpu.matmul %131, %133, %cst_57 {dimension_numbers = #tpu.dot_dimension_numbers<[1], [0], [0], [1], [0, 0, 1, 1], [], []>} : vector<8x32xbf16>, vector<32x64xbf16>, vector<8x64xf32> -> vector<8x64xf32>
    %c0_58 = arith.constant 0 : index
    %c0_59 = arith.constant 0 : index
    %135 = vector.load %arg14[%c0_58, %c0_59] : memref<1x64xf32, #tpu.memory_space<vmem>>, vector<1x64xf32>
    %136 = vector.broadcast %135 : vector<1x64xf32> to vector<8x64xf32>
    %137 = arith.addf %134, %136 : vector<8x64xf32>
    %cst_60 = arith.constant 5.000000e-01 : f32
    %138 = vector.broadcast %cst_60 : f32 to vector<8x64xf32>
    %139 = arith.mulf %137, %138 : vector<8x64xf32>
    %cst_61 = arith.constant 1.41421354 : f32
    %140 = vector.broadcast %cst_61 : f32 to vector<8x64xf32>
    %141 = arith.divf %137, %140 : vector<8x64xf32>
    %142 = math.erf %141 : vector<8x64xf32>
    %cst_62 = arith.constant 1.000000e+00 : f32
    %143 = vector.broadcast %cst_62 : f32 to vector<8x64xf32>
    %144 = arith.addf %143, %142 : vector<8x64xf32>
    %145 = arith.mulf %139, %144 : vector<8x64xf32>
    %146 = arith.truncf %145 : vector<8x64xf32> to vector<8x64xbf16>
    %c0_63 = arith.constant 0 : index
    %c0_64 = arith.constant 0 : index
    %147 = vector.load %arg15[%c0_63, %c0_64] : memref<64x32xbf16, #tpu.memory_space<vmem>>, vector<64x32xbf16>
    %cst_65 = arith.constant dense<0.000000e+00> : vector<8x32xf32>
    %148 = tpu.matmul %146, %147, %cst_65 {dimension_numbers = #tpu.dot_dimension_numbers<[1], [0], [0], [1], [0, 0, 1, 1], [], []>} : vector<8x64xbf16>, vector<64x32xbf16>, vector<8x32xf32> -> vector<8x32xf32>
    %149 = arith.addf %132, %148 : vector<8x32xf32>
    %c0_66 = arith.constant 0 : index
    %c0_67 = arith.constant 0 : index
    %150 = vector.load %arg16[%c0_66, %c0_67] : memref<1x32xf32, #tpu.memory_space<vmem>>, vector<1x32xf32>
    %151 = vector.broadcast %150 : vector<1x32xf32> to vector<8x32xf32>
    %152 = arith.addf %149, %151 : vector<8x32xf32>
    %153 = arith.addf %130, %152 : vector<8x32xf32>
    %c0_68 = arith.constant 0 : index
    %c0_69 = arith.constant 0 : index
    %154 = vector.load %arg17[%c0_68, %c0_69] : memref<1x32xf32, #tpu.memory_space<vmem>>, vector<1x32xf32>
    %c0_70 = arith.constant 0 : index
    %c0_71 = arith.constant 0 : index
    %155 = vector.load %arg18[%c0_70, %c0_71] : memref<1x32xf32, #tpu.memory_space<vmem>>, vector<1x32xf32>
    %cst_72 = arith.constant dense<0.000000e+00> : vector<8xf32>
    %156 = vector.multi_reduction <add>, %153, %cst_72 [1] : vector<8x32xf32> to vector<8xf32>
    %157 = vector.shape_cast %156 : vector<8xf32> to vector<8x1xf32>
    %cst_73 = arith.constant 3.200000e+01 : f32
    %158 = vector.broadcast %cst_73 : f32 to vector<8x1xf32>
    %159 = arith.divf %157, %158 : vector<8x1xf32>
    %160 = vector.broadcast %159 : vector<8x1xf32> to vector<8x32xf32>
    %161 = arith.subf %153, %160 : vector<8x32xf32>
    %162 = arith.mulf %161, %161 : vector<8x32xf32>
    %cst_74 = arith.constant dense<0.000000e+00> : vector<8xf32>
    %163 = vector.multi_reduction <add>, %162, %cst_74 [1] : vector<8x32xf32> to vector<8xf32>
    %164 = vector.shape_cast %163 : vector<8xf32> to vector<8x1xf32>
    %cst_75 = arith.constant 3.200000e+01 : f32
    %165 = vector.broadcast %cst_75 : f32 to vector<8x1xf32>
    %166 = arith.divf %164, %165 : vector<8x1xf32>
    %167 = vector.broadcast %159 : vector<8x1xf32> to vector<8x32xf32>
    %168 = arith.subf %153, %167 : vector<8x32xf32>
    %cst_76 = arith.constant 9.99999974E-6 : f32
    %169 = vector.broadcast %cst_76 : f32 to vector<8x1xf32>
    %170 = arith.addf %166, %169 : vector<8x1xf32>
    %171 = math.rsqrt %170 : vector<8x1xf32>
    %172 = vector.broadcast %171 : vector<8x1xf32> to vector<8x32xf32>
    %173 = arith.mulf %168, %172 : vector<8x32xf32>
    %174 = vector.broadcast %154 : vector<1x32xf32> to vector<8x32xf32>
    %175 = arith.mulf %173, %174 : vector<8x32xf32>
    %176 = vector.broadcast %155 : vector<1x32xf32> to vector<8x32xf32>
    %177 = arith.addf %175, %176 : vector<8x32xf32>
    %c0_77 = arith.constant 0 : index
    %c0_78 = arith.constant 0 : index
    %c0_79 = arith.constant 0 : index
    %178 = vector.load %arg19[%c0_77, %c0_78, %c0_79] : memref<1x8x32xf32, #tpu.memory_space<vmem>>, vector<1x8x32xf32>
    %179 = vector.shape_cast %178 : vector<1x8x32xf32> to vector<8x32xf32>
    %180 = vector.shape_cast %177 : vector<8x32xf32> to vector<1x8x32xf32>
    tpu.vector_store %arg19[%c0_77, %c0_78, %c0_79], %180 {strides = array<i32>} : memref<1x8x32xf32, #tpu.memory_space<vmem>>, vector<1x8x32xf32>,
    return
  }
  func.func @transform_0(%arg0: i32) -> (i32, i32, i32) {
    %c0_i32 = arith.constant 0 : i32
    %c0_i32_0 = arith.constant 0 : i32
    %c0_i32_1 = arith.constant 0 : i32
    return %arg0, %c0_i32, %c0_i32_0 : i32, i32, i32
  }
  func.func @transform_1(%arg0: i32) -> (i32, i32, i32) {
    %c0_i32 = arith.constant 0 : i32
    %c0_i32_0 = arith.constant 0 : i32
    %c0_i32_1 = arith.constant 0 : i32
    return %arg0, %c0_i32, %c0_i32_0 : i32, i32, i32
  }
  func.func @transform_2(%arg0: i32) -> (i32, i32) {
    %c0_i32 = arith.constant 0 : i32
    %c0_i32_0 = arith.constant 0 : i32
    %c0_i32_1 = arith.constant 0 : i32
    return %c0_i32, %c0_i32_0 : i32, i32
  }
  func.func @transform_3(%arg0: i32) -> (i32, i32) {
    %c0_i32 = arith.constant 0 : i32
    %c0_i32_0 = arith.constant 0 : i32
    %c0_i32_1 = arith.constant 0 : i32
    return %c0_i32, %c0_i32_0 : i32, i32
  }
  func.func @transform_4(%arg0: i32) -> (i32, i32) {
    %c0_i32 = arith.constant 0 : i32
    %c0_i32_0 = arith.constant 0 : i32
    %c0_i32_1 = arith.constant 0 : i32
    return %c0_i32, %c0_i32_0 : i32, i32
  }
  func.func @transform_5(%arg0: i32) -> (i32, i32) {
    %c0_i32 = arith.constant 0 : i32
    %c0_i32_0 = arith.constant 0 : i32
    %c0_i32_1 = arith.constant 0 : i32
    return %c0_i32, %c0_i32_0 : i32, i32
  }
  func.func @transform_6(%arg0: i32) -> (i32, i32) {
    %c0_i32 = arith.constant 0 : i32
    %c0_i32_0 = arith.constant 0 : i32
    %c0_i32_1 = arith.constant 0 : i32
    return %c0_i32, %c0_i32_0 : i32, i32
  }
  func.func @transform_7(%arg0: i32) -> (i32, i32) {
    %c0_i32 = arith.constant 0 : i32
    %c0_i32_0 = arith.constant 0 : i32
    %c0_i32_1 = arith.constant 0 : i32
    return %c0_i32, %c0_i32_0 : i32, i32
  }
  func.func @transform_8(%arg0: i32) -> (i32, i32) {
    %c0_i32 = arith.constant 0 : i32
    %c0_i32_0 = arith.constant 0 : i32
    %c0_i32_1 = arith.constant 0 : i32
    return %c0_i32, %c0_i32_0 : i32, i32
  }
  func.func @transform_9(%arg0: i32) -> (i32, i32) {
    %c0_i32 = arith.constant 0 : i32
    %c0_i32_0 = arith.constant 0 : i32
    %c0_i32_1 = arith.constant 0 : i32
    return %c0_i32, %c0_i32_0 : i32, i32
  }
  func.func @transform_10(%arg0: i32) -> (i32, i32) {
    %c0_i32 = arith.constant 0 : i32
    %c0_i32_0 = arith.constant 0 : i32
    %c0_i32_1 = arith.constant 0 : i32
    return %c0_i32, %c0_i32_0 : i32, i32
  }
  func.func @transform_11(%arg0: i32) -> (i32, i32) {
    %c0_i32 = arith.constant 0 : i32
    %c0_i32_0 = arith.constant 0 : i32
    %c0_i32_1 = arith.constant 0 : i32
    return %c0_i32, %c0_i32_0 : i32, i32
  }
  func.func @transform_12(%arg0: i32) -> (i32, i32) {
    %c0_i32 = arith.constant 0 : i32
    %c0_i32_0 = arith.constant 0 : i32
    %c0_i32_1 = arith.constant 0 : i32
    return %c0_i32, %c0_i32_0 : i32, i32
  }
  func.func @transform_13(%arg0: i32) -> (i32, i32) {
    %c0_i32 = arith.constant 0 : i32
    %c0_i32_0 = arith.constant 0 : i32
    %c0_i32_1 = arith.constant 0 : i32
    return %c0_i32, %c0_i32_0 : i32, i32
  }
  func.func @transform_14(%arg0: i32) -> (i32, i32) {
    %c0_i32 = arith.constant 0 : i32
    %c0_i32_0 = arith.constant 0 : i32
    %c0_i32_1 = arith.constant 0 : i32
    return %c0_i32, %c0_i32_0 : i32, i32
  }
  func.func @transform_15(%arg0: i32) -> (i32, i32) {
    %c0_i32 = arith.constant 0 : i32
    %c0_i32_0 = arith.constant 0 : i32
    %c0_i32_1 = arith.constant 0 : i32
    return %c0_i32, %c0_i32_0 : i32, i32
  }
  func.func @transform_16(%arg0: i32) -> (i32, i32) {
    %c0_i32 = arith.constant 0 : i32
    %c0_i32_0 = arith.constant 0 : i32
    %c0_i32_1 = arith.constant 0 : i32
    return %c0_i32, %c0_i32_0 : i32, i32
  }
  func.func @transform_17(%arg0: i32) -> (i32, i32) {
    %c0_i32 = arith.constant 0 : i32
    %c0_i32_0 = arith.constant 0 : i32
    %c0_i32_1 = arith.constant 0 : i32
    return %c0_i32, %c0_i32_0 : i32, i32
  }
  func.func @transform_18(%arg0: i32) -> (i32, i32, i32) {
    %c0_i32 = arith.constant 0 : i32
    %c0_i32_0 = arith.constant 0 : i32
    %c0_i32_1 = arith.constant 0 : i32
    return %arg0, %c0_i32, %c0_i32_0 : i32, i32, i32
  }
}

module attributes {stable_mosaic.version = 11 : i64} {
  func.func @bart_encoder_layer_kernel(%arg0: i32, %arg1: memref<1x8x32xbf16, #tpu.memory_space<vmem>>, %arg2: memref<1x1x8xf32, #tpu.memory_space<vmem>>, %arg3: memref<32x32xbf16, #tpu.memory_space<vmem>>, %arg4: memref<1x32xf32, #tpu.memory_space<vmem>>, %arg5: memref<32x32xbf16, #tpu.memory_space<vmem>>, %arg6: memref<1x32xf32, #tpu.memory_space<vmem>>, %arg7: memref<32x32xbf16, #tpu.memory_space<vmem>>, %arg8: memref<1x32xf32, #tpu.memory_space<vmem>>, %arg9: memref<32x32xbf16, #tpu.memory_space<vmem>>, %arg10: memref<1x32xf32, #tpu.memory_space<vmem>>, %arg11: memref<1x32xf32, #tpu.memory_space<vmem>>, %arg12: memref<1x32xf32, #tpu.memory_space<vmem>>, %arg13: memref<32x64xbf16, #tpu.memory_space<vmem>>, %arg14: memref<1x64xf32, #tpu.memory_space<vmem>>, %arg15: memref<64x32xbf16, #tpu.memory_space<vmem>>, %arg16: memref<1x32xf32, #tpu.memory_space<vmem>>, %arg17: memref<1x32xf32, #tpu.memory_space<vmem>>, %arg18: memref<1x32xf32, #tpu.memory_space<vmem>>, %arg19: memref<1x8x32xf32, #tpu.memory_space<vmem>>, %arg20: memref<8x32xbf16, #tpu.memory_space<vmem>>) attributes {dimension_semantics = [#tpu.dimension_semantics<parallel>], iteration_bounds = array<i64: 2>, scalar_prefetch = 0 : i64, scratch_operands = 1 : i64, tpu.core_type = #tpu.core_type<tc>, window_params = [{transform_indices = @transform_0, window_bounds = array<i64: 1, 8, 32>}, {transform_indices = @transform_1, window_bounds = array<i64: 1, 1, 8>}, {pipeline_mode = #tpu.pipeline_mode<synchronous>, transform_indices = @transform_2, window_bounds = array<i64: 32, 32>}, {pipeline_mode = #tpu.pipeline_mode<synchronous>, transform_indices = @transform_3, window_bounds = array<i64: 1, 32>}, {pipeline_mode = #tpu.pipeline_mode<synchronous>, transform_indices = @transform_4, window_bounds = array<i64: 32, 32>}, {pipeline_mode = #tpu.pipeline_mode<synchronous>, transform_indices = @transform_5, window_bounds = array<i64: 1, 32>}, {pipeline_mode = #tpu.pipeline_mode<synchronous>, transform_indices = @transform_6, window_bounds = array<i64: 32, 32>}, {pipeline_mode = #tpu.pipeline_mode<synchronous>, transform_indices = @transform_7, window_bounds = array<i64: 1, 32>}, {pipeline_mode = #tpu.pipeline_mode<synchronous>, transform_indices = @transform_8, window_bounds = array<i64: 32, 32>}, {pipeline_mode = #tpu.pipeline_mode<synchronous>, transform_indices = @transform_9, window_bounds = array<i64: 1, 32>}, {pipeline_mode = #tpu.pipeline_mode<synchronous>, transform_indices = @transform_10, window_bounds = array<i64: 1, 32>}, {pipeline_mode = #tpu.pipeline_mode<synchronous>, transform_indices = @transform_11, window_bounds = array<i64: 1, 32>}, {pipeline_mode = #tpu.pipeline_mode<synchronous>, transform_indices = @transform_12, window_bounds = array<i64: 32, 64>}, {pipeline_mode = #tpu.pipeline_mode<synchronous>, transform_indices = @transform_13, window_bounds = array<i64: 1, 64>}, {pipeline_mode = #tpu.pipeline_mode<synchronous>, transform_indices = @transform_14, window_bounds = array<i64: 64, 32>}, {pipeline_mode = #tpu.pipeline_mode<synchronous>, transform_indices = @transform_15, window_bounds = array<i64: 1, 32>}, {pipeline_mode = #tpu.pipeline_mode<synchronous>, transform_indices = @transform_16, window_bounds = array<i64: 1, 32>}, {pipeline_mode = #tpu.pipeline_mode<synchronous>, transform_indices = @transform_17, window_bounds = array<i64: 1, 32>}, {transform_indices = @transform_18, window_bounds = array<i64: 1, 8, 32>}]} {
    %c0 = arith.constant 0 : index
    %c0_0 = arith.constant 0 : index
    %c0_1 = arith.constant 0 : index
    %0 = vector.load %arg1[%c0, %c0_0, %c0_1] : memref<1x8x32xbf16, #tpu.memory_space<vmem>>, vector<1x8x32xbf16>
    %1 = vector.shape_cast %0 : vector<1x8x32xbf16> to vector<8x32xbf16>
    %2 = arith.extf %1 : vector<8x32xbf16> to vector<8x32xf32>
    %c0_2 = arith.constant 0 : index
    %c0_3 = arith.constant 0 : index
    %c0_4 = arith.constant 0 : index
    %3 = vector.load %arg2[%c0_2, %c0_3, %c0_4] : memref<1x1x8xf32, #tpu.memory_space<vmem>>, vector<1x1x8xf32>
    %4 = vector.shape_cast %3 : vector<1x1x8xf32> to vector<1x8xf32>
    %c0_5 = arith.constant 0 : index
    %c0_6 = arith.constant 0 : index
    %5 = vector.load %arg3[%c0_5, %c0_6] : memref<32x32xbf16, #tpu.memory_space<vmem>>, vector<32x32xbf16>
    %cst = arith.constant dense<0.000000e+00> : vector<8x32xf32>
    %6 = tpu.matmul %1, %5, %cst {dimension_numbers = #tpu.dot_dimension_numbers<[1], [0], [0], [1], [0, 0, 1, 1], [], []>} : vector<8x32xbf16>, vector<32x32xbf16>, vector<8x32xf32> -> vector<8x32xf32>
    %c0_7 = arith.constant 0 : index
    %c0_8 = arith.constant 0 : index
    %7 = vector.load %arg4[%c0_7, %c0_8] : memref<1x32xf32, #tpu.memory_space<vmem>>, vector<1x32xf32>
    %8 = vector.broadcast %7 : vector<1x32xf32> to vector<8x32xf32>
    %9 = arith.addf %6, %8 : vector<8x32xf32>
    %cst_9 = arith.constant 0.353553385 : f32
    %10 = vector.broadcast %cst_9 : f32 to vector<8x32xf32>
    %11 = arith.mulf %9, %10 : vector<8x32xf32>
    %c0_10 = arith.constant 0 : index
    %c0_11 = arith.constant 0 : index
    %12 = vector.load %arg5[%c0_10, %c0_11] : memref<32x32xbf16, #tpu.memory_space<vmem>>, vector<32x32xbf16>
    %cst_12 = arith.constant dense<0.000000e+00> : vector<8x32xf32>
    %13 = tpu.matmul %1, %12, %cst_12 {dimension_numbers = #tpu.dot_dimension_numbers<[1], [0], [0], [1], [0, 0, 1, 1], [], []>} : vector<8x32xbf16>, vector<32x32xbf16>, vector<8x32xf32> -> vector<8x32xf32>
    %c0_13 = arith.constant 0 : index
    %c0_14 = arith.constant 0 : index
    %14 = vector.load %arg6[%c0_13, %c0_14] : memref<1x32xf32, #tpu.memory_space<vmem>>, vector<1x32xf32>
    %15 = vector.broadcast %14 : vector<1x32xf32> to vector<8x32xf32>
    %16 = arith.addf %13, %15 : vector<8x32xf32>
    %c0_15 = arith.constant 0 : index
    %c0_16 = arith.constant 0 : index
    %17 = vector.load %arg7[%c0_15, %c0_16] : memref<32x32xbf16, #tpu.memory_space<vmem>>, vector<32x32xbf16>
    %cst_17 = arith.constant dense<0.000000e+00> : vector<8x32xf32>
    %18 = tpu.matmul %1, %17, %cst_17 {dimension_numbers = #tpu.dot_dimension_numbers<[1], [0], [0], [1], [0, 0, 1, 1], [], []>} : vector<8x32xbf16>, vector<32x32xbf16>, vector<8x32xf32> -> vector<8x32xf32>
    %c0_18 = arith.constant 0 : index
    %c0_19 = arith.constant 0 : index
    %19 = vector.load %arg8[%c0_18, %c0_19] : memref<1x32xf32, #tpu.memory_space<vmem>>, vector<1x32xf32>
    %20 = vector.broadcast %19 : vector<1x32xf32> to vector<8x32xf32>
    %21 = arith.addf %18, %20 : vector<8x32xf32>
    %22 = arith.truncf %11 : vector<8x32xf32> to vector<8x32xbf16>
    %23 = arith.truncf %16 : vector<8x32xf32> to vector<8x32xbf16>
    %24 = arith.truncf %21 : vector<8x32xf32> to vector<8x32xbf16>
    %25 = vector.extract_strided_slice %22 {offsets = [0, 0], sizes = [8, 8], strides = [1, 1]} : vector<8x32xbf16> to vector<8x8xbf16>
    %26 = vector.extract_strided_slice %23 {offsets = [0, 0], sizes = [8, 8], strides = [1, 1]} : vector<8x32xbf16> to vector<8x8xbf16>
    %cst_20 = arith.constant dense<0.000000e+00> : vector<8x8xf32>
    %27 = tpu.matmul %25, %26, %cst_20 {dimension_numbers = #tpu.dot_dimension_numbers<[1], [1], [0], [0], [0, 0, 1, 0], [], []>} : vector<8x8xbf16>, vector<8x8xbf16>, vector<8x8xf32> -> vector<8x8xf32>
    %28 = vector.broadcast %4 : vector<1x8xf32> to vector<8x8xf32>
    %29 = arith.addf %27, %28 : vector<8x8xf32>
    %cst_21 = arith.constant dense<0xFF800000> : vector<8xf32>
    %30 = vector.multi_reduction <maximumf>, %29, %cst_21 [1] : vector<8x8xf32> to vector<8xf32>
    %31 = vector.shape_cast %30 : vector<8xf32> to vector<8x1xf32>
    %32 = vector.broadcast %31 : vector<8x1xf32> to vector<8x8xf32>
    %33 = arith.subf %29, %32 : vector<8x8xf32>
    %34 = math.exp %33 : vector<8x8xf32>
    %cst_22 = arith.constant dense<0.000000e+00> : vector<8xf32>
    %35 = vector.multi_reduction <add>, %34, %cst_22 [1] : vector<8x8xf32> to vector<8xf32>
    %36 = vector.shape_cast %35 : vector<8xf32> to vector<8x1xf32>
    %37 = tpu.reciprocal %36 {approx = true} : vector<8x1xf32> -> vector<8x1xf32>
    %38 = vector.broadcast %37 : vector<8x1xf32> to vector<8x8xf32>
    %39 = arith.mulf %34, %38 : vector<8x8xf32>
    %40 = arith.truncf %39 : vector<8x8xf32> to vector<8x8xbf16>
    %41 = vector.extract_strided_slice %24 {offsets = [0, 0], sizes = [8, 8], strides = [1, 1]} : vector<8x32xbf16> to vector<8x8xbf16>
    %cst_23 = arith.constant dense<0.000000e+00> : vector<8x8xf32>
    %42 = tpu.matmul %40, %41, %cst_23 {dimension_numbers = #tpu.dot_dimension_numbers<[1], [0], [0], [1], [0, 0, 1, 1], [], []>} : vector<8x8xbf16>, vector<8x8xbf16>, vector<8x8xf32> -> vector<8x8xf32>
    %43 = vector.extract_strided_slice %22 {offsets = [0, 8], sizes = [8, 8], strides = [1, 1]} : vector<8x32xbf16> to vector<8x8xbf16>
    %44 = vector.extract_strided_slice %23 {offsets = [0, 8], sizes = [8, 8], strides = [1, 1]} : vector<8x32xbf16> to vector<8x8xbf16>
    %cst_24 = arith.constant dense<0.000000e+00> : vector<8x8xf32>
    %45 = tpu.matmul %43, %44, %cst_24 {dimension_numbers = #tpu.dot_dimension_numbers<[1], [1], [0], [0], [0, 0, 1, 0], [], []>} : vector<8x8xbf16>, vector<8x8xbf16>, vector<8x8xf32> -> vector<8x8xf32>
    %46 = vector.broadcast %4 : vector<1x8xf32> to vector<8x8xf32>
    %47 = arith.addf %45, %46 : vector<8x8xf32>
    %cst_25 = arith.constant dense<0xFF800000> : vector<8xf32>
    %48 = vector.multi_reduction <maximumf>, %47, %cst_25 [1] : vector<8x8xf32> to vector<8xf32>
    %49 = vector.shape_cast %48 : vector<8xf32> to vector<8x1xf32>
    %50 = vector.broadcast %49 : vector<8x1xf32> to vector<8x8xf32>
    %51 = arith.subf %47, %50 : vector<8x8xf32>
    %52 = math.exp %51 : vector<8x8xf32>
    %cst_26 = arith.constant dense<0.000000e+00> : vector<8xf32>
    %53 = vector.multi_reduction <add>, %52, %cst_26 [1] : vector<8x8xf32> to vector<8xf32>
    %54 = vector.shape_cast %53 : vector<8xf32> to vector<8x1xf32>
    %55 = tpu.reciprocal %54 {approx = true} : vector<8x1xf32> -> vector<8x1xf32>
    %56 = vector.broadcast %55 : vector<8x1xf32> to vector<8x8xf32>
    %57 = arith.mulf %52, %56 : vector<8x8xf32>
    %58 = arith.truncf %57 : vector<8x8xf32> to vector<8x8xbf16>
    %59 = vector.extract_strided_slice %24 {offsets = [0, 8], sizes = [8, 8], strides = [1, 1]} : vector<8x32xbf16> to vector<8x8xbf16>
    %cst_27 = arith.constant dense<0.000000e+00> : vector<8x8xf32>
    %60 = tpu.matmul %58, %59, %cst_27 {dimension_numbers = #tpu.dot_dimension_numbers<[1], [0], [0], [1], [0, 0, 1, 1], [], []>} : vector<8x8xbf16>, vector<8x8xbf16>, vector<8x8xf32> -> vector<8x8xf32>
    %61 = vector.extract_strided_slice %22 {offsets = [0, 16], sizes = [8, 8], strides = [1, 1]} : vector<8x32xbf16> to vector<8x8xbf16>
    %62 = vector.extract_strided_slice %23 {offsets = [0, 16], sizes = [8, 8], strides = [1, 1]} : vector<8x32xbf16> to vector<8x8xbf16>
    %cst_28 = arith.constant dense<0.000000e+00> : vector<8x8xf32>
    %63 = tpu.matmul %61, %62, %cst_28 {dimension_numbers = #tpu.dot_dimension_numbers<[1], [1], [0], [0], [0, 0, 1, 0], [], []>} : vector<8x8xbf16>, vector<8x8xbf16>, vector<8x8xf32> -> vector<8x8xf32>
    %64 = vector.broadcast %4 : vector<1x8xf32> to vector<8x8xf32>
    %65 = arith.addf %63, %64 : vector<8x8xf32>
    %cst_29 = arith.constant dense<0xFF800000> : vector<8xf32>
    %66 = vector.multi_reduction <maximumf>, %65, %cst_29 [1] : vector<8x8xf32> to vector<8xf32>
    %67 = vector.shape_cast %66 : vector<8xf32> to vector<8x1xf32>
    %68 = vector.broadcast %67 : vector<8x1xf32> to vector<8x8xf32>
    %69 = arith.subf %65, %68 : vector<8x8xf32>
    %70 = math.exp %69 : vector<8x8xf32>
    %cst_30 = arith.constant dense<0.000000e+00> : vector<8xf32>
    %71 = vector.multi_reduction <add>, %70, %cst_30 [1] : vector<8x8xf32> to vector<8xf32>
    %72 = vector.shape_cast %71 : vector<8xf32> to vector<8x1xf32>
    %73 = tpu.reciprocal %72 {approx = true} : vector<8x1xf32> -> vector<8x1xf32>
    %74 = vector.broadcast %73 : vector<8x1xf32> to vector<8x8xf32>
    %75 = arith.mulf %70, %74 : vector<8x8xf32>
    %76 = arith.truncf %75 : vector<8x8xf32> to vector<8x8xbf16>
    %77 = vector.extract_strided_slice %24 {offsets = [0, 16], sizes = [8, 8], strides = [1, 1]} : vector<8x32xbf16> to vector<8x8xbf16>
    %cst_31 = arith.constant dense<0.000000e+00> : vector<8x8xf32>
    %78 = tpu.matmul %76, %77, %cst_31 {dimension_numbers = #tpu.dot_dimension_numbers<[1], [0], [0], [1], [0, 0, 1, 1], [], []>} : vector<8x8xbf16>, vector<8x8xbf16>, vector<8x8xf32> -> vector<8x8xf32>
    %79 = vector.extract_strided_slice %22 {offsets = [0, 24], sizes = [8, 8], strides = [1, 1]} : vector<8x32xbf16> to vector<8x8xbf16>
    %80 = vector.extract_strided_slice %23 {offsets = [0, 24], sizes = [8, 8], strides = [1, 1]} : vector<8x32xbf16> to vector<8x8xbf16>
    %cst_32 = arith.constant dense<0.000000e+00> : vector<8x8xf32>
    %81 = tpu.matmul %79, %80, %cst_32 {dimension_numbers = #tpu.dot_dimension_numbers<[1], [1], [0], [0], [0, 0, 1, 0], [], []>} : vector<8x8xbf16>, vector<8x8xbf16>, vector<8x8xf32> -> vector<8x8xf32>
    %82 = vector.broadcast %4 : vector<1x8xf32> to vector<8x8xf32>
    %83 = arith.addf %81, %82 : vector<8x8xf32>
    %cst_33 = arith.constant dense<0xFF800000> : vector<8xf32>
    %84 = vector.multi_reduction <maximumf>, %83, %cst_33 [1] : vector<8x8xf32> to vector<8xf32>
    %85 = vector.shape_cast %84 : vector<8xf32> to vector<8x1xf32>
    %86 = vector.broadcast %85 : vector<8x1xf32> to vector<8x8xf32>
    %87 = arith.subf %83, %86 : vector<8x8xf32>
    %88 = math.exp %87 : vector<8x8xf32>
    %cst_34 = arith.constant dense<0.000000e+00> : vector<8xf32>
    %89 = vector.multi_reduction <add>, %88, %cst_34 [1] : vector<8x8xf32> to vector<8xf32>
    %90 = vector.shape_cast %89 : vector<8xf32> to vector<8x1xf32>
    %91 = tpu.reciprocal %90 {approx = true} : vector<8x1xf32> -> vector<8x1xf32>
    %92 = vector.broadcast %91 : vector<8x1xf32> to vector<8x8xf32>
    %93 = arith.mulf %88, %92 : vector<8x8xf32>
    %94 = arith.truncf %93 : vector<8x8xf32> to vector<8x8xbf16>
    %95 = vector.extract_strided_slice %24 {offsets = [0, 24], sizes = [8, 8], strides = [1, 1]} : vector<8x32xbf16> to vector<8x8xbf16>
    %cst_35 = arith.constant dense<0.000000e+00> : vector<8x8xf32>
    %96 = tpu.matmul %94, %95, %cst_35 {dimension_numbers = #tpu.dot_dimension_numbers<[1], [0], [0], [1], [0, 0, 1, 1], [], []>} : vector<8x8xbf16>, vector<8x8xbf16>, vector<8x8xf32> -> vector<8x8xf32>
    %97 = tpu.concatenate %42, %60, %78, %96 in 1 : vector<8x8xf32>, vector<8x8xf32>, vector<8x8xf32>, vector<8x8xf32> -> vector<8x32xf32>
    %98 = arith.truncf %97 : vector<8x32xf32> to vector<8x32xbf16>
    %c0_36 = arith.constant 0 : index
    %c0_37 = arith.constant 0 : index
    %99 = vector.load %arg20[%c0_36, %c0_37] : memref<8x32xbf16, #tpu.memory_space<vmem>>, vector<8x32xbf16>
    tpu.vector_store %arg20[%c0_36, %c0_37], %98 {strides = array<i32>} : memref<8x32xbf16, #tpu.memory_space<vmem>>, vector<8x32xbf16>,
    %c0_38 = arith.constant 0 : index
    %c0_39 = arith.constant 0 : index
    %100 = vector.load %arg20[%c0_38, %c0_39] : memref<8x32xbf16, #tpu.memory_space<vmem>>, vector<8x32xbf16>
    %c0_40 = arith.constant 0 : index
    %c0_41 = arith.constant 0 : index
    %101 = vector.load %arg9[%c0_40, %c0_41] : memref<32x32xbf16, #tpu.memory_space<vmem>>, vector<32x32xbf16>
    %cst_42 = arith.constant dense<0.000000e+00> : vector<8x32xf32>
    %102 = tpu.matmul %100, %101, %cst_42 {dimension_numbers = #tpu.dot_dimension_numbers<[1], [0], [0], [1], [0, 0, 1, 1], [], []>} : vector<8x32xbf16>, vector<32x32xbf16>, vector<8x32xf32> -> vector<8x32xf32>
    %c0_43 = arith.constant 0 : index
    %c0_44 = arith.constant 0 : index
    %103 = vector.load %arg10[%c0_43, %c0_44] : memref<1x32xf32, #tpu.memory_space<vmem>>, vector<1x32xf32>
    %104 = vector.broadcast %103 : vector<1x32xf32> to vector<8x32xf32>
    %105 = arith.addf %102, %104 : vector<8x32xf32>
    %106 = arith.addf %2, %105 : vector<8x32xf32>
    %c0_45 = arith.constant 0 : index
    %c0_46 = arith.constant 0 : index
    %107 = vector.load %arg11[%c0_45, %c0_46] : memref<1x32xf32, #tpu.memory_space<vmem>>, vector<1x32xf32>
    %c0_47 = arith.constant 0 : index
    %c0_48 = arith.constant 0 : index
    %108 = vector.load %arg12[%c0_47, %c0_48] : memref<1x32xf32, #tpu.memory_space<vmem>>, vector<1x32xf32>
    %cst_49 = arith.constant dense<0.000000e+00> : vector<8xf32>
    %109 = vector.multi_reduction <add>, %106, %cst_49 [1] : vector<8x32xf32> to vector<8xf32>
    %110 = vector.shape_cast %109 : vector<8xf32> to vector<8x1xf32>
    %cst_50 = arith.constant 3.200000e+01 : f32
    %111 = vector.broadcast %cst_50 : f32 to vector<8x1xf32>
    %112 = arith.divf %110, %111 : vector<8x1xf32>
    %113 = vector.broadcast %112 : vector<8x1xf32> to vector<8x32xf32>
    %114 = arith.subf %106, %113 : vector<8x32xf32>
    %115 = arith.mulf %114, %114 : vector<8x32xf32>
    %cst_51 = arith.constant dense<0.000000e+00> : vector<8xf32>
    %116 = vector.multi_reduction <add>, %115, %cst_51 [1] : vector<8x32xf32> to vector<8xf32>
    %117 = vector.shape_cast %116 : vector<8xf32> to vector<8x1xf32>
    %cst_52 = arith.constant 3.200000e+01 : f32
    %118 = vector.broadcast %cst_52 : f32 to vector<8x1xf32>
    %119 = arith.divf %117, %118 : vector<8x1xf32>
    %120 = vector.broadcast %112 : vector<8x1xf32> to vector<8x32xf32>
    %121 = arith.subf %106, %120 : vector<8x32xf32>
    %cst_53 = arith.constant 9.99999974E-6 : f32
    %122 = vector.broadcast %cst_53 : f32 to vector<8x1xf32>
    %123 = arith.addf %119, %122 : vector<8x1xf32>
    %124 = math.rsqrt %123 : vector<8x1xf32>
    %125 = vector.broadcast %124 : vector<8x1xf32> to vector<8x32xf32>
    %126 = arith.mulf %121, %125 : vector<8x32xf32>
    %127 = vector.broadcast %107 : vector<1x32xf32> to vector<8x32xf32>
    %128 = arith.mulf %126, %127 : vector<8x32xf32>
    %129 = vector.broadcast %108 : vector<1x32xf32> to vector<8x32xf32>
    %130 = arith.addf %128, %129 : vector<8x32xf32>
    %131 = arith.truncf %130 : vector<8x32xf32> to vector<8x32xbf16>
    %cst_54 = arith.constant 0.000000e+00 : f32
    %132 = vector.broadcast %cst_54 : f32 to vector<8x32xf32>
    %c0_55 = arith.constant 0 : index
    %c0_56 = arith.constant 0 : index
    %133 = vector.load %arg13[%c0_55, %c0_56] : memref<32x64xbf16, #tpu.memory_space<vmem>>, vector<32x64xbf16>
    %cst_57 = arith.constant dense<0.000000e+00> : vector<8x64xf32>
    %134 = tpu.matmul %131, %133, %cst_57 {dimension_numbers = #tpu.dot_dimension_numbers<[1], [0], [0], [1], [0, 0, 1, 1], [], []>} : vector<8x32xbf16>, vector<32x64xbf16>, vector<8x64xf32> -> vector<8x64xf32>
    %c0_58 = arith.constant 0 : index
    %c0_59 = arith.constant 0 : index
    %135 = vector.load %arg14[%c0_58, %c0_59] : memref<1x64xf32, #tpu.memory_space<vmem>>, vector<1x64xf32>
    %136 = vector.broadcast %135 : vector<1x64xf32> to vector<8x64xf32>
    %137 = arith.addf %134, %136 : vector<8x64xf32>
    %cst_60 = arith.constant 5.000000e-01 : f32
    %138 = vector.broadcast %cst_60 : f32 to vector<8x64xf32>
    %139 = arith.mulf %137, %138 : vector<8x64xf32>
    %cst_61 = arith.constant 1.41421354 : f32
    %140 = vector.broadcast %cst_61 : f32 to vector<8x64xf32>
    %141 = arith.divf %137, %140 : vector<8x64xf32>
    %142 = math.erf %141 : vector<8x64xf32>
    %cst_62 = arith.constant 1.000000e+00 : f32
    %143 = vector.broadcast %cst_62 : f32 to vector<8x64xf32>
    %144 = arith.addf %143, %142 : vector<8x64xf32>
    %145 = arith.mulf %139, %144 : vector<8x64xf32>
    %146 = arith.truncf %145 : vector<8x64xf32> to vector<8x64xbf16>
    %c0_63 = arith.constant 0 : index
    %c0_64 = arith.constant 0 : index
    %147 = vector.load %arg15[%c0_63, %c0_64] : memref<64x32xbf16, #tpu.memory_space<vmem>>, vector<64x32xbf16>
    %cst_65 = arith.constant dense<0.000000e+00> : vector<8x32xf32>
    %148 = tpu.matmul %146, %147, %cst_65 {dimension_numbers = #tpu.dot_dimension_numbers<[1], [0], [0], [1], [0, 0, 1, 1], [], []>} : vector<8x64xbf16>, vector<64x32xbf16>, vector<8x32xf32> -> vector<8x32xf32>
    %149 = arith.addf %132, %148 : vector<8x32xf32>
    %c0_66 = arith.constant 0 : index
    %c0_67 = arith.constant 0 : index
    %150 = vector.load %arg16[%c0_66, %c0_67] : memref<1x32xf32, #tpu.memory_space<vmem>>, vector<1x32xf32>
    %151 = vector.broadcast %150 : vector<1x32xf32> to vector<8x32xf32>
    %152 = arith.addf %149, %151 : vector<8x32xf32>
    %153 = arith.addf %130, %152 : vector<8x32xf32>
    %c0_68 = arith.constant 0 : index
    %c0_69 = arith.constant 0 : index
    %154 = vector.load %arg17[%c0_68, %c0_69] : memref<1x32xf32, #tpu.memory_space<vmem>>, vector<1x32xf32>
    %c0_70 = arith.constant 0 : index
    %c0_71 = arith.constant 0 : index
    %155 = vector.load %arg18[%c0_70, %c0_71] : memref<1x32xf32, #tpu.memory_space<vmem>>, vector<1x32xf32>
    %cst_72 = arith.constant dense<0.000000e+00> : vector<8xf32>
    %156 = vector.multi_reduction <add>, %153, %cst_72 [1] : vector<8x32xf32> to vector<8xf32>
    %157 = vector.shape_cast %156 : vector<8xf32> to vector<8x1xf32>
    %cst_73 = arith.constant 3.200000e+01 : f32
    %158 = vector.broadcast %cst_73 : f32 to vector<8x1xf32>
    %159 = arith.divf %157, %158 : vector<8x1xf32>
    %160 = vector.broadcast %159 : vector<8x1xf32> to vector<8x32xf32>
    %161 = arith.subf %153, %160 : vector<8x32xf32>
    %162 = arith.mulf %161, %161 : vector<8x32xf32>
    %cst_74 = arith.constant dense<0.000000e+00> : vector<8xf32>
    %163 = vector.multi_reduction <add>, %162, %cst_74 [1] : vector<8x32xf32> to vector<8xf32>
    %164 = vector.shape_cast %163 : vector<8xf32> to vector<8x1xf32>
    %cst_75 = arith.constant 3.200000e+01 : f32
    %165 = vector.broadcast %cst_75 : f32 to vector<8x1xf32>
    %166 = arith.divf %164, %165 : vector<8x1xf32>
    %167 = vector.broadcast %159 : vector<8x1xf32> to vector<8x32xf32>
    %168 = arith.subf %153, %167 : vector<8x32xf32>
    %cst_76 = arith.constant 9.99999974E-6 : f32
    %169 = vector.broadcast %cst_76 : f32 to vector<8x1xf32>
    %170 = arith.addf %166, %169 : vector<8x1xf32>
    %171 = math.rsqrt %170 : vector<8x1xf32>
    %172 = vector.broadcast %171 : vector<8x1xf32> to vector<8x32xf32>
    %173 = arith.mulf %168, %172 : vector<8x32xf32>
    %174 = vector.broadcast %154 : vector<1x32xf32> to vector<8x32xf32>
    %175 = arith.mulf %173, %174 : vector<8x32xf32>
    %176 = vector.broadcast %155 : vector<1x32xf32> to vector<8x32xf32>
    %177 = arith.addf %175, %176 : vector<8x32xf32>
    %c0_77 = arith.constant 0 : index
    %c0_78 = arith.constant 0 : index
    %c0_79 = arith.constant 0 : index
    %178 = vector.load %arg19[%c0_77, %c0_78, %c0_79] : memref<1x8x32xf32, #tpu.memory_space<vmem>>, vector<1x8x32xf32>
    %179 = vector.shape_cast %178 : vector<1x8x32xf32> to vector<8x32xf32>
    %180 = vector.shape_cast %177 : vector<8x32xf32> to vector<1x8x32xf32>
    tpu.vector_store %arg19[%c0_77, %c0_78, %c0_79], %180 {strides = array<i32>} : memref<1x8x32xf32, #tpu.memory_space<vmem>>, vector<1x8x32xf32>,
    return
  }
  func.func @transform_0(%arg0: i32) -> (i32, i32, i32) {
    %c0_i32 = arith.constant 0 : i32
    %c0_i32_0 = arith.constant 0 : i32
    %c0_i32_1 = arith.constant 0 : i32
    return %arg0, %c0_i32, %c0_i32_0 : i32, i32, i32
  }
  func.func @transform_1(%arg0: i32) -> (i32, i32, i32) {
    %c0_i32 = arith.constant 0 : i32
    %c0_i32_0 = arith.constant 0 : i32
    %c0_i32_1 = arith.constant 0 : i32
    return %arg0, %c0_i32, %c0_i32_0 : i32, i32, i32
  }
  func.func @transform_2(%arg0: i32) -> (i32, i32) {
    %c0_i32 = arith.constant 0 : i32
    %c0_i32_0 = arith.constant 0 : i32
    %c0_i32_1 = arith.constant 0 : i32
    return %c0_i32, %c0_i32_0 : i32, i32
  }
  func.func @transform_3(%arg0: i32) -> (i32, i32) {
    %c0_i32 = arith.constant 0 : i32
    %c0_i32_0 = arith.constant 0 : i32
    %c0_i32_1 = arith.constant 0 : i32
    return %c0_i32, %c0_i32_0 : i32, i32
  }
  func.func @transform_4(%arg0: i32) -> (i32, i32) {
    %c0_i32 = arith.constant 0 : i32
    %c0_i32_0 = arith.constant 0 : i32
    %c0_i32_1 = arith.constant 0 : i32
    return %c0_i32, %c0_i32_0 : i32, i32
  }
  func.func @transform_5(%arg0: i32) -> (i32, i32) {
    %c0_i32 = arith.constant 0 : i32
    %c0_i32_0 = arith.constant 0 : i32
    %c0_i32_1 = arith.constant 0 : i32
    return %c0_i32, %c0_i32_0 : i32, i32
  }
  func.func @transform_6(%arg0: i32) -> (i32, i32) {
    %c0_i32 = arith.constant 0 : i32
    %c0_i32_0 = arith.constant 0 : i32
    %c0_i32_1 = arith.constant 0 : i32
    return %c0_i32, %c0_i32_0 : i32, i32
  }
  func.func @transform_7(%arg0: i32) -> (i32, i32) {
    %c0_i32 = arith.constant 0 : i32
    %c0_i32_0 = arith.constant 0 : i32
    %c0_i32_1 = arith.constant 0 : i32
    return %c0_i32, %c0_i32_0 : i32, i32
  }
  func.func @transform_8(%arg0: i32) -> (i32, i32) {
    %c0_i32 = arith.constant 0 : i32
    %c0_i32_0 = arith.constant 0 : i32
    %c0_i32_1 = arith.constant 0 : i32
    return %c0_i32, %c0_i32_0 : i32, i32
  }
  func.func @transform_9(%arg0: i32) -> (i32, i32) {
    %c0_i32 = arith.constant 0 : i32
    %c0_i32_0 = arith.constant 0 : i32
    %c0_i32_1 = arith.constant 0 : i32
    return %c0_i32, %c0_i32_0 : i32, i32
  }
  func.func @transform_10(%arg0: i32) -> (i32, i32) {
    %c0_i32 = arith.constant 0 : i32
    %c0_i32_0 = arith.constant 0 : i32
    %c0_i32_1 = arith.constant 0 : i32
    return %c0_i32, %c0_i32_0 : i32, i32
  }
  func.func @transform_11(%arg0: i32) -> (i32, i32) {
    %c0_i32 = arith.constant 0 : i32
    %c0_i32_0 = arith.constant 0 : i32
    %c0_i32_1 = arith.constant 0 : i32
    return %c0_i32, %c0_i32_0 : i32, i32
  }
  func.func @transform_12(%arg0: i32) -> (i32, i32) {
    %c0_i32 = arith.constant 0 : i32
    %c0_i32_0 = arith.constant 0 : i32
    %c0_i32_1 = arith.constant 0 : i32
    return %c0_i32, %c0_i32_0 : i32, i32
  }
  func.func @transform_13(%arg0: i32) -> (i32, i32) {
    %c0_i32 = arith.constant 0 : i32
    %c0_i32_0 = arith.constant 0 : i32
    %c0_i32_1 = arith.constant 0 : i32
    return %c0_i32, %c0_i32_0 : i32, i32
  }
  func.func @transform_14(%arg0: i32) -> (i32, i32) {
    %c0_i32 = arith.constant 0 : i32
    %c0_i32_0 = arith.constant 0 : i32
    %c0_i32_1 = arith.constant 0 : i32
    return %c0_i32, %c0_i32_0 : i32, i32
  }
  func.func @transform_15(%arg0: i32) -> (i32, i32) {
    %c0_i32 = arith.constant 0 : i32
    %c0_i32_0 = arith.constant 0 : i32
    %c0_i32_1 = arith.constant 0 : i32
    return %c0_i32, %c0_i32_0 : i32, i32
  }
  func.func @transform_16(%arg0: i32) -> (i32, i32) {
    %c0_i32 = arith.constant 0 : i32
    %c0_i32_0 = arith.constant 0 : i32
    %c0_i32_1 = arith.constant 0 : i32
    return %c0_i32, %c0_i32_0 : i32, i32
  }
  func.func @transform_17(%arg0: i32) -> (i32, i32) {
    %c0_i32 = arith.constant 0 : i32
    %c0_i32_0 = arith.constant 0 : i32
    %c0_i32_1 = arith.constant 0 : i32
    return %c0_i32, %c0_i32_0 : i32, i32
  }
  func.func @transform_18(%arg0: i32) -> (i32, i32, i32) {
    %c0_i32 = arith.constant 0 : i32
    %c0_i32_0 = arith.constant 0 : i32
    %c0_i32_1 = arith.constant 0 : i32
    return %arg0, %c0_i32, %c0_i32_0 : i32, i32, i32
  }
}

</mosaic_0001>

<bundles_post_ra>
// kernel: tpu_custom_call.1
= control target key start
LH: loop header
LB: loop body
LE: loop exit
PB: predicated region body
PF: predicated region fallthrough
CT: control target
= control target key end

     0   :  { %s2927_s0 = inlined_call_operand.hbm [shape: bf16[2,8,32], index: 0, kind: input, shape index: {}]   ;;  %s2928_s1 = inlined_call_operand.vmem [shape: f32[2,1,8], index: 1, kind: input, shape index: {}]   ;;  %s2929_s2 = inlined_call_operand.vmem [shape: bf16[32,32], index: 2, kind: input, shape index: {}]   ;;  %s2930_s3 = inlined_call_operand.hbm [shape: f32[1,32], index: 3, kind: input, shape index: {}]   ;;  %s2931_s4 = inlined_call_operand.vmem [shape: bf16[32,32], index: 4, kind: input, shape index: {}]   ;;  %s2932_s5 = inlined_call_operand.hbm [shape: f32[1,32], index: 5, kind: input, shape index: {}]   ;;  %s2933_s6 = inlined_call_operand.vmem [shape: bf16[32,32], index: 6, kind: input, shape index: {}]   ;;  %s2934_s7 = inlined_call_operand.hbm [shape: f32[1,32], index: 7, kind: input, shape index: {}]   ;;  %s2935_s8 = inlined_call_operand.hbm [shape: bf16[32,32], index: 8, kind: input, shape index: {}]   ;;  %s2936_s9 = inlined_call_operand.hbm [shape: f32[1,32], index: 9, kind: input, shape index: {}]   ;;  %s2937_s10 = inlined_call_operand.vmem [shape: f32[1,32], index: 10, kind: input, shape index: {}]   ;;  %s2938_s11 = inlined_call_operand.vmem [shape: f32[1,32], index: 11, kind: input, shape index: {}]   ;;  %s2939_s12 = inlined_call_operand.vmem [shape: bf16[32,64], index: 12, kind: input, shape index: {}]   ;;  %s2940_s13 = inlined_call_operand.vmem [shape: f32[1,64], index: 13, kind: input, shape index: {}]   ;;  %s2941_s14 = inlined_call_operand.vmem [shape: bf16[64,32], index: 14, kind: input, shape index: {}]   ;;  %s2942_s15 = inlined_call_operand.vmem [shape: f32[1,32], index: 15, kind: input, shape index: {}]   ;;  %s2943_s16 = inlined_call_operand.vmem [shape: f32[1,32], index: 16, kind: input, shape index: {}]   ;;  %s2944_s17 = inlined_call_operand.vmem [shape: f32[1,32], index: 17, kind: input, shape index: {}]   ;;  %s2945_s18 = inlined_call_operand.hbm [shape: f32[2,8,32], index: 18, kind: output, shape index: {}]  }
   0x1   :  { %2954 = sst [smem:[#allocation20_spill]] %s2927_s0 }
   0x2   :  { %2955 = sst [smem:[#allocation21_spill]] %s2928_s1 }
   0x3   :  { %2956 = sst [smem:[#allocation22_spill]] %s2929_s2 }
   0x4   :  { %2957 = sst [smem:[#allocation23_spill]] %s2930_s3 }
   0x5   :  { %2958 = sst [smem:[#allocation24_spill]] %s2931_s4 }
   0x6   :  { %2959 = sst [smem:[#allocation25_spill]] %s2932_s5 }
   0x7   :  { %2960 = sst [smem:[#allocation26_spill]] %s2933_s6 }
   0x8   :  { %2961 = sst [smem:[#allocation27_spill]] %s2934_s7 }
   0x9   :  { %2962 = sst [smem:[#allocation28_spill]] %s2940_s13 }
   0xa   :  { %2963 = sst [smem:[#allocation29_spill]] %s2941_s14 }
   0xb   :  { %2964 = sst [smem:[#allocation30_spill]] %s2942_s15 }
   0xc   :  { %2965 = sst [smem:[#allocation31_spill]] %s2943_s16 }
   0xd   :  { %2966 = sst [smem:[#allocation32_spill]] %s2944_s17 }
   0xe   :  { %2967 = sst [smem:[#allocation33_spill]] %s2945_s18 }
   0xf   :  { %23 = vsyncpa [#allocation4], 0 }
  0x10   :  { %25 = vsyncpa [#allocation4 + $0x1], 0 }
  0x11   :  { %26 = vsyncpa [#allocation7], 0 }
  0x12   :  { %27 = vsyncpa [#allocation10], 0 }
  0x13   :  { %28 = vsyncpa [#allocation13], 0 }
  0x14   :  { %29 = vsyncpa [#allocation5], 0 }
  0x15   :  { %31 = vsyncpa [#allocation5 + $0x1], 0  ;;  %s2465_s27 = smov 0   ;;  %s2467_s28 = smov 0  }
  0x16   :  { %s2469_s29 = smov 0   ;;  %s2471_s30 = smov 0  }
  0x17 LB: > { %s2353_s0 = smov [#allocation6]   ;;  %s2486_s1 = sadd.s32 4294967295, %s2351_s30   ;;  %s2351_s30 = sphi %s2471_s30, %s3003_s30   ;;  %s2347_s29 = sphi %s2469_s29, %s3002_s29   ;;  %s2343_s28 = sphi %s2467_s28, %s3001_s28   ;;  %s2339_s27 = sphi %s2465_s27, %s3000_s27  }
  0x18   : > { %s472_s19 = sshll.u32 %s2353_s0, 4  ;;  %p1764_p0 = scmp.ge.s32.totalorder %s2351_s30, 1  ;;  %s2491_s19 = int_to_ptr.vmem [resolvable:$true] %s472_s19 }
  0x19   : > { %p2950_p1 = scmp.eq.s32.totalorder %s2486_s1, 0  ;;  %p456_p2 = scmp.lt.s32.totalorder %s2351_s30, 3 }
  0x1a   : > { %s2354_s21 = smov [#allocation9]   ;;  %s2355_s2 = smov [#allocation8]  }
  0x1b   : > { %p2493_p3 = pnand %p1764_p0, %p456_p2  ;;  %s500_s22 = sshll.u32 %s2354_s21, 4  ;;  %s2500_s22 = int_to_ptr.vmem [resolvable:$true] %s500_s22 }
  0x1c   : > { %s486_s23 = sshll.u32 %s2355_s2, 4  ;;  %s2356_s25 = smov [#allocation11]   ;;  %s2508_s23 = int_to_ptr.vmem [resolvable:$true] %s486_s23 }
  0x1d   : > { %s2968_s20 = scalar_select %p2493_p3, 1, 0 }
  0x1e   : > { %p1984_p5 = pneg %p2493_p3  ;;  %s2510_s26 = sshll.u32 %s2356_s25, 4  ;;  %s511_s26 = int_to_ptr.vmem [resolvable:$true] %s2510_s26 }
  0x1f   : > { %s2970_s3 = sld [smem:[#allocation23_spill]] }
  0x20   : > { %p2504_p6 = pnand %p1984_p5, %p2950_p1 }
  0x22   : > { %p2520_p8 = pneg %p2504_p6 }
  0x25   : > { %s2103_s17 = scalar_lea.hbm %s2970_s3, 16 }
  0x26   : > { %p2104_p7 = scmp.ne.s32.totalorder %s2970_s3, %s2103_s17  ;;  %p2110_p11 = scmp.lt.u32.totalorder %s2103_s17, %s2970_s3 }
  0x28   : > { %p2106_p9 = pnand %p2520_p8, %p2104_p7 }
  0x2a   : > { %p2107_p10 = pneg %p2106_p9 }
  0x2c   : > { %p2112_p12 = pnand %p2110_p11, %p2107_p10 }
  0x2e   : > { %2115 = shalt.err (!%p2112_p12)
}
  0x2f   : > { %s2116_s16 = scalar_lea.vmem %s2491_s19, 16  ;;  %s2123_s18 = scalar_lea.vmem %s2491_s19, 32 }
  0x30   : > { %p2117_p13 = scmp.ne.s32.totalorder %s2491_s19, %s2116_s16  ;;  %p2124_p5 = scmp.lt.s32.totalorder %s2491_s19, %s2491_s19 }
  0x31   : > { %p2125_p7 = scmp.lt.s32.totalorder %s2123_s18, %s2116_s16 }
  0x32   : > { %p2119_p0 = pnand %p2117_p13, %p2520_p8 }
  0x33   : > { %p2126_p9 = por %p2125_p7, %p2124_p5 }
  0x34   : > { %p2120_p2 = pneg %p2119_p0 }
  0x36   : > { %p2127_p4 = pnand %p2126_p9, %p2120_p2 }
  0x38   : > { %2130 = shalt.err (!%p2127_p4)
}
  0x39   : > { %1987 = dma.hbm_to_vmem [thread:$0]  (!%p2504_p6), %s2970_s3, 16, %s2491_s19, [#allocation7]  }
  0x3a   : > { %s2972_s7 = sld [smem:[#allocation27_spill]] }
  0x40   : > { %s2131_s25 = scalar_lea.hbm %s2972_s7, 16 }
  0x41   : > { %p2132_p10 = scmp.ne.s32.totalorder %s2972_s7, %s2131_s25  ;;  %p2138_p4 = scmp.lt.u32.totalorder %s2131_s25, %s2972_s7 }
  0x43   : > { %p2134_p11 = pnand %p2132_p10, %p2520_p8 }
  0x45   : > { %p2135_p12 = pneg %p2134_p11 }
  0x47   : > { %p2140_p13 = pnand %p2138_p4, %p2135_p12 }
  0x49   : > { %2143 = shalt.err (!%p2140_p13)
}
  0x4a   : > { %s2144_s19 = scalar_lea.vmem %s2500_s22, 16  ;;  %s2151_s13 = scalar_lea.vmem %s2500_s22, 32 }
  0x4b   : > { %p2145_p0 = scmp.ne.s32.totalorder %s2500_s22, %s2144_s19  ;;  %p2152_p7 = scmp.lt.s32.totalorder %s2500_s22, %s2500_s22 }
  0x4c   : > { %p2153_p9 = scmp.lt.s32.totalorder %s2151_s13, %s2144_s19 }
  0x4d   : > { %p2147_p2 = pnand %p2145_p0, %p2520_p8 }
  0x4e   : > { %p2154_p10 = por %p2153_p9, %p2152_p7 }
  0x4f   : > { %p2148_p5 = pneg %p2147_p2 }
  0x51   : > { %p2155_p11 = pnand %p2154_p10, %p2148_p5 }
  0x53   : > { %2158 = shalt.err (!%p2155_p11)
}
  0x54   : > { %1993 = dma.hbm_to_vmem [thread:$0]  (!%p2504_p6), %s2972_s7, 16, %s2500_s22, [#allocation10]  }
  0x55   : > { %s2973_s5 = sld [smem:[#allocation25_spill]] }
  0x5b   : > { %s2159_s21 = scalar_lea.hbm %s2973_s5, 16 }
  0x5c   : > { %p2160_p12 = scmp.ne.s32.totalorder %s2973_s5, %s2159_s21  ;;  %p2166_p0 = scmp.lt.u32.totalorder %s2159_s21, %s2973_s5 }
  0x5e   : > { %p2162_p4 = pnand %p2160_p12, %p2520_p8 }
  0x60   : > { %p2163_p13 = pneg %p2162_p4 }
  0x62   : > { %p2168_p2 = pnand %p2166_p0, %p2163_p13 }
  0x64   : > { %2171 = shalt.err (!%p2168_p2)
}
  0x65   : > { %s2172_s22 = scalar_lea.vmem %s2508_s23, 16  ;;  %s2179_s13 = scalar_lea.vmem %s2508_s23, 32 }
  0x66   : > { %p2173_p5 = scmp.ne.s32.totalorder %s2508_s23, %s2172_s22  ;;  %p2180_p10 = scmp.lt.s32.totalorder %s2508_s23, %s2508_s23 }
  0x67   : > { %p2181_p11 = scmp.lt.s32.totalorder %s2179_s13, %s2172_s22 }
  0x68   : > { %p2175_p7 = pnand %p2173_p5, %p2520_p8 }
  0x69   : > { %p2182_p12 = por %p2181_p11, %p2180_p10 }
  0x6a   : > { %p2176_p9 = pneg %p2175_p7 }
  0x6c   : > { %p2183_p4 = pnand %p2182_p12, %p2176_p9 }
  0x6e   : > { %2186 = shalt.err (!%p2183_p4)
}
  0x6f   : > { %1990 = dma.hbm_to_vmem [thread:$0]  (!%p2504_p6), %s2973_s5, 16, %s2508_s23, [#allocation7]  }
  0x70   : > { %s2187_s21 = scalar_lea.hbm %s2935_s8, 256 }
  0x71   : > { %p2188_p13 = scmp.ne.s32.totalorder %s2935_s8, %s2187_s21  ;;  %p2194_p5 = scmp.lt.u32.totalorder %s2187_s21, %s2935_s8 }
  0x73   : > { %p2190_p0 = pnand %p2188_p13, %p2520_p8 }
  0x75   : > { %p2191_p2 = pneg %p2190_p0 }
  0x77   : > { %p2196_p7 = pnand %p2194_p5, %p2191_p2 }
  0x79   : > { %2199 = shalt.err (!%p2196_p7)
}
  0x7a   : > { %s2200_s22 = scalar_lea.vmem %s511_s26, 256  ;;  %p2208_p12 = scmp.lt.s32.totalorder %s511_s26, %s511_s26 }
  0x7b   : > { %p2201_p9 = scmp.ne.s32.totalorder %s511_s26, %s2200_s22  ;;  %p2209_p4 = scmp.lt.s32.totalorder %s2200_s22, %s2200_s22 }
  0x7d   : > { %p2203_p10 = pnand %p2201_p9, %p2520_p8  ;;  %p2210_p1 = por %p2209_p4, %p2208_p12 }
  0x7f   : > { %p2204_p11 = pneg %p2203_p10 }
  0x81   : > { %p2211_p3 = pnand %p2210_p1, %p2204_p11 }
  0x83   : > { %2214 = shalt.err (!%p2211_p3)
}
  0x84   : > { %s2357_s23 = smov 64   ;;  %s2358_s13 = smov 4  }
  0x85   : > { %1996 = dma.hbm_to_vmem [thread:$0]  (!%p2504_p6), %s2935_s8, 256, %s511_s26, [#allocation10], %s2357_s23, %s2357_s23, %s2358_s13  }
  0x86   : > { %s2359_s17 = smov [#allocation12]   ;;  %s2215_s16 = scalar_lea.hbm %s2936_s9, 16 }
  0x87   : > { %s524_s0 = sshll.u32 %s2359_s17, 4  ;;  %p2216_p1 = scmp.ne.s32.totalorder %s2936_s9, %s2215_s16  ;;  %s525_s0 = int_to_ptr.vmem [resolvable:$true] %s524_s0 }
  0x88   : > { %p2222_p0 = scmp.lt.u32.totalorder %s2215_s16, %s2936_s9 }
  0x89   : > { %p2218_p3 = pnand %p2216_p1, %p2520_p8 }
  0x8b   : > { %p2219_p13 = pneg %p2218_p3 }
  0x8d   : > { %p2224_p2 = pnand %p2222_p0, %p2219_p13 }
  0x8f   : > { %2227 = shalt.err (!%p2224_p2)
}
  0x90   : > { %s2228_s26 = scalar_lea.vmem %s525_s0, 16  ;;  %s2235_s23 = scalar_lea.vmem %s525_s0, 32 }
  0x91   : > { %p2229_p5 = scmp.ne.s32.totalorder %s525_s0, %s2228_s26  ;;  %p2236_p10 = scmp.lt.s32.totalorder %s525_s0, %s525_s0 }
  0x92   : > { %p2237_p11 = scmp.lt.s32.totalorder %s2235_s23, %s2228_s26 }
  0x93   : > { %p2231_p7 = pnand %p2229_p5, %p2520_p8 }
  0x94   : > { %p2238_p12 = por %p2237_p11, %p2236_p10 }
  0x95   : > { %p2232_p9 = pneg %p2231_p7 }
  0x97   : > { %p2239_p4 = pnand %p2238_p12, %p2232_p9 }
  0x99   : > { %2242 = shalt.err (!%p2239_p4)
}
  0x9a   : > { %1999 = dma.hbm_to_vmem [thread:$0]  (!%p2504_p6), %s2936_s9, 16, %s525_s0, [#allocation13]  }
  0x9b   : > { %s1763_s3 = sadd.s32 4294967294, %s2351_s30   ;;  %s2629_s24 = sadd.s32 1, %s2351_s30  }
  0x9c   : > { %s44_s2 = sadd.s32 1, %s2347_s29  ;;  %s41_s15 = ssub.s32 %s2351_s30, %s2629_s24 }
  0x9d   : > { %p51_p8 = scmp.ne.s32.totalorder %s2347_s29, %s2343_s28  ;;  %p42_p1 = scmp.eq.s32.totalorder %s41_s15, 0 }
  0x9e   : > { %p52_p3 = scmp.eq.s32.totalorder %s2351_s30, 0  ;;  %p57_p13 = scmp.ne.s32.totalorder %s2343_s28, %s2339_s27 }
  0x9f   : > { %p443_p0 = scmp.eq.s32.totalorder %s2486_s1, 1  ;;  %p2974_p5 = scmp.eq.s32.totalorder %s2486_s1, 0 }
  0xa0   : > { %s2641_s17 = scalar_select %p42_p1, %s2347_s29, %s44_s2  }
  0xa1   : > { %p53_p2 = por %p52_p3, %p51_p8  ;;  %p2645_p7 = por %p2974_p5, %p57_p13 }
  0xa2   : > { %p2649_p6 = por %p443_p0, %p51_p8  ;;  %p449_p9 = scmp.eq.s32.totalorder %s1763_s3, 1 }
  0xa3   : > { %p2013_p10 = scmp.lt.s32.totalorder %s2351_s30, 2  ;;  %s559_s25 = sand.u32 1, %s2347_s29  }
  0xa4   : > { %s2976_s0 = scalar_select %p2649_p6, 1, 0 }
  0xa5   : > { %p2655_p11 = por %p449_p9, %p57_p13  ;;  %s1771_s18 = sshll.u32 %s559_s25, 2 }
  0xa6   : > { %s1772_s19 = sshll.u32 %s2351_s30, 6  ;;  %s2978_s23 = sld [smem:[#allocation20_spill]] }
  0xa7   : > { %s2977_s16 = scalar_select %p2655_p11, 1, 0 }
  0xa8   : > { %s563_s14 = scalar_lea.vmem [#allocation3], %s1771_s18  ;;  %p2665_p12 = pnand %p2013_p10, %p53_p2 }
  0xa9   : > { %s570_s2 = sshll.u32 %s563_s14, 4  ;;  %s560_s15 = scalar_lea.sflag [#allocation4], %s559_s25  ;;  %s2669_s2 = int_to_ptr.vmem [resolvable:$true] %s570_s2 }
  0xaa   : > { %p2245_p8 = pneg %p2665_p12 }
  0xac   : > { %s2663_s13 = scalar_lea.hbm %s2978_s23, %s1772_s19  ;;  %s2248_s22 = scalar_lea.hbm %s2978_s23, 128 }
  0xad   : > { %s2243_s5 = scalar_lea.hbm %s2663_s13, 64  ;;  %p2249_p13 = scmp.lt.u32.totalorder %s2663_s13, %s2978_s23 }
  0xae   : > { %p2244_p4 = scmp.ne.s32.totalorder %s2663_s13, %s2243_s5  ;;  %p2250_p0 = scmp.lt.u32.totalorder %s2248_s22, %s2243_s5 }
  0xaf   : > { %p2252_p5 = scmp.lt.u32.totalorder %s2243_s5, %s2663_s13 }
  0xb0   : > { %p2246_p1 = pnand %p2245_p8, %p2244_p4  ;;  %p2251_p2 = por %p2250_p0, %p2249_p13 }
  0xb2   : > { %p2247_p3 = pneg %p2246_p1  ;;  %p2253_p9 = por %p2252_p5, %p2251_p2 }
  0xb4   : > { %p2254_p10 = pnand %p2253_p9, %p2247_p3 }
  0xb6   : > { %2257 = shalt.err (!%p2254_p10)
}
  0xb7   : > { %s2258_s25 = scalar_lea.vmem %s2669_s2, 64  ;;  %s2360_s19 = smov [#allocation3]  }
  0xb8   : > { %p2259_p4 = scmp.ne.s32.totalorder %s2669_s2, %s2258_s25  ;;  %s2263_s18 = sshll.u32 %s2360_s19, 4  ;;  %s2264_s18 = int_to_ptr.vmem [resolvable:$false] %s2263_s18 }
  0xb9   : > { %s2265_s26 = scalar_lea.vmem %s2264_s18, 128  ;;  %p2266_p6 = scmp.lt.s32.totalorder %s2669_s2, %s2264_s18 }
  0xba   : > { %p2261_p1 = pnand %p2259_p4, %p2245_p8  ;;  %p2267_p13 = scmp.lt.s32.totalorder %s2265_s26, %s2258_s25 }
  0xbc   : > { %p2262_p11 = pneg %p2261_p1  ;;  %p2268_p0 = por %p2267_p13, %p2266_p6 }
  0xbe   : > { %p2269_p2 = pnand %p2268_p0, %p2262_p11 }
  0xc0   : > { %2272 = shalt.err (!%p2269_p2)
}
  0xc1   : > { %2003 = dma.hbm_to_vmem [thread:$0]  (!%p2665_p12), %s2663_s13, 64, %s2669_s2, %s560_s15  }
  0xc2   : > { %p2980_p3 = scmp.ne.s32.totalorder %s2968_s20, 0 }
  0xc3   : > { %s2699_s5 = sand.u32 (!%p2980_p3), 1, %s2343_s28  }
  0xc4   : > { %585 = sbr.rel (%p2980_p3) target bundleno = 2758 (0xac6), region = 92  ;;  %s1774_s22 = sshll.u32 (!%p2980_p3), %s2699_s5, 2 }
  0xc5   : > { %s588_s14 = scalar_lea.sflag (!%p2980_p3), [#allocation4], %s2699_s5  ;;  %s591_s25 = scalar_lea.vmem (!%p2980_p3), [#allocation3], %s1774_s22 }
  0xcb   : > { %2318 = dma.done.wait (%p2645_p7), %s588_s14, 64  }
  0xcc   : > { %2320 = vsyncadd (%p2645_p7), %s588_s14, 4294967232  ;;  %p2981_p6 = scmp.eq.s32.totalorder %s2486_s1, 0 }
  0xce   : > { %2322 = dma.done.wait (%p2981_p6), [#allocation7], 32   ;;  %p2982_p11 = pmov %p2981_p6 }
  0xcf   : > { %p2983_p12 = pmov %p2981_p6 }
  0xd0   : > { %2324 = vsyncadd (%p2982_p11), [#allocation7], 4294967264 }
  0xd1   : > { %2326 = dma.done.wait (%p2983_p12), [#allocation10], 272   ;;  %p2984_p8 = pmov %p2981_p6 }
  0xd2   : > { %p2985_p5 = pmov %p2981_p6 }
  0xd3   : > { %2328 = vsyncadd (%p2984_p8), [#allocation10], 4294967024 }
  0xd4   : > { %2330 = dma.done.wait (%p2985_p5), [#allocation13], 16   ;;  %p2986_p9 = pmov %p2985_p5 }
  0xd5   : > { %v2361_v0 = vmov 0.0   ;;  %vm2362_vm0 = vmmov 0   ;;  %s2987_s4 = sld [smem:[#allocation24_spill]]  ;;  %s2988_s3 = sld [smem:[#allocation22_spill]]  ;;  %v2739_v5 = vld [vmem:[%s591_s25] sm:$0xf] }
  0xd6   : > { %2332 = vsyncadd (%p2986_p9), [#allocation13], 4294967280  ;;  %1868 = vmatprep.subr.bf16.mxu1 %v2361_v0  ;;  %1860 = vmatprep.subr.bf16.mxu0 %v2361_v0  ;;  %vm697_vm1 = vcmask 261120   ;;  %v1785_v6 = vld [vmem:[#allocation8] ss:$0 sm:$0xff]  ;;  %vm877_vm2 = vcmask 64512  }
  0xd7   : > { %1872 = vmatprep.mubr.msk.bf16.mxu1 %vm2362_vm0, %v2361_v0  ;;  %1864 = vmatprep.mubr.msk.bf16.mxu0 %vm2362_vm0, %v2361_v0  ;;  %v1781_v7 = vld [vmem:[#allocation6] ss:$0 sm:$0xff]  ;;  %s2363_s22 = smov 112   ;;  %s2364_s14 = smov 120   ;;  %v1789_v40 = vld [vmem:[#allocation9] ss:$0 sm:$0xff] }
  0xd8   : > { %s2365_s25 = smov 104   ;;  %s2989_s6 = sld [smem:[#allocation26_spill]]  ;;  %vm939_vm3 = vcmask 1043456   ;;  %vm1329_vm4 = vcmask 130048   ;;  %vm1331_vm5 = vcmask 195584   ;;  %vm1334_vm6 = vcmask 257024  }
  0xd9   : > { %p667_p7 = scmp.lt.s32.totalorder %s2486_s1, 1  ;;  %s2990_s26 = sld [smem:[#allocation21_spill]]  ;;  %vm1547_vm7 = vcmask 523264  }
  0xda   : > { %s2993_s13 = sld [smem:[#allocation30_spill]]  ;;  %s1780_s2 = sshll.u32 %s2699_s5, 3 }
  0xdb   : > { %v2067_v1 = vld [vmem:[%s2987_s4] sm:$0xff]   ;;  %v2069_v3 = vld [vmem:[%s2987_s4 + $0x8] sm:$0xff]   ;;  %s668_s15 = scalar_select %p667_p7, %s2486_s1, 1 }
  0xdc   : > { %v2068_v2 = vld [vmem:[%s2988_s3] sm:$0xff]   ;;  %1869 = vmatpush3.bf16.msra.mxu1 %v2067_v1  ;;  %v2070_v4 = vld [vmem:[%s2988_s3 + $0x8] sm:$0xff]   ;;  %s2994_s18 = sld [smem:[#allocation31_spill]]  ;;  %s666_s21 = scalar_lea.vmem [#allocation14], %s1780_s2 }
  0xdd   : > { %1861 = vmatpush3.bf16.msra.mxu0 %v2068_v2  ;;  %1870 = vmatprep.subr.bf16.mxu1 %v2361_v0  ;;  %p2997_p4 = scmp.ne.s32.totalorder %s2976_s0, 0 }
  0xde   : > { %1862 = vmatprep.subr.bf16.mxu0 %v2361_v0  ;;  %v2071_v22 = vld [vmem:[%s2989_s6] sm:$0xff]   ;;  %v2072_v23 = vld [vmem:[%s2989_s6 + $0x8] sm:$0xff]   ;;  %s2996_s6 = sld [smem:[#allocation33_spill]] }
  0xdf   : > { %s669_s20 = scalar_lea.vmem %s2990_s26, %s668_s15  ;;  %s1623_s15 = scalar_lea.sflag [#allocation5], %s2699_s5 }
  0xe0   : > { %1871 = vmatpush3.bf16.msra.mxu1 %v2069_v3  ;;  %v1793_v33 = vld [vmem:[%s669_s20] ss:$0 sm:$0xff] }
  0xe1   : > { %1863 = vmatpush3.bf16.msra.mxu0 %v2070_v4  ;;  %1884 = vmatprep.subr.bf16.mxu1 %v2361_v0 }
  0xe2   : > { %1876 = vmatprep.subr.bf16.mxu0 %v2361_v0 }
  0xe3   : > { %1873 = vmatmul.mubr.msk.bf16.vlgmr.msra.gmra.mrb[0].mxu1 %vm697_vm1, %v2739_v5 }
  0xe4   : > { %1865 = vmatmul.mubr.msk.bf16.vlgmr.msra.gmra.mrb[0].mxu0 %vm697_vm1, %v2739_v5  ;;  %1886 = vmatprep.mubr.msk.bf16.mxu1 %vm2362_vm0, %v2361_v0 }
  0xe5   : > { %1880 = vmatprep.mubr.msk.bf16.mxu0 %vm2362_vm0, %v2361_v0  ;;  %1877 = vmatpush3.bf16.msra.mxu0 %v2071_v22 }
  0xe6   : > { %1878 = vmatprep.subr.bf16.mxu0 %v2361_v0 }
  0xe9   : > { %1879 = vmatpush3.bf16.msra.mxu0 %v2072_v23 }
  0xea   : > { %1890 = vmatprep.subr.bf16.mxu0 %v2361_v0 }
  0xec   : > { %1881 = vmatmul.mubr.msk.bf16.vlgmr.msra.gmra.mrb[4].mxu0 %vm697_vm1, %v2739_v5 }
  0xed   : > { %1892 = vmatprep.mubr.msk.bf16.mxu0 %vm2362_vm0, %v2361_v0 }
 0x1b6   : > { %v799_v8 = vpop.f32.mrb[0].mxu1 }
 0x1b7   : > { %v800_v9 = vadd.f32 %v1785_v6, %v799_v8  ;;  %v1874_v10 = vpop.f32.mrb[1].mxu1  ;;  %v735_v11 = vpop.f32.mrb[0].mxu0 }
 0x1b8   : > { %v736_v12 = vadd.f32 %v1781_v7, %v735_v11  ;;  %v802_v13 = vpop.f32.mrb[2].mxu1  ;;  %v1866_v14 = vpop.f32.mrb[1].mxu0 }
 0x1b9   : > { %v869_v15 = vpack.c.bf16 %v800_v9, %v800_v9  ;;  %v1875_v16 = vpop.f32.mrb[3].mxu1  ;;  %v738_v17 = vpop.f32.mrb[2].mxu0 }
 0x1ba   : > { %v741_v18 = vmul.f32 0.35355338, %v736_v12  ;;  %v1867_v19 = vpop.f32.mrb[3].mxu0 }
 0x1bb   : > { %1098 = vrot.lane.b32.xlu1 %v869_v15, %s2363_s22  ;;  %987 = vrot.lane.b32.xlu0 %v869_v15, %s2364_s14  ;;  %v882_v20 = vsel %vm877_vm2, %v869_v15, 0 }
 0x1bc   : > { %v868_v21 = vpack.c.bf16 %v741_v18, %v741_v18  ;;  %1885 = vmatpush3.bf16.xpose.msra.mxu1 %v882_v20 }
 0x1bd   : > { %1896 = vmatprep.subr.bf16.mxu1 %v2361_v0 }
 0x1bf   : > { %1096 = vrot.lane.b32.xlu1 %v868_v21, %s2363_s22  ;;  %984 = vrot.lane.b32.xlu0 %v868_v21, %s2364_s14  ;;  %v862_v41 = vpop.f32.mrb[4].mxu0 }
 0x1c0   : > { %v863_v42 = vadd.f32 %v1789_v40, %v862_v41  ;;  %v1882_v43 = vpop.f32.mrb[5].mxu0 }
 0x1c1   : > { %v865_v44 = vpop.f32.mrb[6].mxu0 }
 0x1c2   : > { %v870_v45 = vpack.c.bf16 %v863_v42, %v863_v42  ;;  %v1883_v46 = vpop.f32.mrb[7].mxu0 }
 0x1c3   : > { %1206 = vrot.lane.b32.xlu1 %v868_v21, %s2365_s25  ;;  %1208 = vrot.lane.b32.xlu0 %v869_v15, %s2365_s25 }
 0x1c4   : > { %1887 = vmatmul.mubr.msk.bf16.vlgmr.msra.gmra.mrb[4].mxu1 %vm877_vm2, %v868_v21  ;;  %v941_v47 = vsel %vm939_vm3, %v870_v45, 0 }
 0x1c5   : > { %1898 = vmatprep.mubr.msk.bf16.mxu1 %vm2362_vm0, %v2361_v0  ;;  %1891 = vmatpush3.bf16.msra.mxu0 %v941_v47 }
 0x1c6   : > { %1902 = vmatprep.subr.bf16.mxu0 %v2361_v0 }
 0x22d   : > { %v988_v24 = vpop.permute.xlu0 %987  ;;  %v1099_v26 = vpop.permute.xlu1 %1098 }
 0x22e   : > { %v993_v25 = vsel %vm877_vm2, %v988_v24, 0  ;;  %v1104_v28 = vsel %vm877_vm2, %v1099_v26, 0 }
 0x22f   : > { %1897 = vmatpush3.bf16.xpose.msra.mxu1 %v993_v25 }
 0x230   : > { %1908 = vmatprep.subr.bf16.mxu1 %v2361_v0 }
 0x231   : > { %v985_v27 = vpop.permute.xlu0 %984  ;;  %v1097_v30 = vpop.permute.xlu1 %1096 }
 0x235   : > { %v1209_v29 = vpop.permute.xlu0 %1208  ;;  %v1207_v32 = vpop.permute.xlu1 %1206 }
 0x236   : > { %1899 = vmatmul.mubr.msk.bf16.vlgmr.msra.gmra.mrb[8].mxu1 %vm877_vm2, %v985_v27  ;;  %v1214_v31 = vsel %vm877_vm2, %v1209_v29, 0 }
 0x237   : > { %1909 = vmatpush3.bf16.xpose.msra.mxu1 %v1104_v28  ;;  %1910 = vmatprep.mubr.msk.bf16.mxu1 %vm2362_vm0, %v2361_v0 }
 0x238   : > { %1920 = vmatprep.subr.bf16.mxu1 %v2361_v0 }
 0x23e   : > { %1911 = vmatmul.mubr.msk.bf16.vlgmr.msra.gmra.mrb[12].mxu1 %vm877_vm2, %v1097_v30 }
 0x23f   : > { %1921 = vmatpush3.bf16.xpose.msra.mxu1 %v1214_v31  ;;  %1922 = vmatprep.mubr.msk.bf16.mxu1 %vm2362_vm0, %v2361_v0 }
 0x240   : > { %1932 = vmatprep.subr.bf16.mxu1 %v2361_v0 }
 0x246   : > { %1923 = vmatmul.mubr.msk.bf16.vlgmr.msra.gmra.mrb[16].mxu1 %vm877_vm2, %v1207_v32 }
 0x247   : > { %1936 = vmatprep.mubr.msk.bf16.mxu1 %vm2362_vm0, %v2361_v0 }
 0x297   : > { %v918_v34 = vpop.f32.mrb[4].mxu1 }
 0x298   : > { %v919_v35 = vadd.f32 %v1793_v33, %v918_v34  ;;  %v1888_v36 = vpop.f32.mrb[5].mxu1 }
 0x299   : > { %v921_v37 = vpop.f32.mrb[6].mxu1 }
 0x29a   : > { %v1889_v38 = vpop.f32.mrb[7].mxu1  ;;  %v924_v39 = vsel %vm877_vm2, %v919_v35, -inf }
 0x29b   : > { %925 = vmax.xlane.f32.xlu0 %v924_v39 }
 0x309   : > { %v1029_v48 = vpop.f32.mrb[8].mxu1 }
 0x30a   : > { %v1030_v49 = vadd.f32 %v1793_v33, %v1029_v48  ;;  %v1900_v50 = vpop.f32.mrb[9].mxu1 }
 0x30b   : > { %v1032_v51 = vpop.f32.mrb[10].mxu1 }
 0x30c   : > { %v1901_v52 = vpop.f32.mrb[11].mxu1  ;;  %v1035_v53 = vsel %vm877_vm2, %v1030_v49, -inf }
 0x30d   : > { %1036 = vmax.xlane.f32.xlu1 %v1035_v53 }
 0x311   : > { %v1140_v54 = vpop.f32.mrb[12].mxu1 }
 0x312   : > { %v1141_v55 = vadd.f32 %v1793_v33, %v1140_v54  ;;  %v1912_v56 = vpop.f32.mrb[13].mxu1  ;;  %v2073_v54 = vld [vmem:[#allocation11] sm:$0xff]  }
 0x313   : > { %v1143_v57 = vpop.f32.mrb[14].mxu1  ;;  %1933 = vmatpush3.bf16.msra.mxu1 %v2073_v54 }
 0x314   : > { %v1913_v58 = vpop.f32.mrb[15].mxu1  ;;  %v1146_v59 = vsel %vm877_vm2, %v1141_v55, -inf  ;;  %v2074_v57 = vld [vmem:[#allocation11 + $0x8] sm:$0xff]   ;;  %1934 = vmatprep.subr.bf16.mxu1 %v2361_v0 }
 0x315   : > { %1147 = vmax.xlane.f32.xlu0 %v1146_v59 }
 0x317   : > { %1935 = vmatpush3.bf16.msra.mxu1 %v2074_v57 }
 0x318   : > { %1948 = vmatprep.subr.bf16.mxu1 %v2361_v0 }
 0x319   : > { %v1250_v60 = vpop.f32.mrb[16].mxu1 }
 0x31a   : > { %v1251_v61 = vadd.f32 %v1793_v33, %v1250_v60  ;;  %v1924_v62 = vpop.f32.mrb[17].mxu1 }
 0x31b   : > { %v1253_v63 = vpop.f32.mrb[18].mxu1 }
 0x31c   : > { %v1925_v1 = vpop.f32.mrb[19].mxu1  ;;  %v1256_v2 = vsel %vm877_vm2, %v1251_v61, -inf }
 0x31d   : > { %1257 = vmax.xlane.f32.xlu0 %v1256_v2 }
 0x328   : > { %v926_v3 = vpop.xlane.xlu0 %925 }
 0x329   : > { %v927_v4 = vsub.f32 %v919_v35, %v926_v3 }
 0x32b   : > { %v928_v6 = vmul.f32 1.442695, %v927_v4 }
 0x32d   : > { %2081 = vpow2.f32 %v928_v6 }
 0x337   : > { %v2082_v7 = vpop.eup %2081 }
 0x338   : > { %v930_v8 = vsel %vm877_vm2, %v2082_v7, 0.0 }
 0x339   : > { %931 = vadd.xlane.f32.xlu1 %v930_v8 }
 0x34a   : > { %1048 = vrot.lane.b32.xlu1 %v870_v45, %s2364_s14  ;;  %s2367_s14 = smov 16  }
 0x39a   : > { %v1037_v9 = vpop.xlane.xlu1 %1036 }
 0x39b   : > { %v1038_v10 = vsub.f32 %v1030_v49, %v1037_v9 }
 0x39d   : > { %v1039_v11 = vmul.f32 1.442695, %v1038_v10  ;;  %v1802_v10 = vld [vmem:[#allocation12] ss:$0 sm:$0xff] }
 0x39f   : > { %2083 = vpow2.f32 %v1039_v11  ;;  %v672_v11 = vunpack.c.l.bf16 %v2739_v5  ;;  %v2075_v5 = vld [vmem:[%s2939_s12] sm:$0xff]  }
 0x3a2   : > { %v1148_v12 = vpop.xlane.xlu0 %1147 }
 0x3a3   : > { %v1149_v13 = vsub.f32 %v1141_v55, %v1148_v12 }
 0x3a5   : > { %v1150_v14 = vmul.f32 1.442695, %v1149_v13 }
 0x3a7   : > { %2085 = vpow2.f32 %v1150_v14 }
 0x3a9   : > { %v2084_v15 = vpop.eup %2083 }
 0x3aa   : > { %v1258_v16 = vpop.xlane.xlu0 %1257  ;;  %v1041_v17 = vsel %vm877_vm2, %v2084_v15, 0.0 }
 0x3ab   : > { %v1259_v18 = vsub.f32 %v1251_v61, %v1258_v16  ;;  %1042 = vadd.xlane.f32.xlu0 %v1041_v17 }
 0x3ad   : > { %v1260_v19 = vmul.f32 1.442695, %v1259_v18 }
 0x3af   : > { %2087 = vpow2.f32 %v1260_v19 }
 0x3b1   : > { %v2086_v20 = vpop.eup %2085 }
 0x3b2   : > { %v1152_v21 = vsel %vm877_vm2, %v2086_v20, 0.0 }
 0x3b3   : > { %1153 = vadd.xlane.f32.xlu1 %v1152_v21 }
 0x3b9   : > { %v2088_v22 = vpop.eup %2087 }
 0x3ba   : > { %v1262_v23 = vsel %vm877_vm2, %v2088_v22, 0.0 }
 0x3bb   : > { %1263 = vadd.xlane.f32.xlu0 %v1262_v23 }
 0x3c4   : > { %1268 = vrot.lane.b32.xlu1 %v870_v45, %s2365_s25  ;;  %s2368_s25 = smov 24  }
 0x3c6   : > { %v932_v24 = vpop.xlane.xlu1 %931 }
 0x3c7   : > { %2089 = vrcp.f32 %v932_v24  ;;  %v2076_v24 = vld [vmem:[%s2939_s12 + $0x8] sm:$0xff]  }
 0x3ca   : > { %v1049_v26 = vpop.permute.xlu1 %1048 }
 0x3cb   : > { %v1054_v29 = vsel %vm939_vm3, %v1049_v26, 0 }
 0x3d1   : > { %v2090_v25 = vpop.eup %2089  ;;  %1158 = vrot.lane.b32.xlu0 %v870_v45, %s2363_s22  ;;  %s2366_s22 = smov 8  }
 0x3d2   : > { %v934_v27 = vmul.f32 %v2090_v25, %v2082_v7 }
 0x3d4   : > { %v935_v28 = vpack.c.bf16 %v934_v27, %v934_v27 }
 0x3d6   : > { %1893 = vmatmul.mubr.msk.bf16.vlgmr.msra.gmra.mrb[8].mxu0 %vm877_vm2, %v935_v28 }
 0x3d7   : > { %1903 = vmatpush3.bf16.msra.mxu0 %v1054_v29  ;;  %1904 = vmatprep.mubr.msk.bf16.mxu0 %vm2362_vm0, %v2361_v0  ;;  %v1806_v29 = vld [vmem:[%s2937_s10] ss:$0 sm:$0xff] }
 0x3d8   : > { %1914 = vmatprep.subr.bf16.mxu0 %v2361_v0 }
 0x438   : > { %v1043_v30 = vpop.xlane.xlu0 %1042 }
 0x439   : > { %2091 = vrcp.f32 %v1043_v30 }
 0x440   : > { %v1154_v31 = vpop.xlane.xlu1 %1153 }
 0x441   : > { %2093 = vrcp.f32 %v1154_v31  ;;  %v1807_v31 = vld [vmem:[%s2938_s11] ss:$0 sm:$0xff] }
 0x443   : > { %v2092_v32 = vpop.eup %2091 }
 0x444   : > { %v1045_v33 = vmul.f32 %v2092_v32, %v2084_v15  ;;  %v1269_v40 = vpop.permute.xlu1 %1268 }
 0x445   : > { %v1274_v42 = vsel %vm939_vm3, %v1269_v40, 0 }
 0x446   : > { %v1046_v34 = vpack.c.bf16 %v1045_v33, %v1045_v33 }
 0x448   : > { %v1264_v35 = vpop.xlane.xlu0 %1263  ;;  %1905 = vmatmul.mubr.msk.bf16.vlgmr.msra.gmra.mrb[12].mxu0 %vm877_vm2, %v1046_v34 }
 0x449   : > { %2095 = vrcp.f32 %v1264_v35  ;;  %1916 = vmatprep.mubr.msk.bf16.mxu0 %vm2362_vm0, %v2361_v0 }
 0x44b   : > { %v2094_v36 = vpop.eup %2093 }
 0x44c   : > { %v1156_v37 = vmul.f32 %v2094_v36, %v2086_v20  ;;  %v1159_v38 = vpop.permute.xlu0 %1158 }
 0x44d   : > { %v1164_v39 = vsel %vm939_vm3, %v1159_v38, 0 }
 0x44e   : > { %1915 = vmatpush3.bf16.msra.mxu0 %v1164_v39  ;;  %v1157_v41 = vpack.c.bf16 %v1156_v37, %v1156_v37 }
 0x44f   : > { %1926 = vmatprep.subr.bf16.mxu0 %v2361_v0 }
 0x451   : > { %1917 = vmatmul.mubr.msk.bf16.vlgmr.msra.gmra.mrb[16].mxu0 %vm877_vm2, %v1157_v41 }
 0x452   : > { %1927 = vmatpush3.bf16.msra.mxu0 %v1274_v42  ;;  %1928 = vmatprep.mubr.msk.bf16.mxu0 %vm2362_vm0, %v2361_v0 }
 0x453   : > { %v2096_v43 = vpop.eup %2095  ;;  %1940 = vmatprep.subr.bf16.mxu0 %v2361_v0 }
 0x454   : > { %v1266_v44 = vmul.f32 %v2096_v43, %v2088_v22 }
 0x456   : > { %v1267_v45 = vpack.c.bf16 %v1266_v44, %v1266_v44 }
 0x459   : > { %1929 = vmatmul.mubr.msk.bf16.vlgmr.msra.gmra.mrb[20].mxu0 %vm877_vm2, %v1267_v45 }
 0x45a   : > { %1944 = vmatprep.mubr.msk.bf16.mxu0 %vm2362_vm0, %v2361_v0  ;;  %1941 = vmatpush3.bf16.msra.mxu0 %v2075_v5 }
 0x45b   : > { %1942 = vmatprep.subr.bf16.mxu0 %v2361_v0 }
 0x45e   : > { %1943 = vmatpush3.bf16.msra.mxu0 %v2076_v24 }
 0x4a9   : > { %v977_v46 = vpop.f32.mrb[8].mxu0 }
 0x4aa   : > { %v1894_v47 = vpop.f32.mrb[9].mxu0 }
 0x4ab   : > { %v980_v48 = vpop.f32.mrb[10].mxu0 }
 0x4ac   : > { %v1895_v49 = vpop.f32.mrb[11].mxu0 }
 0x51b   : > { %v1090_v50 = vpop.f32.mrb[12].mxu0 }
 0x51c   : > { %1317 = vrot.lane.b32.xlu1 %v1090_v50, %s2366_s22  ;;  %v1906_v51 = vpop.f32.mrb[13].mxu0  ;;  %s2992_s22 = sld [smem:[#allocation28_spill]]  ;;  %v1812_v50 = vld [vmem:[%s2993_s13] ss:$0 sm:$0xff]  ;;  %s1636_s13 = sshll.u32 %s666_s21, 4  ;;  %s2884_s13 = int_to_ptr.vmem [resolvable:$true] %s1636_s13 }
 0x51d   : > { %v1093_v52 = vpop.f32.mrb[14].mxu0  ;;  %s2273_s19 = scalar_lea.vmem %s2884_s13, 128 }
 0x51e   : > { %v1907_v53 = vpop.f32.mrb[15].mxu0  ;;  %p2274_p10 = scmp.ne.s32.totalorder %s2884_s13, %s2273_s19 }
 0x520   : > { %p2275_p1 = pnand %p2274_p10, %p2997_p4 }
 0x522   : > { %v1808_v39 = vld [vmem:[%s2992_s22] ss:$0 sm:$0xff]  ;;  %s2995_s22 = sld [smem:[#allocation32_spill]]  ;;  %p2276_p13 = pneg %p2275_p1 }
 0x524   : > { %v1200_v55 = vpop.f32.mrb[16].mxu0 }
 0x525   : > { %1321 = vrot.lane.b32.xlu0 %v1200_v55, %s2367_s14  ;;  %v1918_v56 = vpop.f32.mrb[17].mxu0  ;;  %s1821_s14 = sshll.u32 %s2486_s1, 7  ;;  %s2369_s1 = smov [#allocation14]  }
 0x526   : > { %v1203_v58 = vpop.f32.mrb[18].mxu0  ;;  %s2882_s7 = scalar_lea.hbm %s2996_s6, %s1821_s14  ;;  %s2277_s2 = sshll.u32 %s2369_s1, 4  ;;  %s2278_s2 = int_to_ptr.vmem [resolvable:$false] %s2277_s2 }
 0x527   : > { %v1919_v59 = vpop.f32.mrb[19].mxu0  ;;  %p2280_p0 = scmp.lt.s32.totalorder %s2884_s13, %s2278_s2 }
 0x52c   : > { %v1310_v60 = vpop.f32.mrb[20].mxu0 }
 0x52d   : > { %1325 = vrot.lane.b32.xlu1 %v1310_v60, %s2368_s25  ;;  %v1930_v61 = vpop.f32.mrb[21].mxu0  ;;  %s2991_s25 = sld [smem:[#allocation29_spill]] }
 0x52e   : > { %v1313_v62 = vpop.f32.mrb[22].mxu0 }
 0x52f   : > { %v1931_v63 = vpop.f32.mrb[23].mxu0 }
 0x533   : > { %v2077_v35 = vld [vmem:[%s2991_s25] sm:$0xff]   ;;  %v2078_v36 = vld [vmem:[%s2991_s25 + $0x8] sm:$0xff]   ;;  %v2079_v37 = vld [vmem:[%s2991_s25 + $0x10] sm:$0xff]  }
 0x534   : > { %v2080_v38 = vld [vmem:[%s2991_s25 + $0x18] sm:$0xff]  }
 0x58e   : > { %v1318_v1 = vpop.permute.xlu1 %1317 }
 0x58f   : > { %v1328_v3 = vsel %vm877_vm2, %v977_v46, %v1318_v1 }
 0x597   : > { %v1322_v2 = vpop.permute.xlu0 %1321 }
 0x598   : > { %v1330_v4 = vsel %vm1329_vm4, %v1328_v3, %v1322_v2 }
 0x59f   : > { %v1326_v6 = vpop.permute.xlu1 %1325 }
 0x5a0   : > { %v1332_v7 = vsel %vm1331_vm5, %v1330_v4, %v1326_v6  ;;  %v1818_v4 = vld [vmem:[%s2994_s18] ss:$0 sm:$0xff]  ;;  %s2279_s18 = scalar_lea.vmem %s2278_s2, 256 }
 0x5a1   : > { %v1333_v8 = vpack.c.bf16 %v1332_v7, %v1332_v7  ;;  %v1819_v7 = vld [vmem:[%s2995_s22] ss:$0 sm:$0xff]  ;;  %p2281_p2 = scmp.lt.s32.totalorder %s2279_s18, %s2273_s19 }
 0x5a3   : > { %1335 = vst.msk [vmem:[#allocation2] sm:$0xf] %vm1334_vm6, %v1333_v8  ;;  %p2282_p3 = por %p2281_p2, %p2280_p0 }
 0x5a5   : > { %p2283_p6 = pnand %p2282_p3, %p2276_p13 }
 0x5aa   : > { %v1336_v9 = vld [vmem:[#allocation2] sm:$0xf] }
 0x5ab   : > { %1937 = vmatmul.mubr.msk.bf16.vlgmr.msra.gmra.mrb[20].mxu1 %vm697_vm1, %v1336_v9 }
 0x5ac   : > { %1956 = vmatprep.mubr.msk.bf16.mxu1 %vm2362_vm0, %v2361_v0  ;;  %1949 = vmatpush3.bf16.msra.mxu1 %v2077_v35 }
 0x5ad   : > { %1950 = vmatprep.subr.bf16.mxu1 %v2361_v0 }
 0x5b0   : > { %1951 = vmatpush3.bf16.msra.mxu1 %v2078_v36 }
 0x5b1   : > { %1952 = vmatprep.subr.bf16.mxu1 %v2361_v0 }
 0x5b4   : > { %1953 = vmatpush3.bf16.msra.mxu1 %v2079_v37 }
 0x5b5   : > { %1954 = vmatprep.subr.bf16.mxu1 %v2361_v0 }
 0x5b8   : > { %1955 = vmatpush3.bf16.msra.mxu1 %v2080_v38 }
 0x67e   : > { %v1397_v12 = vpop.f32.mrb[20].mxu1 }
 0x67f   : > { %v1398_v13 = vadd.f32 %v1802_v10, %v1397_v12  ;;  %v1938_v14 = vpop.f32.mrb[21].mxu1 }
 0x680   : > { %v1400_v15 = vpop.f32.mrb[22].mxu1 }
 0x681   : > { %v1939_v16 = vpop.f32.mrb[23].mxu1  ;;  %v1403_v17 = vadd.f32 %v1398_v13, %v672_v11 }
 0x683   : > { %v1406_v18 = vsel %vm697_vm1, %v1403_v17, 0.0 }
 0x684   : > { %1407 = vadd.xlane.f32.xlu0 %v1406_v18 }
 0x711   : > { %v1408_v19 = vpop.xlane.xlu0 %1407 }
 0x712   : > { %v1410_v20 = vmul.f32 0.03125, %v1408_v19 }
 0x714   : > { %v1411_v21 = vsub.f32 %v1403_v17, %v1410_v20 }
 0x716   : > { %v1412_v22 = vmul.f32 %v1411_v21, %v1411_v21 }
 0x718   : > { %v1413_v23 = vsel %vm697_vm1, %v1412_v22, 0.0 }
 0x719   : > { %1414 = vadd.xlane.f32.xlu1 %v1413_v23 }
 0x7a6   : > { %v1415_v25 = vpop.xlane.xlu1 %1414 }
 0x7a7   : > { %v1416_v26 = vmul.f32 0.03125, %v1415_v25 }
 0x7a9   : > { %v1417_v27 = vadd.f32 1e-05, %v1416_v26 }
 0x7ab   : > { %2097 = vrsqrt.f32 %v1417_v27 }
 0x7b5   : > { %v2098_v28 = vpop.eup %2097 }
 0x7b6   : > { %v1419_v30 = vmul.f32 %v2098_v28, %v1411_v21 }
 0x7b8   : > { %v1426_v32 = vmul.f32 %v1806_v29, %v1419_v30 }
 0x7ba   : > { %v1433_v33 = vadd.f32 %v1807_v31, %v1426_v32 }
 0x7bc   : > { %v1434_v34 = vpack.c.bf16 %v1433_v33, %v1433_v33 }
 0x7be   : > { %1945 = vmatmul.mubr.msk.bf16.vlgmr.msra.gmra.mrb[24].mxu0 %vm697_vm1, %v1434_v34 }
 0x891   : > { %v1495_v40 = vpop.f32.mrb[24].mxu0 }
 0x892   : > { %v1496_v41 = vadd.f32 %v1808_v39, %v1495_v40  ;;  %v1946_v42 = vpop.f32.mrb[25].mxu0 }
 0x893   : > { %v1498_v43 = vpop.f32.mrb[26].mxu0 }
 0x894   : > { %v1503_v44 = vmul.f32 0.70710677, %v1496_v41  ;;  %v1947_v45 = vpop.f32.mrb[27].mxu0  ;;  %v1501_v47 = vmul.f32 0.5, %v1496_v41 }
 0x896   : > { %2099 = verf.f32 %v1503_v44 }
 0x8a0   : > { %v2100_v46 = vpop.eup %2099 }
 0x8a1   : > { %v1505_v48 = vadd.f32 1.0, %v2100_v46 }
 0x8a3   : > { %v1506_v0 = vmul.f32 %v1505_v48, %v1501_v47 }
 0x8a5   : > { %v1507_v49 = vpack.c.bf16 %v1506_v0, %v1506_v0 }
 0x8a7   : > { %1957 = vmatmul.mubr.msk.bf16.vlgmr.msra.gmra.mrb[24].mxu1 %vm1547_vm7, %v1507_v49 }
 0x97a   : > { %v1585_v51 = vpop.f32.mrb[24].mxu1 }
 0x97b   : > { %v1586_v52 = vadd.f32 %v1812_v50, %v1585_v51  ;;  %v1958_v53 = vpop.f32.mrb[25].mxu1 }
 0x97c   : > { %v1588_v54 = vpop.f32.mrb[26].mxu1 }
 0x97d   : > { %v1959_v55 = vpop.f32.mrb[27].mxu1  ;;  %v1591_v56 = vadd.f32 %v1586_v52, %v1433_v33 }
 0x97f   : > { %v1594_v57 = vsel %vm697_vm1, %v1591_v56, 0.0 }
 0x980   : > { %1595 = vadd.xlane.f32.xlu0 %v1594_v57 }
 0xa0d   : > { %v1596_v58 = vpop.xlane.xlu0 %1595 }
 0xa0e   : > { %v1597_v59 = vmul.f32 0.03125, %v1596_v58 }
 0xa10   : > { %v1598_v60 = vsub.f32 %v1591_v56, %v1597_v59 }
 0xa12   : > { %v1599_v61 = vmul.f32 %v1598_v60, %v1598_v60 }
 0xa14   : > { %v1600_v62 = vsel %vm697_vm1, %v1599_v61, 0.0 }
 0xa15   : > { %1601 = vadd.xlane.f32.xlu0 %v1600_v62 }
 0xaa2   : > { %v1602_v63 = vpop.xlane.xlu0 %1601 }
 0xaa3   : > { %v1603_v1 = vmul.f32 0.03125, %v1602_v63 }
 0xaa5   : > { %v1604_v2 = vadd.f32 1e-05, %v1603_v1 }
 0xaa7   : > { %2101 = vrsqrt.f32 %v1604_v2 }
 0xab1   : > { %v2102_v3 = vpop.eup %2101 }
 0xab2   : > { %v1606_v6 = vmul.f32 %v2102_v3, %v1598_v60 }
 0xab4   : > { %v1613_v8 = vmul.f32 %v1818_v4, %v1606_v6 }
 0xab6   : > { %v1620_v9 = vadd.f32 %v1819_v7, %v1613_v8 }
 0xab8   : > { %1621 = vst.msk [vmem:[%s666_s21] sm:$0xff] %vm697_vm1, %v1620_v9 }
 0xab9   : > { %2286 = shalt.err (!%p2283_p6)
}
 0xaba   : > { %s2287_s4 = scalar_lea.hbm %s2882_s7, 128  ;;  %s2291_s26 = scalar_lea.hbm %s2996_s6, 256 }
 0xabb   : > { %p2288_p11 = scmp.ne.s32.totalorder %s2882_s7, %s2287_s4  ;;  %p2292_p5 = scmp.lt.u32.totalorder %s2882_s7, %s2996_s6 }
 0xabc   : > { %p2293_p9 = scmp.lt.u32.totalorder %s2291_s26, %s2287_s4  ;;  %p2295_p10 = scmp.lt.u32.totalorder %s2287_s4, %s2882_s7 }
 0xabd   : > { %p2289_p12 = pnand %p2288_p11, %p2997_p4 }
 0xabe   : > { %p2294_p7 = por %p2293_p9, %p2292_p5 }
 0xabf   : > { %p2290_p8 = pneg %p2289_p12 }
 0xac0   : > { %p2296_p1 = por %p2295_p10, %p2294_p7 }
 0xac2   : > { %p2297_p13 = pnand %p2296_p1, %p2290_p8 }
 0xac4   : > { %2300 = shalt.err (!%p2297_p13)
}
 0xac5   : > { %1982 = dma.vmem_to_hbm [thread:$0]  (%p2997_p4), %s2884_s13, 128, %s2882_s7, %s1623_s15  }
 0xac6 PF: > { %s1648_s14 = sand.u32 1, %s2339_s27   ;;  %p2998_p0 = scmp.ne.s32.totalorder %s2977_s16, 0 }
 0xac7   : > { %p2999_p2 = scmp.ge.s32.totalorder %s2351_s30, 2  ;;  %s1649_s21 = scalar_lea.sflag [#allocation5], %s1648_s14 }
 0xac9   : > { %p2005_p3 = pnand %p2999_p2, %p2998_p0 }
 0xacb   : > { %2334 = dma.done.wait (!%p2005_p3), %s1649_s21, 128  }
 0xacc   : > { %2336 = vsyncadd (!%p2005_p3), %s1649_s21, 4294967168  ;;  %p34_p6 = scmp.ge.s32.totalorder %s2629_s24, 4   ;;  %s3000_s27 = smov %s2343_s28 }
 0xacd   : > { %s3001_s28 = smov %s2347_s29  ;;  %s3002_s29 = smov %s2641_s17 }
 0xace   : > { %s3003_s30 = smov %s2629_s24  ;;  %36 = sbr.rel (!%p34_p6) target bundleno = 23 (0x17), region = 160 }
 0xad5   :  { %1654 = vsyncpa [#allocation4], 1 }
 0xad6   :  { %1656 = vsyncpa [#allocation4 + $0x1], 1 }
 0xad7   :  { %1657 = vsyncpa [#allocation7], 1 }
 0xad8   :  { %1658 = vsyncpa [#allocation10], 1 }
 0xad9   :  { %1659 = vsyncpa [#allocation13], 1 }
 0xada   :  { %1660 = vsyncpa [#allocation5], 1 }
 0xadb   :  { %1662 = vsyncpa [#allocation5 + $0x1], 1 }

// kernel: tpu_custom_call.1
= control target key start
LH: loop header
LB: loop body
LE: loop exit
PB: predicated region body
PF: predicated region fallthrough
CT: control target
= control target key end

     0   :  { %s2927_s0 = inlined_call_operand.hbm [shape: bf16[2,8,32], index: 0, kind: input, shape index: {}]   ;;  %s2928_s1 = inlined_call_operand.vmem [shape: f32[2,1,8], index: 1, kind: input, shape index: {}]   ;;  %s2929_s2 = inlined_call_operand.vmem [shape: bf16[32,32], index: 2, kind: input, shape index: {}]   ;;  %s2930_s3 = inlined_call_operand.hbm [shape: f32[1,32], index: 3, kind: input, shape index: {}]   ;;  %s2931_s4 = inlined_call_operand.vmem [shape: bf16[32,32], index: 4, kind: input, shape index: {}]   ;;  %s2932_s5 = inlined_call_operand.hbm [shape: f32[1,32], index: 5, kind: input, shape index: {}]   ;;  %s2933_s6 = inlined_call_operand.vmem [shape: bf16[32,32], index: 6, kind: input, shape index: {}]   ;;  %s2934_s7 = inlined_call_operand.hbm [shape: f32[1,32], index: 7, kind: input, shape index: {}]   ;;  %s2935_s8 = inlined_call_operand.hbm [shape: bf16[32,32], index: 8, kind: input, shape index: {}]   ;;  %s2936_s9 = inlined_call_operand.hbm [shape: f32[1,32], index: 9, kind: input, shape index: {}]   ;;  %s2937_s10 = inlined_call_operand.vmem [shape: f32[1,32], index: 10, kind: input, shape index: {}]   ;;  %s2938_s11 = inlined_call_operand.vmem [shape: f32[1,32], index: 11, kind: input, shape index: {}]   ;;  %s2939_s12 = inlined_call_operand.vmem [shape: bf16[32,64], index: 12, kind: input, shape index: {}]   ;;  %s2940_s13 = inlined_call_operand.vmem [shape: f32[1,64], index: 13, kind: input, shape index: {}]   ;;  %s2941_s14 = inlined_call_operand.vmem [shape: bf16[64,32], index: 14, kind: input, shape index: {}]   ;;  %s2942_s15 = inlined_call_operand.vmem [shape: f32[1,32], index: 15, kind: input, shape index: {}]   ;;  %s2943_s16 = inlined_call_operand.vmem [shape: f32[1,32], index: 16, kind: input, shape index: {}]   ;;  %s2944_s17 = inlined_call_operand.vmem [shape: f32[1,32], index: 17, kind: input, shape index: {}]   ;;  %s2945_s18 = inlined_call_operand.hbm [shape: f32[2,8,32], index: 18, kind: output, shape index: {}]  }
   0x1   :  { %2954 = sst [smem:[#allocation20_spill]] %s2927_s0 }
   0x2   :  { %2955 = sst [smem:[#allocation21_spill]] %s2928_s1 }
   0x3   :  { %2956 = sst [smem:[#allocation22_spill]] %s2929_s2 }
   0x4   :  { %2957 = sst [smem:[#allocation23_spill]] %s2930_s3 }
   0x5   :  { %2958 = sst [smem:[#allocation24_spill]] %s2931_s4 }
   0x6   :  { %2959 = sst [smem:[#allocation25_spill]] %s2932_s5 }
   0x7   :  { %2960 = sst [smem:[#allocation26_spill]] %s2933_s6 }
   0x8   :  { %2961 = sst [smem:[#allocation27_spill]] %s2934_s7 }
   0x9   :  { %2962 = sst [smem:[#allocation28_spill]] %s2940_s13 }
   0xa   :  { %2963 = sst [smem:[#allocation29_spill]] %s2941_s14 }
   0xb   :  { %2964 = sst [smem:[#allocation30_spill]] %s2942_s15 }
   0xc   :  { %2965 = sst [smem:[#allocation31_spill]] %s2943_s16 }
   0xd   :  { %2966 = sst [smem:[#allocation32_spill]] %s2944_s17 }
   0xe   :  { %2967 = sst [smem:[#allocation33_spill]] %s2945_s18 }
   0xf   :  { %23 = vsyncpa [#allocation4], 0 }
  0x10   :  { %25 = vsyncpa [#allocation4 + $0x1], 0 }
  0x11   :  { %26 = vsyncpa [#allocation7], 0 }
  0x12   :  { %27 = vsyncpa [#allocation10], 0 }
  0x13   :  { %28 = vsyncpa [#allocation13], 0 }
  0x14   :  { %29 = vsyncpa [#allocation5], 0 }
  0x15   :  { %31 = vsyncpa [#allocation5 + $0x1], 0  ;;  %s2465_s27 = smov 0   ;;  %s2467_s28 = smov 0  }
  0x16   :  { %s2469_s29 = smov 0   ;;  %s2471_s30 = smov 0  }
  0x17 LB: > { %s2353_s0 = smov [#allocation6]   ;;  %s2486_s1 = sadd.s32 4294967295, %s2351_s30   ;;  %s2351_s30 = sphi %s2471_s30, %s3003_s30   ;;  %s2347_s29 = sphi %s2469_s29, %s3002_s29   ;;  %s2343_s28 = sphi %s2467_s28, %s3001_s28   ;;  %s2339_s27 = sphi %s2465_s27, %s3000_s27  }
  0x18   : > { %s472_s19 = sshll.u32 %s2353_s0, 4  ;;  %p1764_p0 = scmp.ge.s32.totalorder %s2351_s30, 1  ;;  %s2491_s19 = int_to_ptr.vmem [resolvable:$true] %s472_s19 }
  0x19   : > { %p2950_p1 = scmp.eq.s32.totalorder %s2486_s1, 0  ;;  %p456_p2 = scmp.lt.s32.totalorder %s2351_s30, 3 }
  0x1a   : > { %s2354_s21 = smov [#allocation9]   ;;  %s2355_s2 = smov [#allocation8]  }
  0x1b   : > { %p2493_p3 = pnand %p1764_p0, %p456_p2  ;;  %s500_s22 = sshll.u32 %s2354_s21, 4  ;;  %s2500_s22 = int_to_ptr.vmem [resolvable:$true] %s500_s22 }
  0x1c   : > { %s486_s23 = sshll.u32 %s2355_s2, 4  ;;  %s2356_s25 = smov [#allocation11]   ;;  %s2508_s23 = int_to_ptr.vmem [resolvable:$true] %s486_s23 }
  0x1d   : > { %s2968_s20 = scalar_select %p2493_p3, 1, 0 }
  0x1e   : > { %p1984_p5 = pneg %p2493_p3  ;;  %s2510_s26 = sshll.u32 %s2356_s25, 4  ;;  %s511_s26 = int_to_ptr.vmem [resolvable:$true] %s2510_s26 }
  0x1f   : > { %s2970_s3 = sld [smem:[#allocation23_spill]] }
  0x20   : > { %p2504_p6 = pnand %p1984_p5, %p2950_p1 }
  0x22   : > { %p2520_p8 = pneg %p2504_p6 }
  0x25   : > { %s2103_s17 = scalar_lea.hbm %s2970_s3, 16 }
  0x26   : > { %p2104_p7 = scmp.ne.s32.totalorder %s2970_s3, %s2103_s17  ;;  %p2110_p11 = scmp.lt.u32.totalorder %s2103_s17, %s2970_s3 }
  0x28   : > { %p2106_p9 = pnand %p2520_p8, %p2104_p7 }
  0x2a   : > { %p2107_p10 = pneg %p2106_p9 }
  0x2c   : > { %p2112_p12 = pnand %p2110_p11, %p2107_p10 }
  0x2e   : > { %2115 = shalt.err (!%p2112_p12)
}
  0x2f   : > { %s2116_s16 = scalar_lea.vmem %s2491_s19, 16  ;;  %s2123_s18 = scalar_lea.vmem %s2491_s19, 32 }
  0x30   : > { %p2117_p13 = scmp.ne.s32.totalorder %s2491_s19, %s2116_s16  ;;  %p2124_p5 = scmp.lt.s32.totalorder %s2491_s19, %s2491_s19 }
  0x31   : > { %p2125_p7 = scmp.lt.s32.totalorder %s2123_s18, %s2116_s16 }
  0x32   : > { %p2119_p0 = pnand %p2117_p13, %p2520_p8 }
  0x33   : > { %p2126_p9 = por %p2125_p7, %p2124_p5 }
  0x34   : > { %p2120_p2 = pneg %p2119_p0 }
  0x36   : > { %p2127_p4 = pnand %p2126_p9, %p2120_p2 }
  0x38   : > { %2130 = shalt.err (!%p2127_p4)
}
  0x39   : > { %1987 = dma.hbm_to_vmem [thread:$0]  (!%p2504_p6), %s2970_s3, 16, %s2491_s19, [#allocation7]  }
  0x3a   : > { %s2972_s7 = sld [smem:[#allocation27_spill]] }
  0x40   : > { %s2131_s25 = scalar_lea.hbm %s2972_s7, 16 }
  0x41   : > { %p2132_p10 = scmp.ne.s32.totalorder %s2972_s7, %s2131_s25  ;;  %p2138_p4 = scmp.lt.u32.totalorder %s2131_s25, %s2972_s7 }
  0x43   : > { %p2134_p11 = pnand %p2132_p10, %p2520_p8 }
  0x45   : > { %p2135_p12 = pneg %p2134_p11 }
  0x47   : > { %p2140_p13 = pnand %p2138_p4, %p2135_p12 }
  0x49   : > { %2143 = shalt.err (!%p2140_p13)
}
  0x4a   : > { %s2144_s19 = scalar_lea.vmem %s2500_s22, 16  ;;  %s2151_s13 = scalar_lea.vmem %s2500_s22, 32 }
  0x4b   : > { %p2145_p0 = scmp.ne.s32.totalorder %s2500_s22, %s2144_s19  ;;  %p2152_p7 = scmp.lt.s32.totalorder %s2500_s22, %s2500_s22 }
  0x4c   : > { %p2153_p9 = scmp.lt.s32.totalorder %s2151_s13, %s2144_s19 }
  0x4d   : > { %p2147_p2 = pnand %p2145_p0, %p2520_p8 }
  0x4e   : > { %p2154_p10 = por %p2153_p9, %p2152_p7 }
  0x4f   : > { %p2148_p5 = pneg %p2147_p2 }
  0x51   : > { %p2155_p11 = pnand %p2154_p10, %p2148_p5 }
  0x53   : > { %2158 = shalt.err (!%p2155_p11)
}
  0x54   : > { %1993 = dma.hbm_to_vmem [thread:$0]  (!%p2504_p6), %s2972_s7, 16, %s2500_s22, [#allocation10]  }
  0x55   : > { %s2973_s5 = sld [smem:[#allocation25_spill]] }
  0x5b   : > { %s2159_s21 = scalar_lea.hbm %s2973_s5, 16 }
  0x5c   : > { %p2160_p12 = scmp.ne.s32.totalorder %s2973_s5, %s2159_s21  ;;  %p2166_p0 = scmp.lt.u32.totalorder %s2159_s21, %s2973_s5 }
  0x5e   : > { %p2162_p4 = pnand %p2160_p12, %p2520_p8 }
  0x60   : > { %p2163_p13 = pneg %p2162_p4 }
  0x62   : > { %p2168_p2 = pnand %p2166_p0, %p2163_p13 }
  0x64   : > { %2171 = shalt.err (!%p2168_p2)
}
  0x65   : > { %s2172_s22 = scalar_lea.vmem %s2508_s23, 16  ;;  %s2179_s13 = scalar_lea.vmem %s2508_s23, 32 }
  0x66   : > { %p2173_p5 = scmp.ne.s32.totalorder %s2508_s23, %s2172_s22  ;;  %p2180_p10 = scmp.lt.s32.totalorder %s2508_s23, %s2508_s23 }
  0x67   : > { %p2181_p11 = scmp.lt.s32.totalorder %s2179_s13, %s2172_s22 }
  0x68   : > { %p2175_p7 = pnand %p2173_p5, %p2520_p8 }
  0x69   : > { %p2182_p12 = por %p2181_p11, %p2180_p10 }
  0x6a   : > { %p2176_p9 = pneg %p2175_p7 }
  0x6c   : > { %p2183_p4 = pnand %p2182_p12, %p2176_p9 }
  0x6e   : > { %2186 = shalt.err (!%p2183_p4)
}
  0x6f   : > { %1990 = dma.hbm_to_vmem [thread:$0]  (!%p2504_p6), %s2973_s5, 16, %s2508_s23, [#allocation7]  }
  0x70   : > { %s2187_s21 = scalar_lea.hbm %s2935_s8, 256 }
  0x71   : > { %p2188_p13 = scmp.ne.s32.totalorder %s2935_s8, %s2187_s21  ;;  %p2194_p5 = scmp.lt.u32.totalorder %s2187_s21, %s2935_s8 }
  0x73   : > { %p2190_p0 = pnand %p2188_p13, %p2520_p8 }
  0x75   : > { %p2191_p2 = pneg %p2190_p0 }
  0x77   : > { %p2196_p7 = pnand %p2194_p5, %p2191_p2 }
  0x79   : > { %2199 = shalt.err (!%p2196_p7)
}
  0x7a   : > { %s2200_s22 = scalar_lea.vmem %s511_s26, 256  ;;  %p2208_p12 = scmp.lt.s32.totalorder %s511_s26, %s511_s26 }
  0x7b   : > { %p2201_p9 = scmp.ne.s32.totalorder %s511_s26, %s2200_s22  ;;  %p2209_p4 = scmp.lt.s32.totalorder %s2200_s22, %s2200_s22 }
  0x7d   : > { %p2203_p10 = pnand %p2201_p9, %p2520_p8  ;;  %p2210_p1 = por %p2209_p4, %p2208_p12 }
  0x7f   : > { %p2204_p11 = pneg %p2203_p10 }
  0x81   : > { %p2211_p3 = pnand %p2210_p1, %p2204_p11 }
  0x83   : > { %2214 = shalt.err (!%p2211_p3)
}
  0x84   : > { %s2357_s23 = smov 64   ;;  %s2358_s13 = smov 4  }
  0x85   : > { %1996 = dma.hbm_to_vmem [thread:$0]  (!%p2504_p6), %s2935_s8, 256, %s511_s26, [#allocation10], %s2357_s23, %s2357_s23, %s2358_s13  }
  0x86   : > { %s2359_s17 = smov [#allocation12]   ;;  %s2215_s16 = scalar_lea.hbm %s2936_s9, 16 }
  0x87   : > { %s524_s0 = sshll.u32 %s2359_s17, 4  ;;  %p2216_p1 = scmp.ne.s32.totalorder %s2936_s9, %s2215_s16  ;;  %s525_s0 = int_to_ptr.vmem [resolvable:$true] %s524_s0 }
  0x88   : > { %p2222_p0 = scmp.lt.u32.totalorder %s2215_s16, %s2936_s9 }
  0x89   : > { %p2218_p3 = pnand %p2216_p1, %p2520_p8 }
  0x8b   : > { %p2219_p13 = pneg %p2218_p3 }
  0x8d   : > { %p2224_p2 = pnand %p2222_p0, %p2219_p13 }
  0x8f   : > { %2227 = shalt.err (!%p2224_p2)
}
  0x90   : > { %s2228_s26 = scalar_lea.vmem %s525_s0, 16  ;;  %s2235_s23 = scalar_lea.vmem %s525_s0, 32 }
  0x91   : > { %p2229_p5 = scmp.ne.s32.totalorder %s525_s0, %s2228_s26  ;;  %p2236_p10 = scmp.lt.s32.totalorder %s525_s0, %s525_s0 }
  0x92   : > { %p2237_p11 = scmp.lt.s32.totalorder %s2235_s23, %s2228_s26 }
  0x93   : > { %p2231_p7 = pnand %p2229_p5, %p2520_p8 }
  0x94   : > { %p2238_p12 = por %p2237_p11, %p2236_p10 }
  0x95   : > { %p2232_p9 = pneg %p2231_p7 }
  0x97   : > { %p2239_p4 = pnand %p2238_p12, %p2232_p9 }
  0x99   : > { %2242 = shalt.err (!%p2239_p4)
}
  0x9a   : > { %1999 = dma.hbm_to_vmem [thread:$0]  (!%p2504_p6), %s2936_s9, 16, %s525_s0, [#allocation13]  }
  0x9b   : > { %s1763_s3 = sadd.s32 4294967294, %s2351_s30   ;;  %s2629_s24 = sadd.s32 1, %s2351_s30  }
  0x9c   : > { %s44_s2 = sadd.s32 1, %s2347_s29  ;;  %s41_s15 = ssub.s32 %s2351_s30, %s2629_s24 }
  0x9d   : > { %p51_p8 = scmp.ne.s32.totalorder %s2347_s29, %s2343_s28  ;;  %p42_p1 = scmp.eq.s32.totalorder %s41_s15, 0 }
  0x9e   : > { %p52_p3 = scmp.eq.s32.totalorder %s2351_s30, 0  ;;  %p57_p13 = scmp.ne.s32.totalorder %s2343_s28, %s2339_s27 }
  0x9f   : > { %p443_p0 = scmp.eq.s32.totalorder %s2486_s1, 1  ;;  %p2974_p5 = scmp.eq.s32.totalorder %s2486_s1, 0 }
  0xa0   : > { %s2641_s17 = scalar_select %p42_p1, %s2347_s29, %s44_s2  }
  0xa1   : > { %p53_p2 = por %p52_p3, %p51_p8  ;;  %p2645_p7 = por %p2974_p5, %p57_p13 }
  0xa2   : > { %p2649_p6 = por %p443_p0, %p51_p8  ;;  %p449_p9 = scmp.eq.s32.totalorder %s1763_s3, 1 }
  0xa3   : > { %p2013_p10 = scmp.lt.s32.totalorder %s2351_s30, 2  ;;  %s559_s25 = sand.u32 1, %s2347_s29  }
  0xa4   : > { %s2976_s0 = scalar_select %p2649_p6, 1, 0 }
  0xa5   : > { %p2655_p11 = por %p449_p9, %p57_p13  ;;  %s1771_s18 = sshll.u32 %s559_s25, 2 }
  0xa6   : > { %s1772_s19 = sshll.u32 %s2351_s30, 6  ;;  %s2978_s23 = sld [smem:[#allocation20_spill]] }
  0xa7   : > { %s2977_s16 = scalar_select %p2655_p11, 1, 0 }
  0xa8   : > { %s563_s14 = scalar_lea.vmem [#allocation3], %s1771_s18  ;;  %p2665_p12 = pnand %p2013_p10, %p53_p2 }
  0xa9   : > { %s570_s2 = sshll.u32 %s563_s14, 4  ;;  %s560_s15 = scalar_lea.sflag [#allocation4], %s559_s25  ;;  %s2669_s2 = int_to_ptr.vmem [resolvable:$true] %s570_s2 }
  0xaa   : > { %p2245_p8 = pneg %p2665_p12 }
  0xac   : > { %s2663_s13 = scalar_lea.hbm %s2978_s23, %s1772_s19  ;;  %s2248_s22 = scalar_lea.hbm %s2978_s23, 128 }
  0xad   : > { %s2243_s5 = scalar_lea.hbm %s2663_s13, 64  ;;  %p2249_p13 = scmp.lt.u32.totalorder %s2663_s13, %s2978_s23 }
  0xae   : > { %p2244_p4 = scmp.ne.s32.totalorder %s2663_s13, %s2243_s5  ;;  %p2250_p0 = scmp.lt.u32.totalorder %s2248_s22, %s2243_s5 }
  0xaf   : > { %p2252_p5 = scmp.lt.u32.totalorder %s2243_s5, %s2663_s13 }
  0xb0   : > { %p2246_p1 = pnand %p2245_p8, %p2244_p4  ;;  %p2251_p2 = por %p2250_p0, %p2249_p13 }
  0xb2   : > { %p2247_p3 = pneg %p2246_p1  ;;  %p2253_p9 = por %p2252_p5, %p2251_p2 }
  0xb4   : > { %p2254_p10 = pnand %p2253_p9, %p2247_p3 }
  0xb6   : > { %2257 = shalt.err (!%p2254_p10)
}
  0xb7   : > { %s2258_s25 = scalar_lea.vmem %s2669_s2, 64  ;;  %s2360_s19 = smov [#allocation3]  }
  0xb8   : > { %p2259_p4 = scmp.ne.s32.totalorder %s2669_s2, %s2258_s25  ;;  %s2263_s18 = sshll.u32 %s2360_s19, 4  ;;  %s2264_s18 = int_to_ptr.vmem [resolvable:$false] %s2263_s18 }
  0xb9   : > { %s2265_s26 = scalar_lea.vmem %s2264_s18, 128  ;;  %p2266_p6 = scmp.lt.s32.totalorder %s2669_s2, %s2264_s18 }
  0xba   : > { %p2261_p1 = pnand %p2259_p4, %p2245_p8  ;;  %p2267_p13 = scmp.lt.s32.totalorder %s2265_s26, %s2258_s25 }
  0xbc   : > { %p2262_p11 = pneg %p2261_p1  ;;  %p2268_p0 = por %p2267_p13, %p2266_p6 }
  0xbe   : > { %p2269_p2 = pnand %p2268_p0, %p2262_p11 }
  0xc0   : > { %2272 = shalt.err (!%p2269_p2)
}
  0xc1   : > { %2003 = dma.hbm_to_vmem [thread:$0]  (!%p2665_p12), %s2663_s13, 64, %s2669_s2, %s560_s15  }
  0xc2   : > { %p2980_p3 = scmp.ne.s32.totalorder %s2968_s20, 0 }
  0xc3   : > { %s2699_s5 = sand.u32 (!%p2980_p3), 1, %s2343_s28  }
  0xc4   : > { %585 = sbr.rel (%p2980_p3) target bundleno = 2758 (0xac6), region = 92  ;;  %s1774_s22 = sshll.u32 (!%p2980_p3), %s2699_s5, 2 }
  0xc5   : > { %s588_s14 = scalar_lea.sflag (!%p2980_p3), [#allocation4], %s2699_s5  ;;  %s591_s25 = scalar_lea.vmem (!%p2980_p3), [#allocation3], %s1774_s22 }
  0xcb   : > { %2318 = dma.done.wait (%p2645_p7), %s588_s14, 64  }
  0xcc   : > { %2320 = vsyncadd (%p2645_p7), %s588_s14, 4294967232  ;;  %p2981_p6 = scmp.eq.s32.totalorder %s2486_s1, 0 }
  0xce   : > { %2322 = dma.done.wait (%p2981_p6), [#allocation7], 32   ;;  %p2982_p11 = pmov %p2981_p6 }
  0xcf   : > { %p2983_p12 = pmov %p2981_p6 }
  0xd0   : > { %2324 = vsyncadd (%p2982_p11), [#allocation7], 4294967264 }
  0xd1   : > { %2326 = dma.done.wait (%p2983_p12), [#allocation10], 272   ;;  %p2984_p8 = pmov %p2981_p6 }
  0xd2   : > { %p2985_p5 = pmov %p2981_p6 }
  0xd3   : > { %2328 = vsyncadd (%p2984_p8), [#allocation10], 4294967024 }
  0xd4   : > { %2330 = dma.done.wait (%p2985_p5), [#allocation13], 16   ;;  %p2986_p9 = pmov %p2985_p5 }
  0xd5   : > { %v2361_v0 = vmov 0.0   ;;  %vm2362_vm0 = vmmov 0   ;;  %s2987_s4 = sld [smem:[#allocation24_spill]]  ;;  %s2988_s3 = sld [smem:[#allocation22_spill]]  ;;  %v2739_v5 = vld [vmem:[%s591_s25] sm:$0xf] }
  0xd6   : > { %2332 = vsyncadd (%p2986_p9), [#allocation13], 4294967280  ;;  %1868 = vmatprep.subr.bf16.mxu1 %v2361_v0  ;;  %1860 = vmatprep.subr.bf16.mxu0 %v2361_v0  ;;  %vm697_vm1 = vcmask 261120   ;;  %v1785_v6 = vld [vmem:[#allocation8] ss:$0 sm:$0xff]  ;;  %vm877_vm2 = vcmask 64512  }
  0xd7   : > { %1872 = vmatprep.mubr.msk.bf16.mxu1 %vm2362_vm0, %v2361_v0  ;;  %1864 = vmatprep.mubr.msk.bf16.mxu0 %vm2362_vm0, %v2361_v0  ;;  %v1781_v7 = vld [vmem:[#allocation6] ss:$0 sm:$0xff]  ;;  %s2363_s22 = smov 112   ;;  %s2364_s14 = smov 120   ;;  %v1789_v40 = vld [vmem:[#allocation9] ss:$0 sm:$0xff] }
  0xd8   : > { %s2365_s25 = smov 104   ;;  %s2989_s6 = sld [smem:[#allocation26_spill]]  ;;  %vm939_vm3 = vcmask 1043456   ;;  %vm1329_vm4 = vcmask 130048   ;;  %vm1331_vm5 = vcmask 195584   ;;  %vm1334_vm6 = vcmask 257024  }
  0xd9   : > { %p667_p7 = scmp.lt.s32.totalorder %s2486_s1, 1  ;;  %s2990_s26 = sld [smem:[#allocation21_spill]]  ;;  %vm1547_vm7 = vcmask 523264  }
  0xda   : > { %s2993_s13 = sld [smem:[#allocation30_spill]]  ;;  %s1780_s2 = sshll.u32 %s2699_s5, 3 }
  0xdb   : > { %v2067_v1 = vld [vmem:[%s2987_s4] sm:$0xff]   ;;  %v2069_v3 = vld [vmem:[%s2987_s4 + $0x8] sm:$0xff]   ;;  %s668_s15 = scalar_select %p667_p7, %s2486_s1, 1 }
  0xdc   : > { %v2068_v2 = vld [vmem:[%s2988_s3] sm:$0xff]   ;;  %1869 = vmatpush3.bf16.msra.mxu1 %v2067_v1  ;;  %v2070_v4 = vld [vmem:[%s2988_s3 + $0x8] sm:$0xff]   ;;  %s2994_s18 = sld [smem:[#allocation31_spill]]  ;;  %s666_s21 = scalar_lea.vmem [#allocation14], %s1780_s2 }
  0xdd   : > { %1861 = vmatpush3.bf16.msra.mxu0 %v2068_v2  ;;  %1870 = vmatprep.subr.bf16.mxu1 %v2361_v0  ;;  %p2997_p4 = scmp.ne.s32.totalorder %s2976_s0, 0 }
  0xde   : > { %1862 = vmatprep.subr.bf16.mxu0 %v2361_v0  ;;  %v2071_v22 = vld [vmem:[%s2989_s6] sm:$0xff]   ;;  %v2072_v23 = vld [vmem:[%s2989_s6 + $0x8] sm:$0xff]   ;;  %s2996_s6 = sld [smem:[#allocation33_spill]] }
  0xdf   : > { %s669_s20 = scalar_lea.vmem %s2990_s26, %s668_s15  ;;  %s1623_s15 = scalar_lea.sflag [#allocation5], %s2699_s5 }
  0xe0   : > { %1871 = vmatpush3.bf16.msra.mxu1 %v2069_v3  ;;  %v1793_v33 = vld [vmem:[%s669_s20] ss:$0 sm:$0xff] }
  0xe1   : > { %1863 = vmatpush3.bf16.msra.mxu0 %v2070_v4  ;;  %1884 = vmatprep.subr.bf16.mxu1 %v2361_v0 }
  0xe2   : > { %1876 = vmatprep.subr.bf16.mxu0 %v2361_v0 }
  0xe3   : > { %1873 = vmatmul.mubr.msk.bf16.vlgmr.msra.gmra.mrb[0].mxu1 %vm697_vm1, %v2739_v5 }
  0xe4   : > { %1865 = vmatmul.mubr.msk.bf16.vlgmr.msra.gmra.mrb[0].mxu0 %vm697_vm1, %v2739_v5  ;;  %1886 = vmatprep.mubr.msk.bf16.mxu1 %vm2362_vm0, %v2361_v0 }
  0xe5   : > { %1880 = vmatprep.mubr.msk.bf16.mxu0 %vm2362_vm0, %v2361_v0  ;;  %1877 = vmatpush3.bf16.msra.mxu0 %v2071_v22 }
  0xe6   : > { %1878 = vmatprep.subr.bf16.mxu0 %v2361_v0 }
  0xe9   : > { %1879 = vmatpush3.bf16.msra.mxu0 %v2072_v23 }
  0xea   : > { %1890 = vmatprep.subr.bf16.mxu0 %v2361_v0 }
  0xec   : > { %1881 = vmatmul.mubr.msk.bf16.vlgmr.msra.gmra.mrb[4].mxu0 %vm697_vm1, %v2739_v5 }
  0xed   : > { %1892 = vmatprep.mubr.msk.bf16.mxu0 %vm2362_vm0, %v2361_v0 }
 0x1b6   : > { %v799_v8 = vpop.f32.mrb[0].mxu1 }
 0x1b7   : > { %v800_v9 = vadd.f32 %v1785_v6, %v799_v8  ;;  %v1874_v10 = vpop.f32.mrb[1].mxu1  ;;  %v735_v11 = vpop.f32.mrb[0].mxu0 }
 0x1b8   : > { %v736_v12 = vadd.f32 %v1781_v7, %v735_v11  ;;  %v802_v13 = vpop.f32.mrb[2].mxu1  ;;  %v1866_v14 = vpop.f32.mrb[1].mxu0 }
 0x1b9   : > { %v869_v15 = vpack.c.bf16 %v800_v9, %v800_v9  ;;  %v1875_v16 = vpop.f32.mrb[3].mxu1  ;;  %v738_v17 = vpop.f32.mrb[2].mxu0 }
 0x1ba   : > { %v741_v18 = vmul.f32 0.35355338, %v736_v12  ;;  %v1867_v19 = vpop.f32.mrb[3].mxu0 }
 0x1bb   : > { %1098 = vrot.lane.b32.xlu1 %v869_v15, %s2363_s22  ;;  %987 = vrot.lane.b32.xlu0 %v869_v15, %s2364_s14  ;;  %v882_v20 = vsel %vm877_vm2, %v869_v15, 0 }
 0x1bc   : > { %v868_v21 = vpack.c.bf16 %v741_v18, %v741_v18  ;;  %1885 = vmatpush3.bf16.xpose.msra.mxu1 %v882_v20 }
 0x1bd   : > { %1896 = vmatprep.subr.bf16.mxu1 %v2361_v0 }
 0x1bf   : > { %1096 = vrot.lane.b32.xlu1 %v868_v21, %s2363_s22  ;;  %984 = vrot.lane.b32.xlu0 %v868_v21, %s2364_s14  ;;  %v862_v41 = vpop.f32.mrb[4].mxu0 }
 0x1c0   : > { %v863_v42 = vadd.f32 %v1789_v40, %v862_v41  ;;  %v1882_v43 = vpop.f32.mrb[5].mxu0 }
 0x1c1   : > { %v865_v44 = vpop.f32.mrb[6].mxu0 }
 0x1c2   : > { %v870_v45 = vpack.c.bf16 %v863_v42, %v863_v42  ;;  %v1883_v46 = vpop.f32.mrb[7].mxu0 }
 0x1c3   : > { %1206 = vrot.lane.b32.xlu1 %v868_v21, %s2365_s25  ;;  %1208 = vrot.lane.b32.xlu0 %v869_v15, %s2365_s25 }
 0x1c4   : > { %1887 = vmatmul.mubr.msk.bf16.vlgmr.msra.gmra.mrb[4].mxu1 %vm877_vm2, %v868_v21  ;;  %v941_v47 = vsel %vm939_vm3, %v870_v45, 0 }
 0x1c5   : > { %1898 = vmatprep.mubr.msk.bf16.mxu1 %vm2362_vm0, %v2361_v0  ;;  %1891 = vmatpush3.bf16.msra.mxu0 %v941_v47 }
 0x1c6   : > { %1902 = vmatprep.subr.bf16.mxu0 %v2361_v0 }
 0x22d   : > { %v988_v24 = vpop.permute.xlu0 %987  ;;  %v1099_v26 = vpop.permute.xlu1 %1098 }
 0x22e   : > { %v993_v25 = vsel %vm877_vm2, %v988_v24, 0  ;;  %v1104_v28 = vsel %vm877_vm2, %v1099_v26, 0 }
 0x22f   : > { %1897 = vmatpush3.bf16.xpose.msra.mxu1 %v993_v25 }
 0x230   : > { %1908 = vmatprep.subr.bf16.mxu1 %v2361_v0 }
 0x231   : > { %v985_v27 = vpop.permute.xlu0 %984  ;;  %v1097_v30 = vpop.permute.xlu1 %1096 }
 0x235   : > { %v1209_v29 = vpop.permute.xlu0 %1208  ;;  %v1207_v32 = vpop.permute.xlu1 %1206 }
 0x236   : > { %1899 = vmatmul.mubr.msk.bf16.vlgmr.msra.gmra.mrb[8].mxu1 %vm877_vm2, %v985_v27  ;;  %v1214_v31 = vsel %vm877_vm2, %v1209_v29, 0 }
 0x237   : > { %1909 = vmatpush3.bf16.xpose.msra.mxu1 %v1104_v28  ;;  %1910 = vmatprep.mubr.msk.bf16.mxu1 %vm2362_vm0, %v2361_v0 }
 0x238   : > { %1920 = vmatprep.subr.bf16.mxu1 %v2361_v0 }
 0x23e   : > { %1911 = vmatmul.mubr.msk.bf16.vlgmr.msra.gmra.mrb[12].mxu1 %vm877_vm2, %v1097_v30 }
 0x23f   : > { %1921 = vmatpush3.bf16.xpose.msra.mxu1 %v1214_v31  ;;  %1922 = vmatprep.mubr.msk.bf16.mxu1 %vm2362_vm0, %v2361_v0 }
 0x240   : > { %1932 = vmatprep.subr.bf16.mxu1 %v2361_v0 }
 0x246   : > { %1923 = vmatmul.mubr.msk.bf16.vlgmr.msra.gmra.mrb[16].mxu1 %vm877_vm2, %v1207_v32 }
 0x247   : > { %1936 = vmatprep.mubr.msk.bf16.mxu1 %vm2362_vm0, %v2361_v0 }
 0x297   : > { %v918_v34 = vpop.f32.mrb[4].mxu1 }
 0x298   : > { %v919_v35 = vadd.f32 %v1793_v33, %v918_v34  ;;  %v1888_v36 = vpop.f32.mrb[5].mxu1 }
 0x299   : > { %v921_v37 = vpop.f32.mrb[6].mxu1 }
 0x29a   : > { %v1889_v38 = vpop.f32.mrb[7].mxu1  ;;  %v924_v39 = vsel %vm877_vm2, %v919_v35, -inf }
 0x29b   : > { %925 = vmax.xlane.f32.xlu0 %v924_v39 }
 0x309   : > { %v1029_v48 = vpop.f32.mrb[8].mxu1 }
 0x30a   : > { %v1030_v49 = vadd.f32 %v1793_v33, %v1029_v48  ;;  %v1900_v50 = vpop.f32.mrb[9].mxu1 }
 0x30b   : > { %v1032_v51 = vpop.f32.mrb[10].mxu1 }
 0x30c   : > { %v1901_v52 = vpop.f32.mrb[11].mxu1  ;;  %v1035_v53 = vsel %vm877_vm2, %v1030_v49, -inf }
 0x30d   : > { %1036 = vmax.xlane.f32.xlu1 %v1035_v53 }
 0x311   : > { %v1140_v54 = vpop.f32.mrb[12].mxu1 }
 0x312   : > { %v1141_v55 = vadd.f32 %v1793_v33, %v1140_v54  ;;  %v1912_v56 = vpop.f32.mrb[13].mxu1  ;;  %v2073_v54 = vld [vmem:[#allocation11] sm:$0xff]  }
 0x313   : > { %v1143_v57 = vpop.f32.mrb[14].mxu1  ;;  %1933 = vmatpush3.bf16.msra.mxu1 %v2073_v54 }
 0x314   : > { %v1913_v58 = vpop.f32.mrb[15].mxu1  ;;  %v1146_v59 = vsel %vm877_vm2, %v1141_v55, -inf  ;;  %v2074_v57 = vld [vmem:[#allocation11 + $0x8] sm:$0xff]   ;;  %1934 = vmatprep.subr.bf16.mxu1 %v2361_v0 }
 0x315   : > { %1147 = vmax.xlane.f32.xlu0 %v1146_v59 }
 0x317   : > { %1935 = vmatpush3.bf16.msra.mxu1 %v2074_v57 }
 0x318   : > { %1948 = vmatprep.subr.bf16.mxu1 %v2361_v0 }
 0x319   : > { %v1250_v60 = vpop.f32.mrb[16].mxu1 }
 0x31a   : > { %v1251_v61 = vadd.f32 %v1793_v33, %v1250_v60  ;;  %v1924_v62 = vpop.f32.mrb[17].mxu1 }
 0x31b   : > { %v1253_v63 = vpop.f32.mrb[18].mxu1 }
 0x31c   : > { %v1925_v1 = vpop.f32.mrb[19].mxu1  ;;  %v1256_v2 = vsel %vm877_vm2, %v1251_v61, -inf }
 0x31d   : > { %1257 = vmax.xlane.f32.xlu0 %v1256_v2 }
 0x328   : > { %v926_v3 = vpop.xlane.xlu0 %925 }
 0x329   : > { %v927_v4 = vsub.f32 %v919_v35, %v926_v3 }
 0x32b   : > { %v928_v6 = vmul.f32 1.442695, %v927_v4 }
 0x32d   : > { %2081 = vpow2.f32 %v928_v6 }
 0x337   : > { %v2082_v7 = vpop.eup %2081 }
 0x338   : > { %v930_v8 = vsel %vm877_vm2, %v2082_v7, 0.0 }
 0x339   : > { %931 = vadd.xlane.f32.xlu1 %v930_v8 }
 0x34a   : > { %1048 = vrot.lane.b32.xlu1 %v870_v45, %s2364_s14  ;;  %s2367_s14 = smov 16  }
 0x39a   : > { %v1037_v9 = vpop.xlane.xlu1 %1036 }
 0x39b   : > { %v1038_v10 = vsub.f32 %v1030_v49, %v1037_v9 }
 0x39d   : > { %v1039_v11 = vmul.f32 1.442695, %v1038_v10  ;;  %v1802_v10 = vld [vmem:[#allocation12] ss:$0 sm:$0xff] }
 0x39f   : > { %2083 = vpow2.f32 %v1039_v11  ;;  %v672_v11 = vunpack.c.l.bf16 %v2739_v5  ;;  %v2075_v5 = vld [vmem:[%s2939_s12] sm:$0xff]  }
 0x3a2   : > { %v1148_v12 = vpop.xlane.xlu0 %1147 }
 0x3a3   : > { %v1149_v13 = vsub.f32 %v1141_v55, %v1148_v12 }
 0x3a5   : > { %v1150_v14 = vmul.f32 1.442695, %v1149_v13 }
 0x3a7   : > { %2085 = vpow2.f32 %v1150_v14 }
 0x3a9   : > { %v2084_v15 = vpop.eup %2083 }
 0x3aa   : > { %v1258_v16 = vpop.xlane.xlu0 %1257  ;;  %v1041_v17 = vsel %vm877_vm2, %v2084_v15, 0.0 }
 0x3ab   : > { %v1259_v18 = vsub.f32 %v1251_v61, %v1258_v16  ;;  %1042 = vadd.xlane.f32.xlu0 %v1041_v17 }
 0x3ad   : > { %v1260_v19 = vmul.f32 1.442695, %v1259_v18 }
 0x3af   : > { %2087 = vpow2.f32 %v1260_v19 }
 0x3b1   : > { %v2086_v20 = vpop.eup %2085 }
 0x3b2   : > { %v1152_v21 = vsel %vm877_vm2, %v2086_v20, 0.0 }
 0x3b3   : > { %1153 = vadd.xlane.f32.xlu1 %v1152_v21 }
 0x3b9   : > { %v2088_v22 = vpop.eup %2087 }
 0x3ba   : > { %v1262_v23 = vsel %vm877_vm2, %v2088_v22, 0.0 }
 0x3bb   : > { %1263 = vadd.xlane.f32.xlu0 %v1262_v23 }
 0x3c4   : > { %1268 = vrot.lane.b32.xlu1 %v870_v45, %s2365_s25  ;;  %s2368_s25 = smov 24  }
 0x3c6   : > { %v932_v24 = vpop.xlane.xlu1 %931 }
 0x3c7   : > { %2089 = vrcp.f32 %v932_v24  ;;  %v2076_v24 = vld [vmem:[%s2939_s12 + $0x8] sm:$0xff]  }
 0x3ca   : > { %v1049_v26 = vpop.permute.xlu1 %1048 }
 0x3cb   : > { %v1054_v29 = vsel %vm939_vm3, %v1049_v26, 0 }
 0x3d1   : > { %v2090_v25 = vpop.eup %2089  ;;  %1158 = vrot.lane.b32.xlu0 %v870_v45, %s2363_s22  ;;  %s2366_s22 = smov 8  }
 0x3d2   : > { %v934_v27 = vmul.f32 %v2090_v25, %v2082_v7 }
 0x3d4   : > { %v935_v28 = vpack.c.bf16 %v934_v27, %v934_v27 }
 0x3d6   : > { %1893 = vmatmul.mubr.msk.bf16.vlgmr.msra.gmra.mrb[8].mxu0 %vm877_vm2, %v935_v28 }
 0x3d7   : > { %1903 = vmatpush3.bf16.msra.mxu0 %v1054_v29  ;;  %1904 = vmatprep.mubr.msk.bf16.mxu0 %vm2362_vm0, %v2361_v0  ;;  %v1806_v29 = vld [vmem:[%s2937_s10] ss:$0 sm:$0xff] }
 0x3d8   : > { %1914 = vmatprep.subr.bf16.mxu0 %v2361_v0 }
 0x438   : > { %v1043_v30 = vpop.xlane.xlu0 %1042 }
 0x439   : > { %2091 = vrcp.f32 %v1043_v30 }
 0x440   : > { %v1154_v31 = vpop.xlane.xlu1 %1153 }
 0x441   : > { %2093 = vrcp.f32 %v1154_v31  ;;  %v1807_v31 = vld [vmem:[%s2938_s11] ss:$0 sm:$0xff] }
 0x443   : > { %v2092_v32 = vpop.eup %2091 }
 0x444   : > { %v1045_v33 = vmul.f32 %v2092_v32, %v2084_v15  ;;  %v1269_v40 = vpop.permute.xlu1 %1268 }
 0x445   : > { %v1274_v42 = vsel %vm939_vm3, %v1269_v40, 0 }
 0x446   : > { %v1046_v34 = vpack.c.bf16 %v1045_v33, %v1045_v33 }
 0x448   : > { %v1264_v35 = vpop.xlane.xlu0 %1263  ;;  %1905 = vmatmul.mubr.msk.bf16.vlgmr.msra.gmra.mrb[12].mxu0 %vm877_vm2, %v1046_v34 }
 0x449   : > { %2095 = vrcp.f32 %v1264_v35  ;;  %1916 = vmatprep.mubr.msk.bf16.mxu0 %vm2362_vm0, %v2361_v0 }
 0x44b   : > { %v2094_v36 = vpop.eup %2093 }
 0x44c   : > { %v1156_v37 = vmul.f32 %v2094_v36, %v2086_v20  ;;  %v1159_v38 = vpop.permute.xlu0 %1158 }
 0x44d   : > { %v1164_v39 = vsel %vm939_vm3, %v1159_v38, 0 }
 0x44e   : > { %1915 = vmatpush3.bf16.msra.mxu0 %v1164_v39  ;;  %v1157_v41 = vpack.c.bf16 %v1156_v37, %v1156_v37 }
 0x44f   : > { %1926 = vmatprep.subr.bf16.mxu0 %v2361_v0 }
 0x451   : > { %1917 = vmatmul.mubr.msk.bf16.vlgmr.msra.gmra.mrb[16].mxu0 %vm877_vm2, %v1157_v41 }
 0x452   : > { %1927 = vmatpush3.bf16.msra.mxu0 %v1274_v42  ;;  %1928 = vmatprep.mubr.msk.bf16.mxu0 %vm2362_vm0, %v2361_v0 }
 0x453   : > { %v2096_v43 = vpop.eup %2095  ;;  %1940 = vmatprep.subr.bf16.mxu0 %v2361_v0 }
 0x454   : > { %v1266_v44 = vmul.f32 %v2096_v43, %v2088_v22 }
 0x456   : > { %v1267_v45 = vpack.c.bf16 %v1266_v44, %v1266_v44 }
 0x459   : > { %1929 = vmatmul.mubr.msk.bf16.vlgmr.msra.gmra.mrb[20].mxu0 %vm877_vm2, %v1267_v45 }
 0x45a   : > { %1944 = vmatprep.mubr.msk.bf16.mxu0 %vm2362_vm0, %v2361_v0  ;;  %1941 = vmatpush3.bf16.msra.mxu0 %v2075_v5 }
 0x45b   : > { %1942 = vmatprep.subr.bf16.mxu0 %v2361_v0 }
 0x45e   : > { %1943 = vmatpush3.bf16.msra.mxu0 %v2076_v24 }
 0x4a9   : > { %v977_v46 = vpop.f32.mrb[8].mxu0 }
 0x4aa   : > { %v1894_v47 = vpop.f32.mrb[9].mxu0 }
 0x4ab   : > { %v980_v48 = vpop.f32.mrb[10].mxu0 }
 0x4ac   : > { %v1895_v49 = vpop.f32.mrb[11].mxu0 }
 0x51b   : > { %v1090_v50 = vpop.f32.mrb[12].mxu0 }
 0x51c   : > { %1317 = vrot.lane.b32.xlu1 %v1090_v50, %s2366_s22  ;;  %v1906_v51 = vpop.f32.mrb[13].mxu0  ;;  %s2992_s22 = sld [smem:[#allocation28_spill]]  ;;  %v1812_v50 = vld [vmem:[%s2993_s13] ss:$0 sm:$0xff]  ;;  %s1636_s13 = sshll.u32 %s666_s21, 4  ;;  %s2884_s13 = int_to_ptr.vmem [resolvable:$true] %s1636_s13 }
 0x51d   : > { %v1093_v52 = vpop.f32.mrb[14].mxu0  ;;  %s2273_s19 = scalar_lea.vmem %s2884_s13, 128 }
 0x51e   : > { %v1907_v53 = vpop.f32.mrb[15].mxu0  ;;  %p2274_p10 = scmp.ne.s32.totalorder %s2884_s13, %s2273_s19 }
 0x520   : > { %p2275_p1 = pnand %p2274_p10, %p2997_p4 }
 0x522   : > { %v1808_v39 = vld [vmem:[%s2992_s22] ss:$0 sm:$0xff]  ;;  %s2995_s22 = sld [smem:[#allocation32_spill]]  ;;  %p2276_p13 = pneg %p2275_p1 }
 0x524   : > { %v1200_v55 = vpop.f32.mrb[16].mxu0 }
 0x525   : > { %1321 = vrot.lane.b32.xlu0 %v1200_v55, %s2367_s14  ;;  %v1918_v56 = vpop.f32.mrb[17].mxu0  ;;  %s1821_s14 = sshll.u32 %s2486_s1, 7  ;;  %s2369_s1 = smov [#allocation14]  }
 0x526   : > { %v1203_v58 = vpop.f32.mrb[18].mxu0  ;;  %s2882_s7 = scalar_lea.hbm %s2996_s6, %s1821_s14  ;;  %s2277_s2 = sshll.u32 %s2369_s1, 4  ;;  %s2278_s2 = int_to_ptr.vmem [resolvable:$false] %s2277_s2 }
 0x527   : > { %v1919_v59 = vpop.f32.mrb[19].mxu0  ;;  %p2280_p0 = scmp.lt.s32.totalorder %s2884_s13, %s2278_s2 }
 0x52c   : > { %v1310_v60 = vpop.f32.mrb[20].mxu0 }
 0x52d   : > { %1325 = vrot.lane.b32.xlu1 %v1310_v60, %s2368_s25  ;;  %v1930_v61 = vpop.f32.mrb[21].mxu0  ;;  %s2991_s25 = sld [smem:[#allocation29_spill]] }
 0x52e   : > { %v1313_v62 = vpop.f32.mrb[22].mxu0 }
 0x52f   : > { %v1931_v63 = vpop.f32.mrb[23].mxu0 }
 0x533   : > { %v2077_v35 = vld [vmem:[%s2991_s25] sm:$0xff]   ;;  %v2078_v36 = vld [vmem:[%s2991_s25 + $0x8] sm:$0xff]   ;;  %v2079_v37 = vld [vmem:[%s2991_s25 + $0x10] sm:$0xff]  }
 0x534   : > { %v2080_v38 = vld [vmem:[%s2991_s25 + $0x18] sm:$0xff]  }
 0x58e   : > { %v1318_v1 = vpop.permute.xlu1 %1317 }
 0x58f   : > { %v1328_v3 = vsel %vm877_vm2, %v977_v46, %v1318_v1 }
 0x597   : > { %v1322_v2 = vpop.permute.xlu0 %1321 }
 0x598   : > { %v1330_v4 = vsel %vm1329_vm4, %v1328_v3, %v1322_v2 }
 0x59f   : > { %v1326_v6 = vpop.permute.xlu1 %1325 }
 0x5a0   : > { %v1332_v7 = vsel %vm1331_vm5, %v1330_v4, %v1326_v6  ;;  %v1818_v4 = vld [vmem:[%s2994_s18] ss:$0 sm:$0xff]  ;;  %s2279_s18 = scalar_lea.vmem %s2278_s2, 256 }
 0x5a1   : > { %v1333_v8 = vpack.c.bf16 %v1332_v7, %v1332_v7  ;;  %v1819_v7 = vld [vmem:[%s2995_s22] ss:$0 sm:$0xff]  ;;  %p2281_p2 = scmp.lt.s32.totalorder %s2279_s18, %s2273_s19 }
 0x5a3   : > { %1335 = vst.msk [vmem:[#allocation2] sm:$0xf] %vm1334_vm6, %v1333_v8  ;;  %p2282_p3 = por %p2281_p2, %p2280_p0 }
 0x5a5   : > { %p2283_p6 = pnand %p2282_p3, %p2276_p13 }
 0x5aa   : > { %v1336_v9 = vld [vmem:[#allocation2] sm:$0xf] }
 0x5ab   : > { %1937 = vmatmul.mubr.msk.bf16.vlgmr.msra.gmra.mrb[20].mxu1 %vm697_vm1, %v1336_v9 }
 0x5ac   : > { %1956 = vmatprep.mubr.msk.bf16.mxu1 %vm2362_vm0, %v2361_v0  ;;  %1949 = vmatpush3.bf16.msra.mxu1 %v2077_v35 }
 0x5ad   : > { %1950 = vmatprep.subr.bf16.mxu1 %v2361_v0 }
 0x5b0   : > { %1951 = vmatpush3.bf16.msra.mxu1 %v2078_v36 }
 0x5b1   : > { %1952 = vmatprep.subr.bf16.mxu1 %v2361_v0 }
 0x5b4   : > { %1953 = vmatpush3.bf16.msra.mxu1 %v2079_v37 }
 0x5b5   : > { %1954 = vmatprep.subr.bf16.mxu1 %v2361_v0 }
 0x5b8   : > { %1955 = vmatpush3.bf16.msra.mxu1 %v2080_v38 }
 0x67e   : > { %v1397_v12 = vpop.f32.mrb[20].mxu1 }
 0x67f   : > { %v1398_v13 = vadd.f32 %v1802_v10, %v1397_v12  ;;  %v1938_v14 = vpop.f32.mrb[21].mxu1 }
 0x680   : > { %v1400_v15 = vpop.f32.mrb[22].mxu1 }
 0x681   : > { %v1939_v16 = vpop.f32.mrb[23].mxu1  ;;  %v1403_v17 = vadd.f32 %v1398_v13, %v672_v11 }
 0x683   : > { %v1406_v18 = vsel %vm697_vm1, %v1403_v17, 0.0 }
 0x684   : > { %1407 = vadd.xlane.f32.xlu0 %v1406_v18 }
 0x711   : > { %v1408_v19 = vpop.xlane.xlu0 %1407 }
 0x712   : > { %v1410_v20 = vmul.f32 0.03125, %v1408_v19 }
 0x714   : > { %v1411_v21 = vsub.f32 %v1403_v17, %v1410_v20 }
 0x716   : > { %v1412_v22 = vmul.f32 %v1411_v21, %v1411_v21 }
 0x718   : > { %v1413_v23 = vsel %vm697_vm1, %v1412_v22, 0.0 }
 0x719   : > { %1414 = vadd.xlane.f32.xlu1 %v1413_v23 }
 0x7a6   : > { %v1415_v25 = vpop.xlane.xlu1 %1414 }
 0x7a7   : > { %v1416_v26 = vmul.f32 0.03125, %v1415_v25 }
 0x7a9   : > { %v1417_v27 = vadd.f32 1e-05, %v1416_v26 }
 0x7ab   : > { %2097 = vrsqrt.f32 %v1417_v27 }
 0x7b5   : > { %v2098_v28 = vpop.eup %2097 }
 0x7b6   : > { %v1419_v30 = vmul.f32 %v2098_v28, %v1411_v21 }
 0x7b8   : > { %v1426_v32 = vmul.f32 %v1806_v29, %v1419_v30 }
 0x7ba   : > { %v1433_v33 = vadd.f32 %v1807_v31, %v1426_v32 }
 0x7bc   : > { %v1434_v34 = vpack.c.bf16 %v1433_v33, %v1433_v33 }
 0x7be   : > { %1945 = vmatmul.mubr.msk.bf16.vlgmr.msra.gmra.mrb[24].mxu0 %vm697_vm1, %v1434_v34 }
 0x891   : > { %v1495_v40 = vpop.f32.mrb[24].mxu0 }
 0x892   : > { %v1496_v41 = vadd.f32 %v1808_v39, %v1495_v40  ;;  %v1946_v42 = vpop.f32.mrb[25].mxu0 }
 0x893   : > { %v1498_v43 = vpop.f32.mrb[26].mxu0 }
 0x894   : > { %v1503_v44 = vmul.f32 0.70710677, %v1496_v41  ;;  %v1947_v45 = vpop.f32.mrb[27].mxu0  ;;  %v1501_v47 = vmul.f32 0.5, %v1496_v41 }
 0x896   : > { %2099 = verf.f32 %v1503_v44 }
 0x8a0   : > { %v2100_v46 = vpop.eup %2099 }
 0x8a1   : > { %v1505_v48 = vadd.f32 1.0, %v2100_v46 }
 0x8a3   : > { %v1506_v0 = vmul.f32 %v1505_v48, %v1501_v47 }
 0x8a5   : > { %v1507_v49 = vpack.c.bf16 %v1506_v0, %v1506_v0 }
 0x8a7   : > { %1957 = vmatmul.mubr.msk.bf16.vlgmr.msra.gmra.mrb[24].mxu1 %vm1547_vm7, %v1507_v49 }
 0x97a   : > { %v1585_v51 = vpop.f32.mrb[24].mxu1 }
 0x97b   : > { %v1586_v52 = vadd.f32 %v1812_v50, %v1585_v51  ;;  %v1958_v53 = vpop.f32.mrb[25].mxu1 }
 0x97c   : > { %v1588_v54 = vpop.f32.mrb[26].mxu1 }
 0x97d   : > { %v1959_v55 = vpop.f32.mrb[27].mxu1  ;;  %v1591_v56 = vadd.f32 %v1586_v52, %v1433_v33 }
 0x97f   : > { %v1594_v57 = vsel %vm697_vm1, %v1591_v56, 0.0 }
 0x980   : > { %1595 = vadd.xlane.f32.xlu0 %v1594_v57 }
 0xa0d   : > { %v1596_v58 = vpop.xlane.xlu0 %1595 }
 0xa0e   : > { %v1597_v59 = vmul.f32 0.03125, %v1596_v58 }
 0xa10   : > { %v1598_v60 = vsub.f32 %v1591_v56, %v1597_v59 }
 0xa12   : > { %v1599_v61 = vmul.f32 %v1598_v60, %v1598_v60 }
 0xa14   : > { %v1600_v62 = vsel %vm697_vm1, %v1599_v61, 0.0 }
 0xa15   : > { %1601 = vadd.xlane.f32.xlu0 %v1600_v62 }
 0xaa2   : > { %v1602_v63 = vpop.xlane.xlu0 %1601 }
 0xaa3   : > { %v1603_v1 = vmul.f32 0.03125, %v1602_v63 }
 0xaa5   : > { %v1604_v2 = vadd.f32 1e-05, %v1603_v1 }
 0xaa7   : > { %2101 = vrsqrt.f32 %v1604_v2 }
 0xab1   : > { %v2102_v3 = vpop.eup %2101 }
 0xab2   : > { %v1606_v6 = vmul.f32 %v2102_v3, %v1598_v60 }
 0xab4   : > { %v1613_v8 = vmul.f32 %v1818_v4, %v1606_v6 }
 0xab6   : > { %v1620_v9 = vadd.f32 %v1819_v7, %v1613_v8 }
 0xab8   : > { %1621 = vst.msk [vmem:[%s666_s21] sm:$0xff] %vm697_vm1, %v1620_v9 }
 0xab9   : > { %2286 = shalt.err (!%p2283_p6)
}
 0xaba   : > { %s2287_s4 = scalar_lea.hbm %s2882_s7, 128  ;;  %s2291_s26 = scalar_lea.hbm %s2996_s6, 256 }
 0xabb   : > { %p2288_p11 = scmp.ne.s32.totalorder %s2882_s7, %s2287_s4  ;;  %p2292_p5 = scmp.lt.u32.totalorder %s2882_s7, %s2996_s6 }
 0xabc   : > { %p2293_p9 = scmp.lt.u32.totalorder %s2291_s26, %s2287_s4  ;;  %p2295_p10 = scmp.lt.u32.totalorder %s2287_s4, %s2882_s7 }
 0xabd   : > { %p2289_p12 = pnand %p2288_p11, %p2997_p4 }
 0xabe   : > { %p2294_p7 = por %p2293_p9, %p2292_p5 }
 0xabf   : > { %p2290_p8 = pneg %p2289_p12 }
 0xac0   : > { %p2296_p1 = por %p2295_p10, %p2294_p7 }
 0xac2   : > { %p2297_p13 = pnand %p2296_p1, %p2290_p8 }
 0xac4   : > { %2300 = shalt.err (!%p2297_p13)
}
 0xac5   : > { %1982 = dma.vmem_to_hbm [thread:$0]  (%p2997_p4), %s2884_s13, 128, %s2882_s7, %s1623_s15  }
 0xac6 PF: > { %s1648_s14 = sand.u32 1, %s2339_s27   ;;  %p2998_p0 = scmp.ne.s32.totalorder %s2977_s16, 0 }
 0xac7   : > { %p2999_p2 = scmp.ge.s32.totalorder %s2351_s30, 2  ;;  %s1649_s21 = scalar_lea.sflag [#allocation5], %s1648_s14 }
 0xac9   : > { %p2005_p3 = pnand %p2999_p2, %p2998_p0 }
 0xacb   : > { %2334 = dma.done.wait (!%p2005_p3), %s1649_s21, 128  }
 0xacc   : > { %2336 = vsyncadd (!%p2005_p3), %s1649_s21, 4294967168  ;;  %p34_p6 = scmp.ge.s32.totalorder %s2629_s24, 4   ;;  %s3000_s27 = smov %s2343_s28 }
 0xacd   : > { %s3001_s28 = smov %s2347_s29  ;;  %s3002_s29 = smov %s2641_s17 }
 0xace   : > { %s3003_s30 = smov %s2629_s24  ;;  %36 = sbr.rel (!%p34_p6) target bundleno = 23 (0x17), region = 160 }
 0xad5   :  { %1654 = vsyncpa [#allocation4], 1 }
 0xad6   :  { %1656 = vsyncpa [#allocation4 + $0x1], 1 }
 0xad7   :  { %1657 = vsyncpa [#allocation7], 1 }
 0xad8   :  { %1658 = vsyncpa [#allocation10], 1 }
 0xad9   :  { %1659 = vsyncpa [#allocation13], 1 }
 0xada   :  { %1660 = vsyncpa [#allocation5], 1 }
 0xadb   :  { %1662 = vsyncpa [#allocation5 + $0x1], 1 }

</bundles_post_ra>
